<compile_context>
chip_gen: v5e
topology: v5e:2x2
jax: 0.10.0
libtpu: 0.0.40
codegen_flags: <defaults>
</compile_context>

<pallas_src>
import functools

import numpy as np
import jax
import jax.numpy as jnp
from jax.experimental import pallas as pl
from jax.experimental.pallas import tpu as pltpu


def _rup(x, m):
    return ((x + m - 1) // m) * m


def crop(image, new_shape):
    """Matches the PyTorch `crop` helper (NCHW)."""
    mh = image.shape[2] // 2
    mw = image.shape[3] // 2
    sh = mh - round(new_shape[2] / 2)
    sw = mw - round(new_shape[3] / 2)
    return image[:, :, sh:sh + new_shape[2], sw:sw + new_shape[3]]


# ---------------------------------------------------------------------------
# Pallas kernels
# ---------------------------------------------------------------------------
def _tconv_subpixel_kernel(x_ref, w_ref, b_ref, o_ref, *, mq, wq):
    # x_ref: (Mq_ext, Cin_p) f32  -- flattened (h+1, w+1)-padded input, one batch
    # w_ref: (4, Cin_p, 4*Cp) bf16 -- per-view weights (view = 2x2 input window)
    # b_ref: (1, 4*Cp) f32         -- bias tiled per output phase
    # o_ref: (Mq, 4*Cp) f32        -- column block p*Cp:(p+1)*Cp is output phase p
    acc = None
    for v in range(4):
        di, dj = divmod(v, 2)
        off = di * wq + dj                      # static flat row shift
        lhs = x_ref[off:off + mq, :].astype(jnp.bfloat16)
        part = jnp.dot(lhs, w_ref[v], preferred_element_type=jnp.float32)
        acc = part if acc is None else acc + part
    o_ref[...] = acc + b_ref[...]


def _conv2_in_lrelu_kernel(x_ref, w_ref, b_ref, m_ref, o_ref, *,
                           mp, wp, inv_cnt, use_in, eps, slope):
    # x_ref: (Mp_ext, 2*Ck) f32 -- flattened padded [tconv-out | cropped-skip]
    # w_ref: (9, 2*Ck, Cp) bf16 -- conv2 weights, input-channel layout matches x
    # b_ref: (1, Cp) f32; m_ref: (Mp, 1) f32 valid-row mask; o_ref: (Mp, Cp) f32
    acc = None
    for tap in range(9):
        kh, kw = divmod(tap, 3)
        off = kh * wp + kw                      # static flat row shift
        lhs = x_ref[off:off + mp, :].astype(jnp.bfloat16)
        part = jnp.dot(lhs, w_ref[tap], preferred_element_type=jnp.float32)
        acc = part if acc is None else acc + part
    y = acc + b_ref[...]

    if use_in:
        m = m_ref[...]                                           # (Mp, 1)
        mean = jnp.sum(y * m, axis=0, keepdims=True) * inv_cnt   # per-channel
        cent = y - mean
        var = jnp.sum((cent * cent) * m, axis=0, keepdims=True) * inv_cnt
        y = cent * jax.lax.rsqrt(var + eps)
    o_ref[...] = jnp.where(y >= 0, y, slope * y)


# ---------------------------------------------------------------------------
# pallas_call wrappers
# ---------------------------------------------------------------------------
def _tconv_pallas(x_flat, w_views, bias, *, mq, wq):
    n, mq_ext, cin_p = x_flat.shape
    cp4 = w_views.shape[-1]
    kern = functools.partial(_tconv_subpixel_kernel, mq=mq, wq=wq)
    flops = 2 * n * mq * cin_p * 4 * cp4
    bytes_accessed = (x_flat.size * 4 + w_views.size * 2 + bias.size * 4
                      + n * mq * cp4 * 4)
    return pl.pallas_call(
        kern,
        out_shape=jax.ShapeDtypeStruct((n, mq, cp4), jnp.float32),
        grid=(n,),
        in_specs=[
            pl.BlockSpec((None, mq_ext, cin_p), lambda i: (i, 0, 0)),
            pl.BlockSpec((4, cin_p, cp4), lambda i: (0, 0, 0)),
            pl.BlockSpec((1, cp4), lambda i: (0, 0)),
        ],
        out_specs=pl.BlockSpec((None, mq, cp4), lambda i: (i, 0, 0)),
        compiler_params=pltpu.CompilerParams(
            dimension_semantics=("parallel",),
            vmem_limit_bytes=48 * 1024 * 1024),
        cost_estimate=pl.CostEstimate(flops=flops, transcendentals=0,
                                      bytes_accessed=bytes_accessed),
    )(x_flat, w_views, bias)


def _conv2_pallas(x_flat, w2, bias, mask, *, mp, wp, cnt, use_in):
    n, mp_ext, ck2 = x_flat.shape
    cp = w2.shape[-1]
    kern = functools.partial(_conv2_in_lrelu_kernel, mp=mp, wp=wp,
                             inv_cnt=1.0 / float(cnt), use_in=use_in,
                             eps=1e-5, slope=0.2)
    flops = 2 * n * mp * 9 * ck2 * cp
    bytes_accessed = (x_flat.size * 4 + w2.size * 2 + bias.size * 4
                      + mask.size * 4 + n * mp * cp * 4)
    return pl.pallas_call(
        kern,
        out_shape=jax.ShapeDtypeStruct((n, mp, cp), jnp.float32),
        grid=(n,),
        in_specs=[
            pl.BlockSpec((None, mp_ext, ck2), lambda i: (i, 0, 0)),
            pl.BlockSpec((9, ck2, cp), lambda i: (0, 0, 0)),
            pl.BlockSpec((1, cp), lambda i: (0, 0)),
            pl.BlockSpec((mp, 1), lambda i: (0, 0)),
        ],
        out_specs=pl.BlockSpec((None, mp, cp), lambda i: (i, 0, 0)),
        compiler_params=pltpu.CompilerParams(
            dimension_semantics=("parallel",),
            vmem_limit_bytes=48 * 1024 * 1024),
        cost_estimate=pl.CostEstimate(flops=flops, transcendentals=0,
                                      bytes_accessed=bytes_accessed),
    )(x_flat, w2, bias, mask)


# ---------------------------------------------------------------------------
# ExpandingBlock forward
# ---------------------------------------------------------------------------
def expanding_block_forward(params, x, skip_x, use_in=True):
    """x: (N, Cin, H, W), skip_x: (N, Cin//2, Hs, Ws)  (NCHW, like PyTorch)."""
    wt, bt = params["tconv_w"], params["tconv_b"]
    w2, b2 = params["conv2_w"], params["conv2_b"]
    n, cin, h, w = x.shape
    cout = cin // 2
    ho, wo = 2 * h, 2 * w
    cp = _rup(cout, 128)        # lane-dense output-channel padding
    cin_p = _rup(cin, 8)        # K-dim padding for the tconv matmul
    ck = _rup(cout, 8)          # K-dim padding per concat half for conv2

    # ---------------- tconv: 4-phase sub-pixel decomposition ----------------
    hq, wq = h + 1, w + 1
    mq = hq * wq
    mq_ext = mq + wq + 1
    x_nhwc = jnp.transpose(x, (0, 2, 3, 1))
    x_p = jnp.pad(x_nhwc, ((0, 0), (0, 1), (0, 1), (0, cin_p - cin)))
    x_flat = jnp.pad(x_p.reshape(n, mq, cin_p), ((0, 0), (0, mq_ext - mq), (0, 0)))

    # view v=(di,dj) reads x[i+di, j+dj]; output phase p=(ph,pw) -> out[2i+ph, 2j+pw];
    # tap map derived from the ConvTranspose2d scatter formula oh = 2*ih - 1 + kh.
    tap_map = [(0, 0, 1, 1), (0, 1, 1, 2), (0, 2, 2, 1), (0, 3, 2, 2),
               (1, 1, 1, 0), (1, 3, 2, 0),
               (2, 2, 0, 1), (2, 3, 0, 2),
               (3, 3, 0, 0)]
    wv = jnp.zeros((4, cin_p, 4, cp), jnp.float32)
    for v, p, kh, kw in tap_map:
        wv = wv.at[v, :cin, p, :cout].set(wt[:, :, kh, kw])
    wv = wv.reshape(4, cin_p, 4 * cp).astype(jnp.bfloat16)
    bt_pad = jnp.zeros((4, cp), jnp.float32)
    bt_pad = bt_pad.at[:, :cout].set(jnp.broadcast_to(bt, (4, cout)))
    bt_pad = bt_pad.reshape(1, 4 * cp)

    t_out = _tconv_pallas(x_flat, wv, bt_pad, mq=mq, wq=wq)         # (N, mq, 4*cp)
    # pixel shuffle (depth-to-space) + un-pad + drop channel padding (XLA glue)
    t_out = t_out.reshape(n, hq, wq, 2, 2, cp)[:, :h, :w, :, :, :cout]
    t_nhwc = jnp.transpose(t_out, (0, 1, 3, 2, 4, 5)).reshape(n, ho, wo, cout)

    # ---------------- crop skip (pure slicing glue) ----------------
    skip_c = crop(skip_x, (n, cout, ho, wo))
    skip_nhwc = jnp.transpose(skip_c, (0, 2, 3, 1))

    # ------- conv2 + InstanceNorm + LeakyReLU (concat folded into lanes) -------
    hp, wp = ho + 2, wo + 2
    mp = hp * wp
    mp_ext = mp + 2 * wp + 2

    # pack [tconv channels (padded to ck) | skip channels (padded to ck)] in lanes
    cat = jnp.concatenate(
        [jnp.pad(t_nhwc, ((0, 0), (0, 0), (0, 0), (0, ck - cout))),
         jnp.pad(skip_nhwc, ((0, 0), (0, 0), (0, 0), (0, ck - cout)))], axis=-1)
    cat = jnp.pad(cat, ((0, 0), (1, 1), (1, 1), (0, 0)))
    cat_flat = jnp.pad(cat.reshape(n, mp, 2 * ck),
                       ((0, 0), (0, mp_ext - mp), (0, 0)))

    # conv2 weights (cout, 2*cout, 3, 3) -> (9, 2*ck, cp) bf16 matching lane layout
    wm = jnp.transpose(w2, (2, 3, 1, 0)).reshape(9, 2 * cout, cout)
    w2t = jnp.pad(wm[:, :cout], ((0, 0), (0, ck - cout), (0, cp - cout)))
    w2s = jnp.pad(wm[:, cout:], ((0, 0), (0, ck - cout), (0, cp - cout)))
    w2_cat = jnp.concatenate([w2t, w2s], axis=1).astype(jnp.bfloat16)
    b2_pad = jnp.zeros((1, cp), jnp.float32).at[0, :cout].set(b2)

    rows = jnp.arange(mp, dtype=jnp.int32)
    mask = ((rows // wp < ho) & (rows % wp < wo)).astype(jnp.float32).reshape(mp, 1)

    y = _conv2_pallas(cat_flat, w2_cat, b2_pad, mask,
                      mp=mp, wp=wp, cnt=ho * wo, use_in=use_in)      # (N, mp, cp)
    y = y.reshape(n, hp, wp, cp)[:, :ho, :wo, :cout]
    return jnp.transpose(y, (0, 3, 1, 2))                           # back to NCHW


# ---------------------------------------------------------------------------
# independent numpy reference (direct convolution loops) for verification
# ---------------------------------------------------------------------------
def _ref_forward(params, x, skip_x, use_in=True):
    wt = np.asarray(params["tconv_w"]); bt = np.asarray(params["tconv_b"])
    w2 = np.asarray(params["conv2_w"]); b2 = np.asarray(params["conv2_b"])
    x = np.asarray(x); skip_x = np.asarray(skip_x)
    n, cin, h, w = x.shape
    cout = cin // 2
    ho, wo = 2 * h, 2 * w
    # transposed conv (direct scatter definition)
    t = np.zeros((n, cout, ho, wo), np.float32)
    for bi in range(n):
        for co in range(cout):
            for ci in range(cin):
                for ih in range(h):
                    for iw in range(w):
                        for kh in range(3):
                            for kw in range(3):
                                oh = ih * 2 - 1 + kh
                                ow = iw * 2 - 1 + kw
                                if 0 <= oh < ho and 0 <= ow < wo:
                                    t[bi, co, oh, ow] += x[bi, ci, ih, iw] * wt[ci, co, kh, kw]
            t[bi, co] += bt[co]
    # crop + concat
    sh = skip_x.shape[2] // 2 - round(ho / 2)
    sw = skip_x.shape[3] // 2 - round(wo / 2)
    skip_c = skip_x[:, :, sh:sh + ho, sw:sw + wo]
    cat = np.concatenate([t, skip_c], axis=1)
    # conv2, padding 1
    catp = np.pad(cat, ((0, 0), (0, 0), (1, 1), (1, 1)))
    y = np.zeros((n, cout, ho, wo), np.float32)
    for bi in range(n):
        for co in range(cout):
            for ci in range(cin):
                for kh in range(3):
                    for kw in range(3):
                        y[bi, co] += catp[bi, ci, kh:kh + ho, kw:kw + wo] * w2[co, ci, kh, kw]
            y[bi, co] += b2[co]
    if use_in:
        mean = y.mean(axis=(2, 3), keepdims=True)
        var = y.var(axis=(2, 3), keepdims=True)
        y = (y - mean) / np.sqrt(var + 1e-5)
    return np.where(y >= 0, y, 0.2 * y)


if __name__ == "__main__":
    key = jax.random.PRNGKey(0)
    k1, k2, k3, k4, k5, k6 = jax.random.split(key, 6)

    N, Cin, H, W = 2, 4, 8, 8          # tconv output: (2, 2, 16, 16)
    Cout = Cin // 2
    x = jax.random.normal(k1, (N, Cin, H, W), jnp.float32)
    skip_x = jax.random.normal(k2, (N, Cout, 20, 20), jnp.float32)   # cropped to 16x16

    params = {
        "tconv_w": 0.1 * jax.random.normal(k3, (Cin, Cout, 3, 3), jnp.float32),
        "tconv_b": 0.1 * jax.random.normal(k4, (Cout,), jnp.float32),
        "conv2_w": 0.1 * jax.random.normal(k5, (Cout, Cin, 3, 3), jnp.float32),
        "conv2_b": 0.1 * jax.random.normal(k6, (Cout,), jnp.float32),
    }

    fwd = jax.jit(functools.partial(expanding_block_forward, use_in=True))
    out = jax.block_until_ready(fwd(params, x, skip_x))
    assert out.shape == (N, Cout, 2 * H, 2 * W)

    ref = _ref_forward(params, x, skip_x, use_in=True)
    np.testing.assert_allclose(np.asarray(out), ref, atol=5e-2, rtol=5e-2)

    print("KERNEL_OK")
</pallas_src>

<mosaic_0001>
module attributes {stable_mosaic.version = 11 : i64} {
  func.func @_tconv_subpixel_kernel(%arg0: i32, %arg1: memref<1x91x8xf32, #tpu.memory_space<vmem>>, %arg2: memref<4x8x512xbf16, #tpu.memory_space<vmem>>, %arg3: memref<1x512xf32, #tpu.memory_space<vmem>>, %arg4: memref<1x81x512xf32, #tpu.memory_space<vmem>>) attributes {dimension_semantics = [#tpu.dimension_semantics<parallel>], iteration_bounds = array<i64: 2>, scalar_prefetch = 0 : i64, scratch_operands = 0 : i64, tpu.core_type = #tpu.core_type<tc>, window_params = [{transform_indices = @transform_0, window_bounds = array<i64: 1, 91, 8>}, {pipeline_mode = #tpu.pipeline_mode<synchronous>, transform_indices = @transform_1, window_bounds = array<i64: 4, 8, 512>}, {pipeline_mode = #tpu.pipeline_mode<synchronous>, transform_indices = @transform_2, window_bounds = array<i64: 1, 512>}, {transform_indices = @transform_3, window_bounds = array<i64: 1, 81, 512>}]} {
    %c0 = arith.constant 0 : index
    %c0_0 = arith.constant 0 : index
    %c0_1 = arith.constant 0 : index
    %0 = vector.load %arg1[%c0, %c0_0, %c0_1] : memref<1x91x8xf32, #tpu.memory_space<vmem>>, vector<1x81x8xf32>
    %1 = vector.shape_cast %0 : vector<1x81x8xf32> to vector<81x8xf32>
    %2 = arith.truncf %1 : vector<81x8xf32> to vector<81x8xbf16>
    %c0_2 = arith.constant 0 : index
    %c0_3 = arith.constant 0 : index
    %c0_4 = arith.constant 0 : index
    %3 = vector.load %arg2[%c0_2, %c0_3, %c0_4] : memref<4x8x512xbf16, #tpu.memory_space<vmem>>, vector<1x8x512xbf16>
    %4 = vector.shape_cast %3 : vector<1x8x512xbf16> to vector<8x512xbf16>
    %cst = arith.constant dense<0.000000e+00> : vector<81x512xf32>
    %5 = tpu.matmul %2, %4, %cst {dimension_numbers = #tpu.dot_dimension_numbers<[1], [0], [0], [1], [0, 0, 1, 1], [], []>} : vector<81x8xbf16>, vector<8x512xbf16>, vector<81x512xf32> -> vector<81x512xf32>
    %c0_5 = arith.constant 0 : index
    %c1 = arith.constant 1 : index
    %c0_6 = arith.constant 0 : index
    %6 = vector.load %arg1[%c0_5, %c1, %c0_6] : memref<1x91x8xf32, #tpu.memory_space<vmem>>, vector<1x81x8xf32>
    %7 = vector.shape_cast %6 : vector<1x81x8xf32> to vector<81x8xf32>
    %8 = arith.truncf %7 : vector<81x8xf32> to vector<81x8xbf16>
    %c1_7 = arith.constant 1 : index
    %c0_8 = arith.constant 0 : index
    %c0_9 = arith.constant 0 : index
    %9 = vector.load %arg2[%c1_7, %c0_8, %c0_9] : memref<4x8x512xbf16, #tpu.memory_space<vmem>>, vector<1x8x512xbf16>
    %10 = vector.shape_cast %9 : vector<1x8x512xbf16> to vector<8x512xbf16>
    %cst_10 = arith.constant dense<0.000000e+00> : vector<81x512xf32>
    %11 = tpu.matmul %8, %10, %cst_10 {dimension_numbers = #tpu.dot_dimension_numbers<[1], [0], [0], [1], [0, 0, 1, 1], [], []>} : vector<81x8xbf16>, vector<8x512xbf16>, vector<81x512xf32> -> vector<81x512xf32>
    %12 = arith.addf %5, %11 : vector<81x512xf32>
    %c0_11 = arith.constant 0 : index
    %c9 = arith.constant 9 : index
    %c0_12 = arith.constant 0 : index
    %13 = vector.load %arg1[%c0_11, %c9, %c0_12] : memref<1x91x8xf32, #tpu.memory_space<vmem>>, vector<1x81x8xf32>
    %14 = vector.shape_cast %13 : vector<1x81x8xf32> to vector<81x8xf32>
    %15 = arith.truncf %14 : vector<81x8xf32> to vector<81x8xbf16>
    %c2 = arith.constant 2 : index
    %c0_13 = arith.constant 0 : index
    %c0_14 = arith.constant 0 : index
    %16 = vector.load %arg2[%c2, %c0_13, %c0_14] : memref<4x8x512xbf16, #tpu.memory_space<vmem>>, vector<1x8x512xbf16>
    %17 = vector.shape_cast %16 : vector<1x8x512xbf16> to vector<8x512xbf16>
    %cst_15 = arith.constant dense<0.000000e+00> : vector<81x512xf32>
    %18 = tpu.matmul %15, %17, %cst_15 {dimension_numbers = #tpu.dot_dimension_numbers<[1], [0], [0], [1], [0, 0, 1, 1], [], []>} : vector<81x8xbf16>, vector<8x512xbf16>, vector<81x512xf32> -> vector<81x512xf32>
    %19 = arith.addf %12, %18 : vector<81x512xf32>
    %c0_16 = arith.constant 0 : index
    %c10 = arith.constant 10 : index
    %c0_17 = arith.constant 0 : index
    %20 = vector.load %arg1[%c0_16, %c10, %c0_17] : memref<1x91x8xf32, #tpu.memory_space<vmem>>, vector<1x81x8xf32>
    %21 = vector.shape_cast %20 : vector<1x81x8xf32> to vector<81x8xf32>
    %22 = arith.truncf %21 : vector<81x8xf32> to vector<81x8xbf16>
    %c3 = arith.constant 3 : index
    %c0_18 = arith.constant 0 : index
    %c0_19 = arith.constant 0 : index
    %23 = vector.load %arg2[%c3, %c0_18, %c0_19] : memref<4x8x512xbf16, #tpu.memory_space<vmem>>, vector<1x8x512xbf16>
    %24 = vector.shape_cast %23 : vector<1x8x512xbf16> to vector<8x512xbf16>
    %cst_20 = arith.constant dense<0.000000e+00> : vector<81x512xf32>
    %25 = tpu.matmul %22, %24, %cst_20 {dimension_numbers = #tpu.dot_dimension_numbers<[1], [0], [0], [1], [0, 0, 1, 1], [], []>} : vector<81x8xbf16>, vector<8x512xbf16>, vector<81x512xf32> -> vector<81x512xf32>
    %26 = arith.addf %19, %25 : vector<81x512xf32>
    %c0_21 = arith.constant 0 : index
    %c0_22 = arith.constant 0 : index
    %27 = vector.load %arg3[%c0_21, %c0_22] : memref<1x512xf32, #tpu.memory_space<vmem>>, vector<1x512xf32>
    %28 = vector.broadcast %27 : vector<1x512xf32> to vector<81x512xf32>
    %29 = arith.addf %26, %28 : vector<81x512xf32>
    %c0_23 = arith.constant 0 : index
    %c0_24 = arith.constant 0 : index
    %c0_25 = arith.constant 0 : index
    %30 = vector.load %arg4[%c0_23, %c0_24, %c0_25] : memref<1x81x512xf32, #tpu.memory_space<vmem>>, vector<1x81x512xf32>
    %31 = vector.shape_cast %30 : vector<1x81x512xf32> to vector<81x512xf32>
    %32 = vector.shape_cast %29 : vector<81x512xf32> to vector<1x81x512xf32>
    tpu.vector_store %arg4[%c0_23, %c0_24, %c0_25], %32 {strides = array<i32>} : memref<1x81x512xf32, #tpu.memory_space<vmem>>, vector<1x81x512xf32>,
    return
  }
  func.func @transform_0(%arg0: i32) -> (i32, i32, i32) {
    %c0_i32 = arith.constant 0 : i32
    %c0_i32_0 = arith.constant 0 : i32
    %c0_i32_1 = arith.constant 0 : i32
    return %arg0, %c0_i32, %c0_i32_0 : i32, i32, i32
  }
  func.func @transform_1(%arg0: i32) -> (i32, i32, i32) {
    %c0_i32 = arith.constant 0 : i32
    %c0_i32_0 = arith.constant 0 : i32
    %c0_i32_1 = arith.constant 0 : i32
    %c0_i32_2 = arith.constant 0 : i32
    return %c0_i32, %c0_i32_0, %c0_i32_1 : i32, i32, i32
  }
  func.func @transform_2(%arg0: i32) -> (i32, i32) {
    %c0_i32 = arith.constant 0 : i32
    %c0_i32_0 = arith.constant 0 : i32
    %c0_i32_1 = arith.constant 0 : i32
    return %c0_i32, %c0_i32_0 : i32, i32
  }
  func.func @transform_3(%arg0: i32) -> (i32, i32, i32) {
    %c0_i32 = arith.constant 0 : i32
    %c0_i32_0 = arith.constant 0 : i32
    %c0_i32_1 = arith.constant 0 : i32
    return %arg0, %c0_i32, %c0_i32_0 : i32, i32, i32
  }
}

module attributes {stable_mosaic.version = 11 : i64} {
  func.func @_conv2_in_lrelu_kernel(%arg0: i32, %arg1: memref<1x362x16xf32, #tpu.memory_space<vmem>>, %arg2: memref<9x16x128xbf16, #tpu.memory_space<vmem>>, %arg3: memref<1x128xf32, #tpu.memory_space<vmem>>, %arg4: memref<324x1xf32, #tpu.memory_space<vmem>>, %arg5: memref<1x324x128xf32, #tpu.memory_space<vmem>>) attributes {dimension_semantics = [#tpu.dimension_semantics<parallel>], iteration_bounds = array<i64: 2>, scalar_prefetch = 0 : i64, scratch_operands = 0 : i64, tpu.core_type = #tpu.core_type<tc>, window_params = [{transform_indices = @transform_0, window_bounds = array<i64: 1, 362, 16>}, {pipeline_mode = #tpu.pipeline_mode<synchronous>, transform_indices = @transform_1, window_bounds = array<i64: 9, 16, 128>}, {pipeline_mode = #tpu.pipeline_mode<synchronous>, transform_indices = @transform_2, window_bounds = array<i64: 1, 128>}, {pipeline_mode = #tpu.pipeline_mode<synchronous>, transform_indices = @transform_3, window_bounds = array<i64: 324, 1>}, {transform_indices = @transform_4, window_bounds = array<i64: 1, 324, 128>}]} {
    %c0 = arith.constant 0 : index
    %c0_0 = arith.constant 0 : index
    %c0_1 = arith.constant 0 : index
    %0 = vector.load %arg1[%c0, %c0_0, %c0_1] : memref<1x362x16xf32, #tpu.memory_space<vmem>>, vector<1x324x16xf32>
    %1 = vector.shape_cast %0 : vector<1x324x16xf32> to vector<324x16xf32>
    %2 = arith.truncf %1 : vector<324x16xf32> to vector<324x16xbf16>
    %c0_2 = arith.constant 0 : index
    %c0_3 = arith.constant 0 : index
    %c0_4 = arith.constant 0 : index
    %3 = vector.load %arg2[%c0_2, %c0_3, %c0_4] : memref<9x16x128xbf16, #tpu.memory_space<vmem>>, vector<1x16x128xbf16>
    %4 = vector.shape_cast %3 : vector<1x16x128xbf16> to vector<16x128xbf16>
    %cst = arith.constant dense<0.000000e+00> : vector<324x128xf32>
    %5 = tpu.matmul %2, %4, %cst {dimension_numbers = #tpu.dot_dimension_numbers<[1], [0], [0], [1], [0, 0, 1, 1], [], []>} : vector<324x16xbf16>, vector<16x128xbf16>, vector<324x128xf32> -> vector<324x128xf32>
    %c0_5 = arith.constant 0 : index
    %c1 = arith.constant 1 : index
    %c0_6 = arith.constant 0 : index
    %6 = vector.load %arg1[%c0_5, %c1, %c0_6] : memref<1x362x16xf32, #tpu.memory_space<vmem>>, vector<1x324x16xf32>
    %7 = vector.shape_cast %6 : vector<1x324x16xf32> to vector<324x16xf32>
    %8 = arith.truncf %7 : vector<324x16xf32> to vector<324x16xbf16>
    %c1_7 = arith.constant 1 : index
    %c0_8 = arith.constant 0 : index
    %c0_9 = arith.constant 0 : index
    %9 = vector.load %arg2[%c1_7, %c0_8, %c0_9] : memref<9x16x128xbf16, #tpu.memory_space<vmem>>, vector<1x16x128xbf16>
    %10 = vector.shape_cast %9 : vector<1x16x128xbf16> to vector<16x128xbf16>
    %cst_10 = arith.constant dense<0.000000e+00> : vector<324x128xf32>
    %11 = tpu.matmul %8, %10, %cst_10 {dimension_numbers = #tpu.dot_dimension_numbers<[1], [0], [0], [1], [0, 0, 1, 1], [], []>} : vector<324x16xbf16>, vector<16x128xbf16>, vector<324x128xf32> -> vector<324x128xf32>
    %12 = arith.addf %5, %11 : vector<324x128xf32>
    %c0_11 = arith.constant 0 : index
    %c2 = arith.constant 2 : index
    %c0_12 = arith.constant 0 : index
    %13 = vector.load %arg1[%c0_11, %c2, %c0_12] : memref<1x362x16xf32, #tpu.memory_space<vmem>>, vector<1x324x16xf32>
    %14 = vector.shape_cast %13 : vector<1x324x16xf32> to vector<324x16xf32>
    %15 = arith.truncf %14 : vector<324x16xf32> to vector<324x16xbf16>
    %c2_13 = arith.constant 2 : index
    %c0_14 = arith.constant 0 : index
    %c0_15 = arith.constant 0 : index
    %16 = vector.load %arg2[%c2_13, %c0_14, %c0_15] : memref<9x16x128xbf16, #tpu.memory_space<vmem>>, vector<1x16x128xbf16>
    %17 = vector.shape_cast %16 : vector<1x16x128xbf16> to vector<16x128xbf16>
    %cst_16 = arith.constant dense<0.000000e+00> : vector<324x128xf32>
    %18 = tpu.matmul %15, %17, %cst_16 {dimension_numbers = #tpu.dot_dimension_numbers<[1], [0], [0], [1], [0, 0, 1, 1], [], []>} : vector<324x16xbf16>, vector<16x128xbf16>, vector<324x128xf32> -> vector<324x128xf32>
    %19 = arith.addf %12, %18 : vector<324x128xf32>
    %c0_17 = arith.constant 0 : index
    %c18 = arith.constant 18 : index
    %c0_18 = arith.constant 0 : index
    %20 = vector.load %arg1[%c0_17, %c18, %c0_18] : memref<1x362x16xf32, #tpu.memory_space<vmem>>, vector<1x324x16xf32>
    %21 = vector.shape_cast %20 : vector<1x324x16xf32> to vector<324x16xf32>
    %22 = arith.truncf %21 : vector<324x16xf32> to vector<324x16xbf16>
    %c3 = arith.constant 3 : index
    %c0_19 = arith.constant 0 : index
    %c0_20 = arith.constant 0 : index
    %23 = vector.load %arg2[%c3, %c0_19, %c0_20] : memref<9x16x128xbf16, #tpu.memory_space<vmem>>, vector<1x16x128xbf16>
    %24 = vector.shape_cast %23 : vector<1x16x128xbf16> to vector<16x128xbf16>
    %cst_21 = arith.constant dense<0.000000e+00> : vector<324x128xf32>
    %25 = tpu.matmul %22, %24, %cst_21 {dimension_numbers = #tpu.dot_dimension_numbers<[1], [0], [0], [1], [0, 0, 1, 1], [], []>} : vector<324x16xbf16>, vector<16x128xbf16>, vector<324x128xf32> -> vector<324x128xf32>
    %26 = arith.addf %19, %25 : vector<324x128xf32>
    %c0_22 = arith.constant 0 : index
    %c19 = arith.constant 19 : index
    %c0_23 = arith.constant 0 : index
    %27 = vector.load %arg1[%c0_22, %c19, %c0_23] : memref<1x362x16xf32, #tpu.memory_space<vmem>>, vector<1x324x16xf32>
    %28 = vector.shape_cast %27 : vector<1x324x16xf32> to vector<324x16xf32>
    %29 = arith.truncf %28 : vector<324x16xf32> to vector<324x16xbf16>
    %c4 = arith.constant 4 : index
    %c0_24 = arith.constant 0 : index
    %c0_25 = arith.constant 0 : index
    %30 = vector.load %arg2[%c4, %c0_24, %c0_25] : memref<9x16x128xbf16, #tpu.memory_space<vmem>>, vector<1x16x128xbf16>
    %31 = vector.shape_cast %30 : vector<1x16x128xbf16> to vector<16x128xbf16>
    %cst_26 = arith.constant dense<0.000000e+00> : vector<324x128xf32>
    %32 = tpu.matmul %29, %31, %cst_26 {dimension_numbers = #tpu.dot_dimension_numbers<[1], [0], [0], [1], [0, 0, 1, 1], [], []>} : vector<324x16xbf16>, vector<16x128xbf16>, vector<324x128xf32> -> vector<324x128xf32>
    %33 = arith.addf %26, %32 : vector<324x128xf32>
    %c0_27 = arith.constant 0 : index
    %c20 = arith.constant 20 : index
    %c0_28 = arith.constant 0 : index
    %34 = vector.load %arg1[%c0_27, %c20, %c0_28] : memref<1x362x16xf32, #tpu.memory_space<vmem>>, vector<1x324x16xf32>
    %35 = vector.shape_cast %34 : vector<1x324x16xf32> to vector<324x16xf32>
    %36 = arith.truncf %35 : vector<324x16xf32> to vector<324x16xbf16>
    %c5 = arith.constant 5 : index
    %c0_29 = arith.constant 0 : index
    %c0_30 = arith.constant 0 : index
    %37 = vector.load %arg2[%c5, %c0_29, %c0_30] : memref<9x16x128xbf16, #tpu.memory_space<vmem>>, vector<1x16x128xbf16>
    %38 = vector.shape_cast %37 : vector<1x16x128xbf16> to vector<16x128xbf16>
    %cst_31 = arith.constant dense<0.000000e+00> : vector<324x128xf32>
    %39 = tpu.matmul %36, %38, %cst_31 {dimension_numbers = #tpu.dot_dimension_numbers<[1], [0], [0], [1], [0, 0, 1, 1], [], []>} : vector<324x16xbf16>, vector<16x128xbf16>, vector<324x128xf32> -> vector<324x128xf32>
    %40 = arith.addf %33, %39 : vector<324x128xf32>
    %c0_32 = arith.constant 0 : index
    %c36 = arith.constant 36 : index
    %c0_33 = arith.constant 0 : index
    %41 = vector.load %arg1[%c0_32, %c36, %c0_33] : memref<1x362x16xf32, #tpu.memory_space<vmem>>, vector<1x324x16xf32>
    %42 = vector.shape_cast %41 : vector<1x324x16xf32> to vector<324x16xf32>
    %43 = arith.truncf %42 : vector<324x16xf32> to vector<324x16xbf16>
    %c6 = arith.constant 6 : index
    %c0_34 = arith.constant 0 : index
    %c0_35 = arith.constant 0 : index
    %44 = vector.load %arg2[%c6, %c0_34, %c0_35] : memref<9x16x128xbf16, #tpu.memory_space<vmem>>, vector<1x16x128xbf16>
    %45 = vector.shape_cast %44 : vector<1x16x128xbf16> to vector<16x128xbf16>
    %cst_36 = arith.constant dense<0.000000e+00> : vector<324x128xf32>
    %46 = tpu.matmul %43, %45, %cst_36 {dimension_numbers = #tpu.dot_dimension_numbers<[1], [0], [0], [1], [0, 0, 1, 1], [], []>} : vector<324x16xbf16>, vector<16x128xbf16>, vector<324x128xf32> -> vector<324x128xf32>
    %47 = arith.addf %40, %46 : vector<324x128xf32>
    %c0_37 = arith.constant 0 : index
    %c37 = arith.constant 37 : index
    %c0_38 = arith.constant 0 : index
    %48 = vector.load %arg1[%c0_37, %c37, %c0_38] : memref<1x362x16xf32, #tpu.memory_space<vmem>>, vector<1x324x16xf32>
    %49 = vector.shape_cast %48 : vector<1x324x16xf32> to vector<324x16xf32>
    %50 = arith.truncf %49 : vector<324x16xf32> to vector<324x16xbf16>
    %c7 = arith.constant 7 : index
    %c0_39 = arith.constant 0 : index
    %c0_40 = arith.constant 0 : index
    %51 = vector.load %arg2[%c7, %c0_39, %c0_40] : memref<9x16x128xbf16, #tpu.memory_space<vmem>>, vector<1x16x128xbf16>
    %52 = vector.shape_cast %51 : vector<1x16x128xbf16> to vector<16x128xbf16>
    %cst_41 = arith.constant dense<0.000000e+00> : vector<324x128xf32>
    %53 = tpu.matmul %50, %52, %cst_41 {dimension_numbers = #tpu.dot_dimension_numbers<[1], [0], [0], [1], [0, 0, 1, 1], [], []>} : vector<324x16xbf16>, vector<16x128xbf16>, vector<324x128xf32> -> vector<324x128xf32>
    %54 = arith.addf %47, %53 : vector<324x128xf32>
    %c0_42 = arith.constant 0 : index
    %c38 = arith.constant 38 : index
    %c0_43 = arith.constant 0 : index
    %55 = vector.load %arg1[%c0_42, %c38, %c0_43] : memref<1x362x16xf32, #tpu.memory_space<vmem>>, vector<1x324x16xf32>
    %56 = vector.shape_cast %55 : vector<1x324x16xf32> to vector<324x16xf32>
    %57 = arith.truncf %56 : vector<324x16xf32> to vector<324x16xbf16>
    %c8 = arith.constant 8 : index
    %c0_44 = arith.constant 0 : index
    %c0_45 = arith.constant 0 : index
    %58 = vector.load %arg2[%c8, %c0_44, %c0_45] : memref<9x16x128xbf16, #tpu.memory_space<vmem>>, vector<1x16x128xbf16>
    %59 = vector.shape_cast %58 : vector<1x16x128xbf16> to vector<16x128xbf16>
    %cst_46 = arith.constant dense<0.000000e+00> : vector<324x128xf32>
    %60 = tpu.matmul %57, %59, %cst_46 {dimension_numbers = #tpu.dot_dimension_numbers<[1], [0], [0], [1], [0, 0, 1, 1], [], []>} : vector<324x16xbf16>, vector<16x128xbf16>, vector<324x128xf32> -> vector<324x128xf32>
    %61 = arith.addf %54, %60 : vector<324x128xf32>
    %c0_47 = arith.constant 0 : index
    %c0_48 = arith.constant 0 : index
    %62 = vector.load %arg3[%c0_47, %c0_48] : memref<1x128xf32, #tpu.memory_space<vmem>>, vector<1x128xf32>
    %63 = vector.broadcast %62 : vector<1x128xf32> to vector<324x128xf32>
    %64 = arith.addf %61, %63 : vector<324x128xf32>
    %c0_49 = arith.constant 0 : index
    %c0_50 = arith.constant 0 : index
    %65 = vector.load %arg4[%c0_49, %c0_50] : memref<324x1xf32, #tpu.memory_space<vmem>>, vector<324x1xf32>
    %66 = vector.broadcast %65 : vector<324x1xf32> to vector<324x128xf32>
    %67 = arith.mulf %64, %66 : vector<324x128xf32>
    %cst_51 = arith.constant dense<0.000000e+00> : vector<128xf32>
    %68 = vector.multi_reduction <add>, %67, %cst_51 [0] : vector<324x128xf32> to vector<128xf32>
    %69 = vector.shape_cast %68 : vector<128xf32> to vector<1x128xf32>
    %cst_52 = arith.constant 3.906250e-03 : f32
    %70 = vector.broadcast %cst_52 : f32 to vector<1x128xf32>
    %71 = arith.mulf %69, %70 : vector<1x128xf32>
    %72 = vector.broadcast %71 : vector<1x128xf32> to vector<324x128xf32>
    %73 = arith.subf %64, %72 : vector<324x128xf32>
    %74 = arith.mulf %73, %73 : vector<324x128xf32>
    %75 = vector.broadcast %65 : vector<324x1xf32> to vector<324x128xf32>
    %76 = arith.mulf %74, %75 : vector<324x128xf32>
    %cst_53 = arith.constant dense<0.000000e+00> : vector<128xf32>
    %77 = vector.multi_reduction <add>, %76, %cst_53 [0] : vector<324x128xf32> to vector<128xf32>
    %78 = vector.shape_cast %77 : vector<128xf32> to vector<1x128xf32>
    %cst_54 = arith.constant 3.906250e-03 : f32
    %79 = vector.broadcast %cst_54 : f32 to vector<1x128xf32>
    %80 = arith.mulf %78, %79 : vector<1x128xf32>
    %cst_55 = arith.constant 9.99999974E-6 : f32
    %81 = vector.broadcast %cst_55 : f32 to vector<1x128xf32>
    %82 = arith.addf %80, %81 : vector<1x128xf32>
    %83 = math.rsqrt %82 : vector<1x128xf32>
    %84 = vector.broadcast %83 : vector<1x128xf32> to vector<324x128xf32>
    %85 = arith.mulf %73, %84 : vector<324x128xf32>
    %cst_56 = arith.constant 0.000000e+00 : f32
    %86 = vector.broadcast %cst_56 : f32 to vector<324x128xf32>
    %87 = arith.cmpf oge, %85, %86 : vector<324x128xf32>
    %cst_57 = arith.constant 2.000000e-01 : f32
    %88 = vector.broadcast %cst_57 : f32 to vector<324x128xf32>
    %89 = arith.mulf %88, %85 : vector<324x128xf32>
    %90 = arith.select %87, %85, %89 : vector<324x128xi1>, vector<324x128xf32>
    %c0_58 = arith.constant 0 : index
    %c0_59 = arith.constant 0 : index
    %c0_60 = arith.constant 0 : index
    %91 = vector.load %arg5[%c0_58, %c0_59, %c0_60] : memref<1x324x128xf32, #tpu.memory_space<vmem>>, vector<1x324x128xf32>
    %92 = vector.shape_cast %91 : vector<1x324x128xf32> to vector<324x128xf32>
    %93 = vector.shape_cast %90 : vector<324x128xf32> to vector<1x324x128xf32>
    tpu.vector_store %arg5[%c0_58, %c0_59, %c0_60], %93 {strides = array<i32>} : memref<1x324x128xf32, #tpu.memory_space<vmem>>, vector<1x324x128xf32>,
    return
  }
  func.func @transform_0(%arg0: i32) -> (i32, i32, i32) {
    %c0_i32 = arith.constant 0 : i32
    %c0_i32_0 = arith.constant 0 : i32
    %c0_i32_1 = arith.constant 0 : i32
    return %arg0, %c0_i32, %c0_i32_0 : i32, i32, i32
  }
  func.func @transform_1(%arg0: i32) -> (i32, i32, i32) {
    %c0_i32 = arith.constant 0 : i32
    %c0_i32_0 = arith.constant 0 : i32
    %c0_i32_1 = arith.constant 0 : i32
    %c0_i32_2 = arith.constant 0 : i32
    return %c0_i32, %c0_i32_0, %c0_i32_1 : i32, i32, i32
  }
  func.func @transform_2(%arg0: i32) -> (i32, i32) {
    %c0_i32 = arith.constant 0 : i32
    %c0_i32_0 = arith.constant 0 : i32
    %c0_i32_1 = arith.constant 0 : i32
    return %c0_i32, %c0_i32_0 : i32, i32
  }
  func.func @transform_3(%arg0: i32) -> (i32, i32) {
    %c0_i32 = arith.constant 0 : i32
    %c0_i32_0 = arith.constant 0 : i32
    %c0_i32_1 = arith.constant 0 : i32
    return %c0_i32, %c0_i32_0 : i32, i32
  }
  func.func @transform_4(%arg0: i32) -> (i32, i32, i32) {
    %c0_i32 = arith.constant 0 : i32
    %c0_i32_0 = arith.constant 0 : i32
    %c0_i32_1 = arith.constant 0 : i32
    return %arg0, %c0_i32, %c0_i32_0 : i32, i32, i32
  }
}

</mosaic_0001>

<bundles_post_ra>
// kernel: expanding_block_forward.2
= control target key start
LH: loop header
LB: loop body
LE: loop exit
PB: predicated region body
PF: predicated region fallthrough
CT: control target
= control target key end

     0   :  { %s1411_s12 = smov 0   ;;  %s2138_s0 = inlined_call_operand.vmem [shape: f32[2,91,8], index: 0, kind: input, shape index: {}]   ;;  %s2139_s1 = inlined_call_operand.vmem [shape: bf16[4,8,512], index: 1, kind: input, shape index: {}]   ;;  %s2140_s2 = inlined_call_operand.vmem [shape: f32[1,512], index: 2, kind: input, shape index: {}]   ;;  %s2141_s3 = inlined_call_operand.vmem [shape: f32[2,81,512], index: 3, kind: output, shape index: {}]  }
   0x1 LB: > { %s1262_s13 = sadd.s32 4294967295, %s1389_s12   ;;  %p1266_p0 = scmp.ge.s32.totalorder %s1389_s12, 1  ;;  %s1389_s12 = sphi %s1411_s12, %s13_s12  }
   0x2   : > { %p137_p1 = scmp.lt.s32.totalorder %s1389_s12, 3 }
   0x4   : > { %p138_p2 = pnand %p1266_p0, %p137_p1 }
   0x6   : > { %141 = sbr.rel (%p138_p2) target bundleno = 531 (0x213), region = 32 }
   0xb   : > { %v1269_v0 = vld [vmem:[%s2139_s1 + $0x10] sm:$0xff]  ;;  %vm240_vm0 = vcmask 1043456   ;;  %v1270_v1 = vld [vmem:[%s2139_s1 + $0x18] sm:$0xff]  ;;  %p161_p3 = scmp.lt.s32.totalorder %s1262_s13, 1  ;;  %v190_v2 = vld [vmem:[%s2139_s1 + $0x8] sm:$0xff]  ;;  %vm221_vm1 = vcmask 64512  }
   0xc   : > { %v213_v3 = vunpack.c.l.b16 %v1269_v0  ;;  %v214_v4 = vunpack.c.h.b16 %v1269_v0  ;;  %v215_v5 = vunpack.c.l.b16 %v1270_v1  ;;  %v216_v6 = vunpack.c.h.b16 %v1270_v1  ;;  %v189_v7 = vld [vmem:[%s2139_s1] sm:$0xff]  ;;  %v1320_v43 = vld [vmem:[%s2139_s1 + $0x28] sm:$0xff] }
   0xd   : > { %s2217_s13 = smov (!%p161_p3, %s1262_s13), 1  ;;  %v409_v8 = vunpack.c.l.b16 %v190_v2  ;;  %v410_v9 = vunpack.c.h.b16 %v190_v2  ;;  %v407_v10 = vunpack.c.l.b16 %v189_v7  ;;  %v408_v11 = vunpack.c.h.b16 %v189_v7  ;;  %v1319_v44 = vld [vmem:[%s2139_s1 + $0x20] sm:$0xff] }
   0xe   : > { %v217_v12 = vpack.c.b16 %v213_v3, %v213_v3  ;;  %v218_v13 = vpack.c.b16 %v214_v4, %v214_v4  ;;  %v219_v14 = vpack.c.b16 %v215_v5, %v215_v5  ;;  %v220_v15 = vpack.c.b16 %v216_v6, %v216_v6  ;;  %s1373_s22 = smul.u32 96, %s2217_s13 }
   0xf   : > { %v413_v16 = vpack.c.b16 %v409_v8, %v409_v8  ;;  %v414_v17 = vpack.c.b16 %v410_v9, %v410_v9  ;;  %v411_v18 = vpack.c.b16 %v407_v10, %v407_v10  ;;  %v412_v19 = vpack.c.b16 %v408_v11, %v408_v11  ;;  %s1374_s9 = smul.u32 352, %s2217_s13 }
  0x10   : > { %v242_v20 = vsel %vm240_vm0, %v217_v12, 0  ;;  %v245_v21 = vsel %vm240_vm0, %v218_v13, 0  ;;  %v248_v22 = vsel %vm240_vm0, %v219_v14, 0  ;;  %v251_v23 = vsel %vm240_vm0, %v220_v15, 0  ;;  %s1441_s25 = scalar_lea.vmem %s2138_s0, %s1373_s22 }
  0x11   : > { %260 = vmatpush.bf16.msra.mxu0 %v242_v20  ;;  %298 = vmatpush.bf16.msra.mxu1 %v245_v21  ;;  %v440_v24 = vsel %vm240_vm0, %v413_v16, 0  ;;  %v443_v25 = vsel %vm240_vm0, %v414_v17, 0  ;;  %v434_v26 = vsel %vm240_vm0, %v411_v18, 0  ;;  %v437_v27 = vsel %vm240_vm0, %v412_v19, 0  ;;  %v191_v28 = vld [vmem:[%s1441_s25 + $0x1] sm:$0xff]  ;;  %v1449_v29 = vld [vmem:[%s1441_s25 + $0x9] sm:$0xff]  ;;  %s1999_s14 = scalar_lea.vmem %s2141_s3, %s1374_s9 }
  0x12   : > { %336 = vmatpush.bf16.msra.mxu2 %v248_v22  ;;  %374 = vmatpush.bf16.msra.mxu3 %v251_v23  ;;  %v202_v30 = vpack.c.bf16 %v1449_v29, %v191_v28  ;;  %v1457_v31 = vld [vmem:[%s1441_s25 + $0x11] sm:$0xff]  ;;  %v1460_v32 = vld [vmem:[%s1441_s25 + $0x19] sm:$0xff]  ;;  %v1469_v34 = vld [vmem:[%s1441_s25 + $0x21] sm:$0xff]  ;;  %v621_v45 = vunpack.c.l.b16 %v1320_v43  ;;  %v622_v46 = vunpack.c.h.b16 %v1320_v43  ;;  %v619_v47 = vunpack.c.l.b16 %v1319_v44 }
  0x13   : > { %v203_v33 = vpack.c.bf16 %v1460_v32, %v1457_v31  ;;  %v1472_v35 = vld [vmem:[%s1441_s25 + $0x29] sm:$0xff]  ;;  %v1481_v37 = vld [vmem:[%s1441_s25 + $0x31] sm:$0xff]  ;;  %v1484_v38 = vld [vmem:[%s1441_s25 + $0x39] sm:$0xff]  ;;  %v620_v48 = vunpack.c.h.b16 %v1319_v44 }
  0x14   : > { %1271 = vmatmul.msk.bf16.vlgmr.msra.gmra.mxu0 %vm221_vm1, %v202_v30  ;;  %1277 = vmatmul.msk.bf16.vlgmr.msra.gmra.mxu1 %vm221_vm1, %v202_v30  ;;  %v204_v36 = vpack.c.bf16 %v1472_v35, %v1469_v34  ;;  %v205_v39 = vpack.c.bf16 %v1484_v38, %v1481_v37  ;;  %v1493_v40 = vld [vmem:[%s1441_s25 + $0x41] sm:$0xff]  ;;  %v1496_v41 = vld [vmem:[%s1441_s25 + $0x49] sm:$0xff]  ;;  %v625_v49 = vpack.c.b16 %v621_v45, %v621_v45  ;;  %v201_v57 = vld [vmem:[%s1441_s25 + $0x51] sm:$0x1] }
  0x15   : > { %452 = vmatpush.bf16.msrb.mxu0 %v434_v26  ;;  %490 = vmatpush.bf16.msrb.mxu1 %v437_v27  ;;  %v206_v42 = vpack.c.bf16 %v1496_v41, %v1493_v40  ;;  %v626_v50 = vpack.c.b16 %v622_v46, %v622_v46  ;;  %v623_v51 = vpack.c.b16 %v619_v47, %v619_v47  ;;  %v172_v59 = vld [vmem:[%s1441_s25] sm:$0xff]  ;;  %v173_v60 = vld [vmem:[%s1441_s25 + $0x8] sm:$0xff]  ;;  %v174_v62 = vld [vmem:[%s1441_s25 + $0x10] sm:$0xff] }
  0x16   : > { %528 = vmatpush.bf16.msrb.mxu2 %v440_v24  ;;  %566 = vmatpush.bf16.msrb.mxu3 %v443_v25  ;;  %v624_v52 = vpack.c.b16 %v620_v48, %v620_v48  ;;  %v652_v53 = vsel %vm240_vm0, %v625_v49, 0  ;;  %v207_v58 = vpack.c.bf16 %v201_v57, %v201_v57  ;;  %v183_v61 = vpack.c.bf16 %v173_v60, %v172_v59  ;;  %v175_v63 = vld [vmem:[%s1441_s25 + $0x18] sm:$0xff]  ;;  %v176_v1 = vld [vmem:[%s1441_s25 + $0x20] sm:$0xff]  ;;  %v177_v2 = vld [vmem:[%s1441_s25 + $0x28] sm:$0xff] }
  0x17   : > { %1283 = vmatmul.msk.bf16.vlgmr.msra.gmra.mxu2 %vm221_vm1, %v202_v30  ;;  %1289 = vmatmul.msk.bf16.vlgmr.msra.gmra.mxu3 %vm221_vm1, %v202_v30  ;;  %v655_v54 = vsel %vm240_vm0, %v626_v50, 0  ;;  %v646_v55 = vsel %vm240_vm0, %v623_v51, 0  ;;  %v184_v0 = vpack.c.bf16 %v175_v63, %v174_v62  ;;  %v185_v3 = vpack.c.bf16 %v177_v2, %v176_v1  ;;  %v178_v10 = vld [vmem:[%s1441_s25 + $0x30] sm:$0xff]  ;;  %v179_v11 = vld [vmem:[%s1441_s25 + $0x38] sm:$0xff]  ;;  %v180_v21 = vld [vmem:[%s1441_s25 + $0x40] sm:$0xff] }
  0x18   : > { %v649_v56 = vsel %vm240_vm0, %v624_v52, 0  ;;  %v186_v14 = vpack.c.bf16 %v179_v11, %v178_v10  ;;  %v181_v22 = vld [vmem:[%s1441_s25 + $0x48] sm:$0xff]  ;;  %v1346_v28 = vld [vmem:[%s2139_s1 + $0x38] sm:$0xff]  ;;  %v1345_v46 = vld [vmem:[%s2139_s1 + $0x30] sm:$0xff] }
  0x19   : > { %664 = vmatpush.bf16.msra.mxu0 %v646_v55  ;;  %702 = vmatpush.bf16.msra.mxu1 %v649_v56  ;;  %v187_v25 = vpack.c.bf16 %v181_v22, %v180_v21  ;;  %v877_v30 = vunpack.c.l.b16 %v1346_v28  ;;  %v875_v49 = vunpack.c.l.b16 %v1345_v46  ;;  %v876_v50 = vunpack.c.h.b16 %v1345_v46 }
  0x1a   : > { %740 = vmatpush.bf16.msra.mxu2 %v652_v53  ;;  %778 = vmatpush.bf16.msra.mxu3 %v655_v54  ;;  %v182_v53 = vld [vmem:[%s1441_s25 + $0x50] sm:$0x1] }
  0x1b   : > { %v879_v51 = vpack.c.b16 %v875_v49, %v875_v49  ;;  %v880_v52 = vpack.c.b16 %v876_v50, %v876_v50 }
  0x1d   : > { %v902_v54 = vsel %vm240_vm0, %v879_v51, 0  ;;  %v905_v55 = vsel %vm240_vm0, %v880_v52, 0 }
  0x24   : > { %1272 = vmatmul.msk.bf16.gmra.mxu0 %vm221_vm1, %v203_v33  ;;  %1278 = vmatmul.msk.bf16.gmra.mxu1 %vm221_vm1, %v203_v33 }
  0x27   : > { %1284 = vmatmul.msk.bf16.gmra.mxu2 %vm221_vm1, %v203_v33  ;;  %1290 = vmatmul.msk.bf16.gmra.mxu3 %vm221_vm1, %v203_v33  ;;  %v878_v33 = vunpack.c.h.b16 %v1346_v28  ;;  %v609_v28 = vpack.c.bf16 %v1469_v34, %v1460_v32  ;;  %v610_v34 = vpack.c.bf16 %v1481_v37, %v1472_v35 }
  0x29   : > { %v882_v43 = vpack.c.b16 %v878_v33, %v878_v33 }
  0x2b   : > { %v911_v48 = vsel %vm240_vm0, %v882_v43, 0 }
  0x34   : > { %1273 = vmatmul.msk.bf16.gmra.mxu0 %vm221_vm1, %v204_v36  ;;  %1279 = vmatmul.msk.bf16.gmra.mxu1 %vm221_vm1, %v204_v36 }
  0x37   : > { %1285 = vmatmul.msk.bf16.gmra.mxu2 %vm221_vm1, %v204_v36  ;;  %1291 = vmatmul.msk.bf16.gmra.mxu3 %vm221_vm1, %v204_v36 }
  0x44   : > { %1274 = vmatmul.msk.bf16.gmra.mxu0 %vm221_vm1, %v205_v39  ;;  %1280 = vmatmul.msk.bf16.gmra.mxu1 %vm221_vm1, %v205_v39 }
  0x47   : > { %1286 = vmatmul.msk.bf16.gmra.mxu2 %vm221_vm1, %v205_v39  ;;  %1292 = vmatmul.msk.bf16.gmra.mxu3 %vm221_vm1, %v205_v39 }
  0x54   : > { %1275 = vmatmul.msk.bf16.gmra.mxu0 %vm221_vm1, %v206_v42  ;;  %1281 = vmatmul.msk.bf16.gmra.mxu1 %vm221_vm1, %v206_v42 }
  0x57   : > { %1287 = vmatmul.msk.bf16.gmra.mxu2 %vm221_vm1, %v206_v42  ;;  %1293 = vmatmul.msk.bf16.gmra.mxu3 %vm221_vm1, %v206_v42  ;;  %v881_v42 = vpack.c.b16 %v877_v30, %v877_v30 }
  0x59   : > { %v908_v47 = vsel %vm240_vm0, %v881_v42, 0 }
  0x64   : > { %1276 = vmatmul.msk.bf16.gmra.mxu0 %vm221_vm1, %v207_v58  ;;  %1282 = vmatmul.msk.bf16.gmra.mxu1 %vm221_vm1, %v207_v58 }
  0x67   : > { %1288 = vmatmul.msk.bf16.gmra.mxu2 %vm221_vm1, %v207_v58  ;;  %1294 = vmatmul.msk.bf16.gmra.mxu3 %vm221_vm1, %v207_v58  ;;  %v188_v58 = vpack.c.bf16 %v182_v53, %v182_v53 }
  0x74   : > { %1295 = vmatmul.msk.bf16.vlgmr.msrb.gmra.mxu0 %vm221_vm1, %v183_v61  ;;  %1301 = vmatmul.msk.bf16.vlgmr.msrb.gmra.mxu1 %vm221_vm1, %v183_v61 }
  0x75   : > { %920 = vmatpush.bf16.msrb.mxu0 %v902_v54  ;;  %958 = vmatpush.bf16.msrb.mxu1 %v905_v55  ;;  %v611_v55 = vpack.c.bf16 %v1493_v40, %v1484_v38  ;;  %v606_v40 = vld [vmem:[%s1441_s25 + $0x51] sm:$0xff] }
  0x77   : > { %1307 = vmatmul.msk.bf16.vlgmr.msrb.gmra.mxu2 %vm221_vm1, %v183_v61  ;;  %1313 = vmatmul.msk.bf16.vlgmr.msrb.gmra.mxu3 %vm221_vm1, %v183_v61 }
  0x78   : > { %996 = vmatpush.bf16.msrb.mxu2 %v908_v47  ;;  %1034 = vmatpush.bf16.msrb.mxu3 %v911_v48 }
  0x84   : > { %1296 = vmatmul.msk.bf16.gmra.mxu0 %vm221_vm1, %v184_v0  ;;  %1302 = vmatmul.msk.bf16.gmra.mxu1 %vm221_vm1, %v184_v0 }
  0x87   : > { %1308 = vmatmul.msk.bf16.gmra.mxu2 %vm221_vm1, %v184_v0  ;;  %1314 = vmatmul.msk.bf16.gmra.mxu3 %vm221_vm1, %v184_v0 }
  0x91   : > { %v1533_v4 = vpop.f32.mrf.mxu0  ;;  %v1535_v5 = vpop.f32.mrf.mxu1 }
  0x94   : > { %1297 = vmatmul.msk.bf16.gmra.mxu0 %vm221_vm1, %v185_v3  ;;  %1303 = vmatmul.msk.bf16.gmra.mxu1 %vm221_vm1, %v185_v3 }
  0x97   : > { %1309 = vmatmul.msk.bf16.gmra.mxu2 %vm221_vm1, %v185_v3  ;;  %1315 = vmatmul.msk.bf16.gmra.mxu3 %vm221_vm1, %v185_v3  ;;  %v608_v3 = vpack.c.bf16 %v1457_v31, %v1449_v29 }
  0x99   : > { %v1545_v8 = vpop.f32.mrf.mxu0  ;;  %v1547_v9 = vpop.f32.mrf.mxu1 }
  0x9a   : > { %v1541_v6 = vpop.f32.mrf.mxu2  ;;  %v1543_v7 = vpop.f32.mrf.mxu3 }
  0xa1   : > { %v1555_v15 = vpop.f32.mrf.mxu0  ;;  %v1557_v16 = vpop.f32.mrf.mxu1 }
  0xa2   : > { %v1551_v12 = vpop.f32.mrf.mxu2  ;;  %v1553_v13 = vpop.f32.mrf.mxu3 }
  0xa4   : > { %1298 = vmatmul.msk.bf16.gmra.mxu0 %vm221_vm1, %v186_v14  ;;  %1304 = vmatmul.msk.bf16.gmra.mxu1 %vm221_vm1, %v186_v14 }
  0xa7   : > { %1310 = vmatmul.msk.bf16.gmra.mxu2 %vm221_vm1, %v186_v14  ;;  %1316 = vmatmul.msk.bf16.gmra.mxu3 %vm221_vm1, %v186_v14 }
  0xa9   : > { %v1567_v19 = vpop.f32.mrf.mxu0  ;;  %v1569_v20 = vpop.f32.mrf.mxu1 }
  0xaa   : > { %v1563_v17 = vpop.f32.mrf.mxu2  ;;  %v1565_v18 = vpop.f32.mrf.mxu3 }
  0xb1   : > { %v1577_v26 = vpop.f32.mrf.mxu0  ;;  %v1579_v27 = vpop.f32.mrf.mxu1 }
  0xb2   : > { %v1573_v23 = vpop.f32.mrf.mxu2  ;;  %v1575_v24 = vpop.f32.mrf.mxu3 }
  0xb4   : > { %1299 = vmatmul.msk.bf16.gmra.mxu0 %vm221_vm1, %v187_v25  ;;  %1305 = vmatmul.msk.bf16.gmra.mxu1 %vm221_vm1, %v187_v25 }
  0xb7   : > { %1311 = vmatmul.msk.bf16.gmra.mxu2 %vm221_vm1, %v187_v25  ;;  %1317 = vmatmul.msk.bf16.gmra.mxu3 %vm221_vm1, %v187_v25 }
  0xb9   : > { %v1592_v44 = vpop.f32.mrf.mxu0  ;;  %v1594_v45 = vpop.f32.mrf.mxu1 }
  0xba   : > { %v1588_v36 = vpop.f32.mrf.mxu2  ;;  %v1590_v39 = vpop.f32.mrf.mxu3 }
  0xc1   : > { %v1608_v59 = vpop.f32.mrf.mxu0  ;;  %v1610_v60 = vpop.f32.mrf.mxu1 }
  0xc2   : > { %v1604_v56 = vpop.f32.mrf.mxu2  ;;  %v1606_v57 = vpop.f32.mrf.mxu3  ;;  %2142 = vst [vmem:[#allocation2_spill] sm:$0xff] %v1610_v60 }
  0xc4   : > { %1300 = vmatmul.msk.bf16.gmra.mxu0 %vm221_vm1, %v188_v58  ;;  %1306 = vmatmul.msk.bf16.gmra.mxu1 %vm221_vm1, %v188_v58 }
  0xc7   : > { %1312 = vmatmul.msk.bf16.gmra.mxu2 %vm221_vm1, %v188_v58  ;;  %1318 = vmatmul.msk.bf16.gmra.mxu3 %vm221_vm1, %v188_v58 }
  0xc9   : > { %v1620_v63 = vpop.f32.mrf.mxu0  ;;  %v1622_v0 = vpop.f32.mrf.mxu1 }
  0xca   : > { %v1616_v61 = vpop.f32.mrf.mxu2  ;;  %v1618_v62 = vpop.f32.mrf.mxu3  ;;  %2145 = vst [vmem:[#allocation5_spill] sm:$0xff] %v1620_v63 }
  0xcb   : > { %2143 = vst [vmem:[#allocation3_spill] sm:$0xff] %v1616_v61 }
  0xcc   : > { %2144 = vst [vmem:[#allocation4_spill] sm:$0xff] %v1618_v62 }
  0xcd   : > { %2146 = vst [vmem:[#allocation6_spill] sm:$0xff] %v1622_v0 }
  0xd1   : > { %v1630_v10 = vpop.f32.mrf.mxu0  ;;  %v1632_v11 = vpop.f32.mrf.mxu1 }
  0xd2   : > { %v1624_v1 = vpop.f32.mrf.mxu2  ;;  %v1626_v2 = vpop.f32.mrf.mxu3  ;;  %2149 = vst [vmem:[#allocation9_spill] sm:$0xff] %v1630_v10 }
  0xd3   : > { %2147 = vst [vmem:[#allocation7_spill] sm:$0xff] %v1624_v1 }
  0xd4   : > { %2148 = vst [vmem:[#allocation8_spill] sm:$0xff] %v1626_v2  ;;  %1321 = vmatmul.msk.bf16.vlgmr.msra.gmra.mxu0 %vm221_vm1, %v608_v3  ;;  %1327 = vmatmul.msk.bf16.vlgmr.msra.gmra.mxu1 %vm221_vm1, %v608_v3  ;;  %v854_v2 = vld [vmem:[%s1441_s25 + $0x12] sm:$0xff] }
  0xd5   : > { %2150 = vst [vmem:[#allocation10_spill] sm:$0xff] %v1632_v11 }
  0xd7   : > { %1333 = vmatmul.msk.bf16.vlgmr.msra.gmra.mxu2 %vm221_vm1, %v608_v3  ;;  %1339 = vmatmul.msk.bf16.vlgmr.msra.gmra.mxu3 %vm221_vm1, %v608_v3 }
  0xd9   : > { %v1642_v22 = vpop.f32.mrf.mxu0  ;;  %v1644_v25 = vpop.f32.mrf.mxu1 }
  0xda   : > { %v1638_v14 = vpop.f32.mrf.mxu2  ;;  %v1640_v21 = vpop.f32.mrf.mxu3  ;;  %2153 = vst [vmem:[#allocation13_spill] sm:$0xff] %v1642_v22 }
  0xdb   : > { %2151 = vst [vmem:[#allocation11_spill] sm:$0xff] %v1638_v14 }
  0xdc   : > { %2152 = vst [vmem:[#allocation12_spill] sm:$0xff] %v1640_v21 }
  0xdd   : > { %2154 = vst [vmem:[#allocation14_spill] sm:$0xff] %v1644_v25 }
  0xe1   : > { %v1652_v30 = vpop.f32.mrf.mxu0  ;;  %v1654_v33 = vpop.f32.mrf.mxu1 }
  0xe2   : > { %v1646_v29 = vpop.f32.mrf.mxu2  ;;  %v1648_v31 = vpop.f32.mrf.mxu3  ;;  %2157 = vst [vmem:[#allocation17_spill] sm:$0xff] %v1652_v30 }
  0xe3   : > { %2155 = vst [vmem:[#allocation15_spill] sm:$0xff] %v1646_v29 }
  0xe4   : > { %2156 = vst [vmem:[#allocation16_spill] sm:$0xff] %v1648_v31  ;;  %1322 = vmatmul.msk.bf16.gmra.mxu0 %vm221_vm1, %v609_v28  ;;  %1328 = vmatmul.msk.bf16.gmra.mxu1 %vm221_vm1, %v609_v28 }
  0xe5   : > { %2158 = vst [vmem:[#allocation18_spill] sm:$0xff] %v1654_v33 }
  0xe7   : > { %1334 = vmatmul.msk.bf16.gmra.mxu2 %vm221_vm1, %v609_v28  ;;  %1340 = vmatmul.msk.bf16.gmra.mxu3 %vm221_vm1, %v609_v28 }
  0xe9   : > { %v289_v46 = vpop.f32.mrf.mxu0  ;;  %v327_v47 = vpop.f32.mrf.mxu1 }
  0xea   : > { %v1660_v42 = vpop.f32.mrf.mxu2  ;;  %v1662_v43 = vpop.f32.mrf.mxu3 }
  0xeb   : > { %2159 = vst [vmem:[#allocation19_spill] sm:$0xff] %v1660_v42 }
  0xec   : > { %2160 = vst [vmem:[#allocation20_spill] sm:$0xff] %v1662_v43 }
  0xf1   : > { %v1666_v49 = vpop.f32.mrf.mxu0  ;;  %v1668_v50 = vpop.f32.mrf.mxu1 }
  0xf2   : > { %v365_v48 = vpop.f32.mrf.mxu2  ;;  %v403_v32 = vpop.f32.mrf.mxu3 }
  0xf4   : > { %1323 = vmatmul.msk.bf16.gmra.mxu0 %vm221_vm1, %v610_v34  ;;  %1329 = vmatmul.msk.bf16.gmra.mxu1 %vm221_vm1, %v610_v34 }
  0xf7   : > { %1335 = vmatmul.msk.bf16.gmra.mxu2 %vm221_vm1, %v610_v34  ;;  %1341 = vmatmul.msk.bf16.gmra.mxu3 %vm221_vm1, %v610_v34  ;;  %v612_v34 = vpack.c.bf16 %v606_v40, %v1496_v41  ;;  %v607_v40 = vld [vmem:[%s1441_s25 + $0x59] sm:$0x1] }
  0xf8   : > { %v613_v25 = vpack.c.bf16 %v607_v40, %v607_v40  ;;  %v853_v40 = vld [vmem:[%s1441_s25 + $0xa] sm:$0xff] }
  0xf9   : > { %v1678_v53 = vpop.f32.mrf.mxu0  ;;  %v1680_v35 = vpop.f32.mrf.mxu1  ;;  %v864_v63 = vpack.c.bf16 %v854_v2, %v853_v40  ;;  %v855_v2 = vld [vmem:[%s1441_s25 + $0x1a] sm:$0xff]  ;;  %v856_v40 = vld [vmem:[%s1441_s25 + $0x22] sm:$0xff] }
  0xfa   : > { %v1674_v51 = vpop.f32.mrf.mxu2  ;;  %v1676_v52 = vpop.f32.mrf.mxu3 }
 0x101   : > { %v1688_v58 = vpop.f32.mrf.mxu0  ;;  %v1690_v3 = vpop.f32.mrf.mxu1 }
 0x102   : > { %v1682_v37 = vpop.f32.mrf.mxu2  ;;  %v1684_v54 = vpop.f32.mrf.mxu3 }
 0x104   : > { %1324 = vmatmul.msk.bf16.gmra.mxu0 %vm221_vm1, %v611_v55  ;;  %1330 = vmatmul.msk.bf16.gmra.mxu1 %vm221_vm1, %v611_v55 }
 0x107   : > { %1336 = vmatmul.msk.bf16.gmra.mxu2 %vm221_vm1, %v611_v55  ;;  %1342 = vmatmul.msk.bf16.gmra.mxu3 %vm221_vm1, %v611_v55 }
 0x109   : > { %v1700_v47 = vpop.f32.mrf.mxu0  ;;  %v1702_v38 = vpop.f32.mrf.mxu1 }
 0x10a   : > { %v1696_v28 = vpop.f32.mrf.mxu2  ;;  %v1698_v46 = vpop.f32.mrf.mxu3 }
 0x111   : > { %v1710_v43 = vpop.f32.mrf.mxu0  ;;  %v1712_v42 = vpop.f32.mrf.mxu1 }
 0x112   : > { %v1705_v48 = vpop.f32.mrf.mxu2  ;;  %v1707_v32 = vpop.f32.mrf.mxu3 }
 0x114   : > { %1325 = vmatmul.msk.bf16.gmra.mxu0 %vm221_vm1, %v612_v34  ;;  %1331 = vmatmul.msk.bf16.gmra.mxu1 %vm221_vm1, %v612_v34 }
 0x117   : > { %1337 = vmatmul.msk.bf16.gmra.mxu2 %vm221_vm1, %v612_v34  ;;  %1343 = vmatmul.msk.bf16.gmra.mxu3 %vm221_vm1, %v612_v34 }
 0x119   : > { %v1722_v30 = vpop.f32.mrf.mxu0  ;;  %v1724_v41 = vpop.f32.mrf.mxu1 }
 0x11a   : > { %v1718_v55 = vpop.f32.mrf.mxu2  ;;  %v1720_v33 = vpop.f32.mrf.mxu3 }
 0x121   : > { %v1731_v22 = vpop.f32.mrf.mxu0  ;;  %v1733_v21 = vpop.f32.mrf.mxu1 }
 0x122   : > { %v1727_v31 = vpop.f32.mrf.mxu2  ;;  %v1729_v29 = vpop.f32.mrf.mxu3  ;;  %2161 = vst [vmem:[#allocation21_spill] sm:$0xff] %v1733_v21 }
 0x124   : > { %1326 = vmatmul.msk.bf16.gmra.mxu0 %vm221_vm1, %v613_v25  ;;  %1332 = vmatmul.msk.bf16.gmra.mxu1 %vm221_vm1, %v613_v25 }
 0x127   : > { %1338 = vmatmul.msk.bf16.gmra.mxu2 %vm221_vm1, %v613_v25  ;;  %1344 = vmatmul.msk.bf16.gmra.mxu3 %vm221_vm1, %v613_v25 }
 0x129   : > { %v1743_v11 = vpop.f32.mrf.mxu0  ;;  %v1745_v10 = vpop.f32.mrf.mxu1 }
 0x12a   : > { %v1739_v34 = vpop.f32.mrf.mxu2  ;;  %v1741_v14 = vpop.f32.mrf.mxu3  ;;  %2164 = vst [vmem:[#allocation24_spill] sm:$0xff] %v1743_v11 }
 0x12b   : > { %2162 = vst [vmem:[#allocation22_spill] sm:$0xff] %v1739_v34 }
 0x12c   : > { %2163 = vst [vmem:[#allocation23_spill] sm:$0xff] %v1741_v14  ;;  %v865_v14 = vpack.c.bf16 %v856_v40, %v855_v2  ;;  %v858_v2 = vld [vmem:[%s1441_s25 + $0x32] sm:$0xff]  ;;  %v455_v40 = vadd.f32 %v1666_v49, %v1533_v4  ;;  %v531_v4 = vadd.f32 %v1674_v51, %v1541_v6  ;;  %v859_v51 = vld [vmem:[%s1441_s25 + $0x3a] sm:$0xff] }
 0x12d   : > { %2165 = vst [vmem:[#allocation25_spill] sm:$0xff] %v1745_v10 }
 0x131   : > { %v1753_v62 = vpop.f32.mrf.mxu0  ;;  %v1755_v25 = vpop.f32.mrf.mxu1 }
 0x132   : > { %v1749_v1 = vpop.f32.mrf.mxu2  ;;  %v1751_v0 = vpop.f32.mrf.mxu3  ;;  %2168 = vst [vmem:[#allocation28_spill] sm:$0xff] %v1753_v62 }
 0x133   : > { %2166 = vst [vmem:[#allocation26_spill] sm:$0xff] %v1749_v1 }
 0x134   : > { %2167 = vst [vmem:[#allocation27_spill] sm:$0xff] %v1751_v0  ;;  %1347 = vmatmul.msk.bf16.vlgmr.msrb.gmra.mxu0 %vm221_vm1, %v864_v63  ;;  %1353 = vmatmul.msk.bf16.vlgmr.msrb.gmra.mxu1 %vm221_vm1, %v864_v63 }
 0x135   : > { %2169 = vst [vmem:[#allocation29_spill] sm:$0xff] %v1755_v25 }
 0x137   : > { %1359 = vmatmul.msk.bf16.vlgmr.msrb.gmra.mxu2 %vm221_vm1, %v864_v63  ;;  %1365 = vmatmul.msk.bf16.vlgmr.msrb.gmra.mxu3 %vm221_vm1, %v864_v63 }
 0x139   : > { %v1765_v1 = vpop.f32.mrf.mxu0  ;;  %v1767_v0 = vpop.f32.mrf.mxu1 }
 0x13a   : > { %v1761_v10 = vpop.f32.mrf.mxu2  ;;  %v1763_v11 = vpop.f32.mrf.mxu3  ;;  %2172 = vst [vmem:[#allocation32_spill] sm:$0xff] %v1765_v1 }
 0x13b   : > { %2170 = vst [vmem:[#allocation30_spill] sm:$0xff] %v1761_v10 }
 0x13c   : > { %2171 = vst [vmem:[#allocation31_spill] sm:$0xff] %v1763_v11 }
 0x13d   : > { %2173 = vst [vmem:[#allocation33_spill] sm:$0xff] %v1767_v0 }
 0x141   : > { %v1775_v34 = vpop.f32.mrf.mxu0  ;;  %v1777_v63 = vpop.f32.mrf.mxu1 }
 0x142   : > { %v1771_v25 = vpop.f32.mrf.mxu2  ;;  %v1773_v62 = vpop.f32.mrf.mxu3  ;;  %2176 = vst [vmem:[#allocation36_spill] sm:$0xff] %v1775_v34 }
 0x143   : > { %2174 = vst [vmem:[#allocation34_spill] sm:$0xff] %v1771_v25 }
 0x144   : > { %2175 = vst [vmem:[#allocation35_spill] sm:$0xff] %v1773_v62  ;;  %1348 = vmatmul.msk.bf16.gmra.mxu0 %vm221_vm1, %v865_v14  ;;  %1354 = vmatmul.msk.bf16.gmra.mxu1 %vm221_vm1, %v865_v14  ;;  %v857_v62 = vld [vmem:[%s1441_s25 + $0x2a] sm:$0xff] }
 0x145   : > { %2177 = vst [vmem:[#allocation37_spill] sm:$0xff] %v1777_v63  ;;  %v493_v63 = vadd.f32 %v1668_v50, %v1535_v5  ;;  %v866_v61 = vpack.c.bf16 %v858_v2, %v857_v62  ;;  %v569_v5 = vadd.f32 %v1676_v52, %v1543_v7  ;;  %v495_v62 = vadd.f32 %v1680_v35, %v1547_v9  ;;  %v860_v7 = vld [vmem:[%s1441_s25 + $0x42] sm:$0xff] }
 0x146   : > { %v571_v9 = vadd.f32 %v1684_v54, %v1553_v13  ;;  %v460_v52 = vadd.f32 %v1688_v58, %v1555_v15  ;;  %v536_v13 = vadd.f32 %v1696_v28, %v1563_v17  ;;  %v574_v15 = vadd.f32 %v1698_v46, %v1565_v18  ;;  %v861_v28 = vld [vmem:[%s1441_s25 + $0x4a] sm:$0xff]  ;;  %v862_v18 = vld [vmem:[%s1441_s25 + $0x52] sm:$0xff] }
 0x147   : > { %1360 = vmatmul.msk.bf16.gmra.mxu2 %vm221_vm1, %v865_v14  ;;  %1366 = vmatmul.msk.bf16.gmra.mxu3 %vm221_vm1, %v865_v14  ;;  %v465_v46 = vadd.f32 %v1710_v43, %v1577_v26  ;;  %v579_v26 = vadd.f32 %v1720_v33, %v1590_v39  ;;  %v543_v39 = vadd.f32 %v1727_v31, %v1604_v56  ;;  %v2180_v33 = vld [vmem:[#allocation21_spill] sm:$0xff]  ;;  %v2184_v31 = vld [vmem:[#allocation23_spill] sm:$0xff] }
 0x149   : > { %v481_v25 = vpop.f32.mrf.mxu0  ;;  %v519_v11 = vpop.f32.mrf.mxu1 }
 0x14a   : > { %v1783_v0 = vpop.f32.mrf.mxu2  ;;  %v1785_v1 = vpop.f32.mrf.mxu3 }
 0x14b   : > { %2178 = vst [vmem:[#allocation38_spill] sm:$0xff] %v1783_v0 }
 0x151   : > { %v666_v21 = vpop.f32.mrf.mxu0  ;;  %v704_v60 = vpop.f32.mrf.mxu1 }
 0x152   : > { %v557_v34 = vpop.f32.mrf.mxu2  ;;  %v595_v10 = vpop.f32.mrf.mxu3  ;;  %v1793_v14 = vadd.f32 %v666_v21, %v455_v40  ;;  %v1795_v0 = vadd.f32 %v704_v60, %v493_v63  ;;  %v457_v60 = vadd.f32 %v1678_v53, %v1545_v8  ;;  %v533_v8 = vadd.f32 %v1682_v37, %v1551_v12 }
 0x153   : > { %v498_v53 = vadd.f32 %v1690_v3, %v1557_v16  ;;  %v867_v63 = vpack.c.bf16 %v860_v7, %v859_v51  ;;  %v462_v16 = vadd.f32 %v1700_v47, %v1567_v19  ;;  %v500_v37 = vadd.f32 %v1702_v38, %v1569_v20 }
 0x154   : > { %1349 = vmatmul.msk.bf16.gmra.mxu0 %vm221_vm1, %v866_v61  ;;  %1355 = vmatmul.msk.bf16.gmra.mxu1 %vm221_vm1, %v866_v61  ;;  %v538_v19 = vadd.f32 %v1705_v48, %v1573_v23  ;;  %v576_v20 = vadd.f32 %v1707_v32, %v1575_v24  ;;  %v503_v47 = vadd.f32 %v1712_v42, %v1579_v27 }
 0x155   : > { %v868_v51 = vpack.c.bf16 %v862_v18, %v861_v28  ;;  %v541_v24 = vadd.f32 %v1718_v55, %v1588_v36  ;;  %v467_v27 = vadd.f32 %v1722_v30, %v1592_v44  ;;  %v505_v42 = vadd.f32 %v1724_v41, %v1594_v45  ;;  %v863_v55 = vld [vmem:[%s1441_s25 + $0x5a] sm:$0x1]  ;;  %v2179_v30 = vld [vmem:[#allocation2_spill] sm:$0xff]  ;;  %v2186_v18 = vld [vmem:[#allocation24_spill] sm:$0xff] }
 0x156   : > { %v581_v44 = vadd.f32 %v1729_v29, %v1606_v57  ;;  %v470_v45 = vadd.f32 %v1731_v22, %v1608_v59  ;;  %v508_v41 = vadd.f32 %v2180_v33, %v2179_v30  ;;  %v2181_v57 = vld [vmem:[#allocation3_spill] sm:$0xff]  ;;  %v2182_v59 = vld [vmem:[#allocation22_spill] sm:$0xff]  ;;  %v2183_v29 = vld [vmem:[#allocation4_spill] sm:$0xff] }
 0x157   : > { %1361 = vmatmul.msk.bf16.gmra.mxu2 %vm221_vm1, %v866_v61  ;;  %1367 = vmatmul.msk.bf16.gmra.mxu3 %vm221_vm1, %v866_v61  ;;  %v546_v22 = vadd.f32 %v2182_v59, %v2181_v57  ;;  %v2185_v28 = vld [vmem:[#allocation5_spill] sm:$0xff]  ;;  %v2195_v30 = vld [vmem:[#allocation10_spill] sm:$0xff] }
 0x158   : > { %v2196_v33 = vld [vmem:[#allocation29_spill] sm:$0xff] }
 0x159   : > { %v668_v50 = vpop.f32.mrf.mxu0  ;;  %v706_v61 = vpop.f32.mrf.mxu1 }
 0x15a   : > { %v742_v10 = vpop.f32.mrf.mxu2  ;;  %v780_v11 = vpop.f32.mrf.mxu3  ;;  %v1813_v34 = vadd.f32 %v668_v50, %v457_v60  ;;  %v1815_v6 = vadd.f32 %v706_v61, %v495_v62 }
 0x15b   : > { %v1809_v21 = vadd.f32 %v742_v10, %v531_v4  ;;  %v1811_v49 = vadd.f32 %v780_v11, %v569_v5 }
 0x161   : > { %v671_v4 = vpop.f32.mrf.mxu0  ;;  %v709_v5 = vpop.f32.mrf.mxu1 }
 0x162   : > { %v744_v35 = vpop.f32.mrf.mxu2  ;;  %v782_v25 = vpop.f32.mrf.mxu3  ;;  %v1831_v60 = vadd.f32 %v671_v4, %v460_v52  ;;  %v1833_v12 = vadd.f32 %v709_v5, %v498_v53 }
 0x163   : > { %v1827_v2 = vadd.f32 %v744_v35, %v533_v8  ;;  %v1829_v40 = vadd.f32 %v782_v25, %v571_v9 }
 0x164   : > { %1350 = vmatmul.msk.bf16.gmra.mxu0 %vm221_vm1, %v867_v63  ;;  %1356 = vmatmul.msk.bf16.gmra.mxu1 %vm221_vm1, %v867_v63 }
 0x167   : > { %1362 = vmatmul.msk.bf16.gmra.mxu2 %vm221_vm1, %v867_v63  ;;  %1368 = vmatmul.msk.bf16.gmra.mxu3 %vm221_vm1, %v867_v63 }
 0x169   : > { %v673_v10 = vpop.f32.mrf.mxu0  ;;  %v711_v11 = vpop.f32.mrf.mxu1 }
 0x16a   : > { %v747_v54 = vpop.f32.mrf.mxu2  ;;  %v785_v58 = vpop.f32.mrf.mxu3  ;;  %v1851_v50 = vadd.f32 %v673_v10, %v462_v16  ;;  %v1853_v17 = vadd.f32 %v711_v11, %v500_v37  ;;  %v584_v11 = vadd.f32 %v2184_v31, %v2183_v29  ;;  %v2197_v29 = vld [vmem:[#allocation11_spill] sm:$0xff]  ;;  %v2198_v31 = vld [vmem:[#allocation30_spill] sm:$0xff] }
 0x16b   : > { %v1847_v3 = vadd.f32 %v747_v54, %v536_v13  ;;  %v1849_v62 = vadd.f32 %v785_v58, %v574_v15  ;;  %v869_v15 = vpack.c.bf16 %v863_v55, %v863_v55 }
 0x171   : > { %v676_v9 = vpop.f32.mrf.mxu0  ;;  %v714_v52 = vpop.f32.mrf.mxu1 }
 0x172   : > { %v749_v38 = vpop.f32.mrf.mxu2  ;;  %v787_v61 = vpop.f32.mrf.mxu3  ;;  %v1869_v53 = vadd.f32 %v676_v9, %v465_v46  ;;  %v1871_v23 = vadd.f32 %v714_v52, %v503_v47  ;;  %v2188_v46 = vld [vmem:[#allocation25_spill] sm:$0xff] }
 0x173   : > { %v1865_v7 = vadd.f32 %v749_v38, %v538_v19  ;;  %v1867_v8 = vadd.f32 %v787_v61, %v576_v20  ;;  %v472_v19 = vadd.f32 %v2186_v18, %v2185_v28  ;;  %v2187_v20 = vld [vmem:[#allocation6_spill] sm:$0xff]  ;;  %v2199_v28 = vld [vmem:[#allocation12_spill] sm:$0xff]  ;;  %v2200_v18 = vld [vmem:[#allocation31_spill] sm:$0xff] }
 0x174   : > { %1351 = vmatmul.msk.bf16.gmra.mxu0 %vm221_vm1, %v868_v51  ;;  %1357 = vmatmul.msk.bf16.gmra.mxu1 %vm221_vm1, %v868_v51  ;;  %v510_v47 = vadd.f32 %v2188_v46, %v2187_v20  ;;  %v2201_v20 = vld [vmem:[#allocation13_spill] sm:$0xff]  ;;  %v2202_v46 = vld [vmem:[#allocation32_spill] sm:$0xff] }
 0x177   : > { %1363 = vmatmul.msk.bf16.gmra.mxu2 %vm221_vm1, %v868_v51  ;;  %1369 = vmatmul.msk.bf16.gmra.mxu3 %vm221_vm1, %v868_v51 }
 0x179   : > { %v678_v25 = vpop.f32.mrf.mxu0  ;;  %v716_v63 = vpop.f32.mrf.mxu1 }
 0x17a   : > { %v752_v43 = vpop.f32.mrf.mxu2  ;;  %v790_v48 = vpop.f32.mrf.mxu3  ;;  %v1889_v4 = vadd.f32 %v678_v25, %v467_v27  ;;  %v1891_v36 = vadd.f32 %v716_v63, %v505_v42  ;;  %v2189_v42 = vld [vmem:[#allocation7_spill] sm:$0xff]  ;;  %v2191_v25 = vld [vmem:[#allocation8_spill] sm:$0xff] }
 0x17b   : > { %v1885_v32 = vadd.f32 %v752_v43, %v541_v24  ;;  %v1887_v35 = vadd.f32 %v790_v48, %v579_v26  ;;  %v2190_v43 = vld [vmem:[#allocation26_spill] sm:$0xff]  ;;  %v2192_v63 = vld [vmem:[#allocation27_spill] sm:$0xff] }
 0x17c   : > { %v548_v48 = vadd.f32 %v2190_v43, %v2189_v42  ;;  %v586_v55 = vadd.f32 %v2192_v63, %v2191_v25 }
 0x181   : > { %v681_v54 = vpop.f32.mrf.mxu0  ;;  %v719_v58 = vpop.f32.mrf.mxu1 }
 0x182   : > { %v754_v5 = vpop.f32.mrf.mxu2  ;;  %v792_v13 = vpop.f32.mrf.mxu3  ;;  %v1906_v10 = vadd.f32 %v681_v54, %v470_v45  ;;  %v1908_v56 = vadd.f32 %v719_v58, %v508_v41  ;;  %v513_v41 = vadd.f32 %v2196_v33, %v2195_v30  ;;  %v2207_v33 = vld [vmem:[#allocation16_spill] sm:$0xff] }
 0x183   : > { %v1902_v16 = vadd.f32 %v754_v5, %v543_v39  ;;  %v1904_v37 = vadd.f32 %v792_v13, %v581_v44  ;;  %v2193_v39 = vld [vmem:[#allocation9_spill] sm:$0xff]  ;;  %v2194_v44 = vld [vmem:[#allocation28_spill] sm:$0xff] }
 0x184   : > { %1352 = vmatmul.msk.bf16.gmra.mxu0 %vm221_vm1, %v869_v15  ;;  %1358 = vmatmul.msk.bf16.gmra.mxu1 %vm221_vm1, %v869_v15  ;;  %v475_v45 = vadd.f32 %v2194_v44, %v2193_v39  ;;  %v2205_v44 = vld [vmem:[#allocation15_spill] sm:$0xff] }
 0x187   : > { %1364 = vmatmul.msk.bf16.gmra.mxu2 %vm221_vm1, %v869_v15  ;;  %1370 = vmatmul.msk.bf16.gmra.mxu3 %vm221_vm1, %v869_v15 }
 0x189   : > { %v683_v52 = vpop.f32.mrf.mxu0  ;;  %v721_v24 = vpop.f32.mrf.mxu1 }
 0x18a   : > { %v757_v38 = vpop.f32.mrf.mxu2  ;;  %v795_v61 = vpop.f32.mrf.mxu3  ;;  %v1926_v26 = vadd.f32 %v683_v52, %v472_v19  ;;  %v1928_v27 = vadd.f32 %v721_v24, %v510_v47  ;;  %v589_v19 = vadd.f32 %v2200_v18, %v2199_v28  ;;  %v477_v47 = vadd.f32 %v2202_v46, %v2201_v20 }
 0x18b   : > { %v1922_v51 = vadd.f32 %v757_v38, %v546_v22  ;;  %v1924_v9 = vadd.f32 %v795_v61, %v584_v11  ;;  %v551_v11 = vadd.f32 %v2198_v31, %v2197_v29  ;;  %v2203_v38 = vld [vmem:[#allocation14_spill] sm:$0xff]  ;;  %v2204_v61 = vld [vmem:[#allocation33_spill] sm:$0xff] }
 0x18c   : > { %v515_v52 = vadd.f32 %v2204_v61, %v2203_v38  ;;  %v2211_v29 = vld [vmem:[#allocation18_spill] sm:$0xff]  ;;  %v2212_v31 = vld [vmem:[#allocation37_spill] sm:$0xff] }
 0x191   : > { %v686_v58 = vpop.f32.mrf.mxu0  ;;  %v724_v57 = vpop.f32.mrf.mxu1 }
 0x192   : > { %v759_v5 = vpop.f32.mrf.mxu2  ;;  %v797_v13 = vpop.f32.mrf.mxu3  ;;  %v1942_v59 = vadd.f32 %v686_v58, %v475_v45  ;;  %v1944_v22 = vadd.f32 %v724_v57, %v513_v41  ;;  %v2206_v45 = vld [vmem:[#allocation34_spill] sm:$0xff]  ;;  %v2208_v41 = vld [vmem:[#allocation35_spill] sm:$0xff]  ;;  %v2210_v58 = vld [vmem:[#allocation36_spill] sm:$0xff] }
 0x193   : > { %v1938_v15 = vadd.f32 %v759_v5, %v548_v48  ;;  %v1940_v54 = vadd.f32 %v797_v13, %v586_v55  ;;  %v553_v30 = vadd.f32 %v2206_v45, %v2205_v44  ;;  %v591_v5 = vadd.f32 %v2208_v41, %v2207_v33  ;;  %v2209_v13 = vld [vmem:[#allocation17_spill] sm:$0xff] }
 0x194   : > { %v480_v57 = vadd.f32 %v2210_v58, %v2209_v13  ;;  %v1109_v13 = vld [vmem:[%s2140_s2] sm:$0xf] }
 0x199   : > { %v688_v25 = vpop.f32.mrf.mxu0  ;;  %v726_v63 = vpop.f32.mrf.mxu1 }
 0x19a   : > { %v762_v24 = vpop.f32.mrf.mxu2  ;;  %v800_v42 = vpop.f32.mrf.mxu3  ;;  %v1958_v55 = vadd.f32 %v688_v25, %v477_v47  ;;  %v1960_v39 = vadd.f32 %v726_v63, %v515_v52  ;;  %v2213_v52 = vld [vmem:[#allocation19_spill] sm:$0xff]  ;;  %v2215_v25 = vld [vmem:[#allocation20_spill] sm:$0xff] }
 0x19b   : > { %v1954_v43 = vadd.f32 %v762_v24, %v551_v11  ;;  %v1956_v48 = vadd.f32 %v800_v42, %v589_v19  ;;  %v518_v11 = vadd.f32 %v2212_v31, %v2211_v29  ;;  %v2214_v24 = vld [vmem:[#allocation38_spill] sm:$0xff]  ;;  %v594_v63 = vadd.f32 %v1785_v1, %v2215_v25 }
 0x19c   : > { %v556_v42 = vadd.f32 %v2214_v24, %v2213_v52  ;;  %v1990_v29 = vperm.slane %v1109_v13, 0  ;;  %v1992_v31 = vperm.slane %v1109_v13, 1  ;;  %v2005_v52 = vperm.slane %v1109_v13, 2 }
 0x1a1   : > { %v691_v46 = vpop.f32.mrf.mxu0  ;;  %v729_v47 = vpop.f32.mrf.mxu1 }
 0x1a2   : > { %v764_v28 = vpop.f32.mrf.mxu2  ;;  %v802_v18 = vpop.f32.mrf.mxu3  ;;  %v1974_v38 = vadd.f32 %v691_v46, %v480_v57  ;;  %v1976_v61 = vadd.f32 %v729_v47, %v518_v11 }
 0x1a3   : > { %v1970_v19 = vadd.f32 %v764_v28, %v553_v30  ;;  %v1972_v20 = vadd.f32 %v802_v18, %v591_v5 }
 0x1a9   : > { %v693_v41 = vpop.f32.mrf.mxu0  ;;  %v731_v5 = vpop.f32.mrf.mxu1 }
 0x1aa   : > { %v767_v44 = vpop.f32.mrf.mxu2  ;;  %v805_v45 = vpop.f32.mrf.mxu3 }
 0x1ab   : > { %v1982_v33 = vadd.f32 %v767_v44, %v556_v42  ;;  %v1984_v30 = vadd.f32 %v805_v45, %v594_v63 }
 0x1b1   : > { %v922_v1 = vpop.f32.mrf.mxu0  ;;  %v960_v11 = vpop.f32.mrf.mxu1 }
 0x1b2   : > { %v769_v58 = vpop.f32.mrf.mxu2  ;;  %v807_v57 = vpop.f32.mrf.mxu3  ;;  %v1065_v28 = vadd.f32 %v922_v1, %v1793_v14  ;;  %v1066_v18 = vadd.f32 %v960_v11, %v1795_v0  ;;  %v2007_v14 = vperm.slane %v1109_v13, 3 }
 0x1b4   : > { %v1119_v46 = vadd.f32 %v1990_v29, %v1065_v28  ;;  %v1120_v47 = vadd.f32 %v1992_v31, %v1066_v18 }
 0x1b6   : > { %1163 = vst [vmem:[%s1999_s14] sm:$0xff] %v1119_v46 }
 0x1b7   : > { %1164 = vst [vmem:[%s1999_s14 + $0x8] sm:$0xff] %v1120_v47 }
 0x1b9   : > { %v924_v63 = vpop.f32.mrf.mxu0  ;;  %v962_v44 = vpop.f32.mrf.mxu1 }
 0x1ba   : > { %v998_v0 = vpop.f32.mrf.mxu2  ;;  %v1036_v24 = vpop.f32.mrf.mxu3  ;;  %v1069_v45 = vadd.f32 %v924_v63, %v1813_v34  ;;  %v1070_v41 = vadd.f32 %v962_v44, %v1815_v6 }
 0x1bb   : > { %v1067_v42 = vadd.f32 %v998_v0, %v1809_v21  ;;  %v1068_v25 = vadd.f32 %v1036_v24, %v1811_v49 }
 0x1bc   : > { %v1123_v13 = vadd.f32 %v1990_v29, %v1069_v45  ;;  %v1124_v57 = vadd.f32 %v1992_v31, %v1070_v41 }
 0x1bd   : > { %v1121_v5 = vadd.f32 %v2005_v52, %v1067_v42  ;;  %v1122_v58 = vadd.f32 %v2007_v14, %v1068_v25 }
 0x1be   : > { %1167 = vst [vmem:[%s1999_s14 + $0x20] sm:$0xff] %v1123_v13 }
 0x1bf   : > { %1165 = vst [vmem:[%s1999_s14 + $0x10] sm:$0xff] %v1121_v5 }
 0x1c0   : > { %1166 = vst [vmem:[%s1999_s14 + $0x18] sm:$0xff] %v1122_v58 }
 0x1c1   : > { %1168 = vst [vmem:[%s1999_s14 + $0x28] sm:$0xff] %v1124_v57  ;;  %v927_v1 = vpop.f32.mrf.mxu0  ;;  %v965_v11 = vpop.f32.mrf.mxu1 }
 0x1c2   : > { %v1000_v21 = vpop.f32.mrf.mxu2  ;;  %v1038_v49 = vpop.f32.mrf.mxu3  ;;  %v1073_v28 = vadd.f32 %v927_v1, %v1831_v60  ;;  %v1074_v18 = vadd.f32 %v965_v11, %v1833_v12 }
 0x1c3   : > { %v1071_v34 = vadd.f32 %v1000_v21, %v1827_v2  ;;  %v1072_v6 = vadd.f32 %v1038_v49, %v1829_v40 }
 0x1c4   : > { %v1127_v0 = vadd.f32 %v1990_v29, %v1073_v28  ;;  %v1128_v24 = vadd.f32 %v1992_v31, %v1074_v18 }
 0x1c5   : > { %v1125_v46 = vadd.f32 %v2005_v52, %v1071_v34  ;;  %v1126_v47 = vadd.f32 %v2007_v14, %v1072_v6 }
 0x1c6   : > { %1171 = vst [vmem:[%s1999_s14 + $0x40] sm:$0xff] %v1127_v0 }
 0x1c7   : > { %1169 = vst [vmem:[%s1999_s14 + $0x30] sm:$0xff] %v1125_v46 }
 0x1c8   : > { %1170 = vst [vmem:[%s1999_s14 + $0x38] sm:$0xff] %v1126_v47 }
 0x1c9   : > { %1172 = vst [vmem:[%s1999_s14 + $0x48] sm:$0xff] %v1128_v24  ;;  %v929_v42 = vpop.f32.mrf.mxu0  ;;  %v967_v25 = vpop.f32.mrf.mxu1 }
 0x1ca   : > { %v1003_v2 = vpop.f32.mrf.mxu2  ;;  %v1041_v40 = vpop.f32.mrf.mxu3  ;;  %v1077_v63 = vadd.f32 %v929_v42, %v1851_v50  ;;  %v1078_v44 = vadd.f32 %v967_v25, %v1853_v17 }
 0x1cb   : > { %v1075_v60 = vadd.f32 %v1003_v2, %v1847_v3  ;;  %v1076_v12 = vadd.f32 %v1041_v40, %v1849_v62 }
 0x1cc   : > { %v1131_v5 = vadd.f32 %v1990_v29, %v1077_v63  ;;  %v1132_v58 = vadd.f32 %v1992_v31, %v1078_v44 }
 0x1cd   : > { %v1129_v45 = vadd.f32 %v2005_v52, %v1075_v60  ;;  %v1130_v41 = vadd.f32 %v2007_v14, %v1076_v12 }
 0x1ce   : > { %1175 = vst [vmem:[%s1999_s14 + $0x60] sm:$0xff] %v1131_v5 }
 0x1cf   : > { %1173 = vst [vmem:[%s1999_s14 + $0x50] sm:$0xff] %v1129_v45 }
 0x1d0   : > { %1174 = vst [vmem:[%s1999_s14 + $0x58] sm:$0xff] %v1130_v41 }
 0x1d1   : > { %1176 = vst [vmem:[%s1999_s14 + $0x68] sm:$0xff] %v1132_v58  ;;  %v932_v13 = vpop.f32.mrf.mxu0  ;;  %v970_v57 = vpop.f32.mrf.mxu1 }
 0x1d2   : > { %v1005_v3 = vpop.f32.mrf.mxu2  ;;  %v1043_v62 = vpop.f32.mrf.mxu3  ;;  %v1081_v21 = vadd.f32 %v932_v13, %v1869_v53  ;;  %v1082_v49 = vadd.f32 %v970_v57, %v1871_v23 }
 0x1d3   : > { %v1079_v50 = vadd.f32 %v1005_v3, %v1865_v7  ;;  %v1080_v17 = vadd.f32 %v1043_v62, %v1867_v8 }
 0x1d4   : > { %v1135_v1 = vadd.f32 %v1990_v29, %v1081_v21  ;;  %v1136_v11 = vadd.f32 %v1992_v31, %v1082_v49 }
 0x1d5   : > { %v1133_v34 = vadd.f32 %v2005_v52, %v1079_v50  ;;  %v1134_v6 = vadd.f32 %v2007_v14, %v1080_v17 }
 0x1d6   : > { %1179 = vst [vmem:[%s1999_s14 + $0x80] sm:$0xff] %v1135_v1 }
 0x1d7   : > { %1177 = vst [vmem:[%s1999_s14 + $0x70] sm:$0xff] %v1133_v34 }
 0x1d8   : > { %1178 = vst [vmem:[%s1999_s14 + $0x78] sm:$0xff] %v1134_v6 }
 0x1d9   : > { %1180 = vst [vmem:[%s1999_s14 + $0x88] sm:$0xff] %v1136_v11  ;;  %v934_v28 = vpop.f32.mrf.mxu0  ;;  %v972_v18 = vpop.f32.mrf.mxu1 }
 0x1da   : > { %v1008_v7 = vpop.f32.mrf.mxu2  ;;  %v1046_v8 = vpop.f32.mrf.mxu3  ;;  %v1085_v46 = vadd.f32 %v934_v28, %v1889_v4  ;;  %v1086_v47 = vadd.f32 %v972_v18, %v1891_v36 }
 0x1db   : > { %v1083_v53 = vadd.f32 %v1008_v7, %v1885_v32  ;;  %v1084_v23 = vadd.f32 %v1046_v8, %v1887_v35 }
 0x1dc   : > { %v1139_v2 = vadd.f32 %v1990_v29, %v1085_v46  ;;  %v1140_v40 = vadd.f32 %v1992_v31, %v1086_v47 }
 0x1dd   : > { %v1137_v0 = vadd.f32 %v2005_v52, %v1083_v53  ;;  %v1138_v24 = vadd.f32 %v2007_v14, %v1084_v23 }
 0x1de   : > { %1183 = vst [vmem:[%s1999_s14 + $0xa0] sm:$0xff] %v1139_v2 }
 0x1df   : > { %1181 = vst [vmem:[%s1999_s14 + $0x90] sm:$0xff] %v1137_v0 }
 0x1e0   : > { %1182 = vst [vmem:[%s1999_s14 + $0x98] sm:$0xff] %v1138_v24 }
 0x1e1   : > { %1184 = vst [vmem:[%s1999_s14 + $0xa8] sm:$0xff] %v1140_v40  ;;  %v937_v60 = vpop.f32.mrf.mxu0  ;;  %v975_v12 = vpop.f32.mrf.mxu1 }
 0x1e2   : > { %v1010_v32 = vpop.f32.mrf.mxu2  ;;  %v1048_v35 = vpop.f32.mrf.mxu3  ;;  %v1089_v42 = vadd.f32 %v937_v60, %v1906_v10  ;;  %v1090_v25 = vadd.f32 %v975_v12, %v1908_v56 }
 0x1e3   : > { %v1087_v4 = vadd.f32 %v1010_v32, %v1902_v16  ;;  %v1088_v36 = vadd.f32 %v1048_v35, %v1904_v37 }
 0x1e4   : > { %v1143_v45 = vadd.f32 %v1990_v29, %v1089_v42  ;;  %v1144_v41 = vadd.f32 %v1992_v31, %v1090_v25 }
 0x1e5   : > { %v1141_v63 = vadd.f32 %v2005_v52, %v1087_v4  ;;  %v1142_v44 = vadd.f32 %v2007_v14, %v1088_v36 }
 0x1e6   : > { %1187 = vst [vmem:[%s1999_s14 + $0xc0] sm:$0xff] %v1143_v45 }
 0x1e7   : > { %1185 = vst [vmem:[%s1999_s14 + $0xb0] sm:$0xff] %v1141_v63 }
 0x1e8   : > { %1186 = vst [vmem:[%s1999_s14 + $0xb8] sm:$0xff] %v1142_v44 }
 0x1e9   : > { %1188 = vst [vmem:[%s1999_s14 + $0xc8] sm:$0xff] %v1144_v41  ;;  %v939_v5 = vpop.f32.mrf.mxu0  ;;  %v977_v58 = vpop.f32.mrf.mxu1 }
 0x1ea   : > { %v1013_v16 = vpop.f32.mrf.mxu2  ;;  %v1051_v37 = vpop.f32.mrf.mxu3  ;;  %v1093_v3 = vadd.f32 %v939_v5, %v1926_v26  ;;  %v1094_v62 = vadd.f32 %v977_v58, %v1928_v27 }
 0x1eb   : > { %v1091_v10 = vadd.f32 %v1013_v16, %v1922_v51  ;;  %v1092_v56 = vadd.f32 %v1051_v37, %v1924_v9 }
 0x1ec   : > { %v1147_v13 = vadd.f32 %v1990_v29, %v1093_v3  ;;  %v1148_v57 = vadd.f32 %v1992_v31, %v1094_v62 }
 0x1ed   : > { %v1145_v50 = vadd.f32 %v2005_v52, %v1091_v10  ;;  %v1146_v17 = vadd.f32 %v2007_v14, %v1092_v56 }
 0x1ee   : > { %1191 = vst [vmem:[%s1999_s14 + $0xe0] sm:$0xff] %v1147_v13 }
 0x1ef   : > { %1189 = vst [vmem:[%s1999_s14 + $0xd0] sm:$0xff] %v1145_v50 }
 0x1f0   : > { %1190 = vst [vmem:[%s1999_s14 + $0xd8] sm:$0xff] %v1146_v17 }
 0x1f1   : > { %1192 = vst [vmem:[%s1999_s14 + $0xe8] sm:$0xff] %v1148_v57  ;;  %v942_v21 = vpop.f32.mrf.mxu0  ;;  %v980_v49 = vpop.f32.mrf.mxu1 }
 0x1f2   : > { %v1015_v51 = vpop.f32.mrf.mxu2  ;;  %v1053_v9 = vpop.f32.mrf.mxu3  ;;  %v1097_v34 = vadd.f32 %v942_v21, %v1942_v59  ;;  %v1098_v6 = vadd.f32 %v980_v49, %v1944_v22 }
 0x1f3   : > { %v1095_v26 = vadd.f32 %v1015_v51, %v1938_v15  ;;  %v1096_v27 = vadd.f32 %v1053_v9, %v1940_v54 }
 0x1f4   : > { %v1151_v7 = vadd.f32 %v1990_v29, %v1097_v34  ;;  %v1152_v8 = vadd.f32 %v1992_v31, %v1098_v6 }
 0x1f5   : > { %v1149_v1 = vadd.f32 %v2005_v52, %v1095_v26  ;;  %v1150_v11 = vadd.f32 %v2007_v14, %v1096_v27 }
 0x1f6   : > { %1195 = vst [vmem:[%s1999_s14 + $0x100] sm:$0xff] %v1151_v7 }
 0x1f7   : > { %1193 = vst [vmem:[%s1999_s14 + $0xf0] sm:$0xff] %v1149_v1 }
 0x1f8   : > { %1194 = vst [vmem:[%s1999_s14 + $0xf8] sm:$0xff] %v1150_v11 }
 0x1f9   : > { %1196 = vst [vmem:[%s1999_s14 + $0x108] sm:$0xff] %v1152_v8  ;;  %v944_v53 = vpop.f32.mrf.mxu0  ;;  %v982_v23 = vpop.f32.mrf.mxu1 }
 0x1fa   : > { %v1018_v15 = vpop.f32.mrf.mxu2  ;;  %v1056_v54 = vpop.f32.mrf.mxu3  ;;  %v1101_v28 = vadd.f32 %v944_v53, %v1958_v55  ;;  %v1102_v18 = vadd.f32 %v982_v23, %v1960_v39 }
 0x1fb   : > { %v1099_v59 = vadd.f32 %v1018_v15, %v1954_v43  ;;  %v1100_v22 = vadd.f32 %v1056_v54, %v1956_v48 }
 0x1fc   : > { %v1155_v0 = vadd.f32 %v1990_v29, %v1101_v28  ;;  %v1156_v24 = vadd.f32 %v1992_v31, %v1102_v18 }
 0x1fd   : > { %v1153_v46 = vadd.f32 %v2005_v52, %v1099_v59  ;;  %v1154_v47 = vadd.f32 %v2007_v14, %v1100_v22 }
 0x1fe   : > { %1199 = vst [vmem:[%s1999_s14 + $0x120] sm:$0xff] %v1155_v0 }
 0x1ff   : > { %1197 = vst [vmem:[%s1999_s14 + $0x110] sm:$0xff] %v1153_v46 }
 0x200   : > { %1198 = vst [vmem:[%s1999_s14 + $0x118] sm:$0xff] %v1154_v47 }
 0x201   : > { %1200 = vst [vmem:[%s1999_s14 + $0x128] sm:$0xff] %v1156_v24  ;;  %v947_v2 = vpop.f32.mrf.mxu0  ;;  %v985_v40 = vpop.f32.mrf.mxu1 }
 0x202   : > { %v1020_v43 = vpop.f32.mrf.mxu2  ;;  %v1058_v48 = vpop.f32.mrf.mxu3  ;;  %v1105_v32 = vadd.f32 %v947_v2, %v1974_v38  ;;  %v1106_v35 = vadd.f32 %v985_v40, %v1976_v61 }
 0x203   : > { %v1103_v55 = vadd.f32 %v1020_v43, %v1970_v19  ;;  %v1104_v39 = vadd.f32 %v1058_v48, %v1972_v20 }
 0x204   : > { %v1159_v60 = vadd.f32 %v1990_v29, %v1105_v32  ;;  %v1160_v12 = vadd.f32 %v1992_v31, %v1106_v35 }
 0x205   : > { %v1157_v4 = vadd.f32 %v2005_v52, %v1103_v55  ;;  %v1158_v36 = vadd.f32 %v2007_v14, %v1104_v39 }
 0x206   : > { %1203 = vst [vmem:[%s1999_s14 + $0x140] sm:$0x1] %v1159_v60 }
 0x207   : > { %1201 = vst [vmem:[%s1999_s14 + $0x130] sm:$0xff] %v1157_v4 }
 0x208   : > { %1202 = vst [vmem:[%s1999_s14 + $0x138] sm:$0xff] %v1158_v36 }
 0x209   : > { %1204 = vst [vmem:[%s1999_s14 + $0x148] sm:$0x1] %v1160_v12  ;;  %v949_v42 = vpop.f32.mrf.mxu0  ;;  %v987_v25 = vpop.f32.mrf.mxu1 }
 0x20a   : > { %v1023_v19 = vpop.f32.mrf.mxu2  ;;  %v1061_v20 = vpop.f32.mrf.mxu3 }
 0x20b   : > { %v1107_v38 = vadd.f32 %v1023_v19, %v1982_v33  ;;  %v1108_v61 = vadd.f32 %v1061_v20, %v1984_v30 }
 0x20d   : > { %v1161_v63 = vadd.f32 %v2005_v52, %v1107_v38  ;;  %v1162_v44 = vadd.f32 %v2007_v14, %v1108_v61 }
 0x20f   : > { %1205 = vst [vmem:[%s1999_s14 + $0x150] sm:$0x1] %v1161_v63 }
 0x210   : > { %1206 = vst [vmem:[%s1999_s14 + $0x158] sm:$0x1] %v1162_v44 }
 0x212   : > { %v1025_v29 = vpop.f32.mrf.mxu2  ;;  %v1063_v31 = vpop.f32.mrf.mxu3 }
 0x213 PF: > { %s13_s12 = sadd.s32 1, %s1389_s12  }
 0x214   : > { %p10_p4 = scmp.ge.s32.totalorder %s13_s12, 4  }
 0x216   :  { %12 = sbr.rel (!%p10_p4) target bundleno = 1 (0x1), region = 65 }

// kernel: expanding_block_forward.3
= control target key start
LH: loop header
LB: loop body
LE: loop exit
PB: predicated region body
PF: predicated region fallthrough
CT: control target
= control target key end

     0   :  { %s3845_s15 = smov 0   ;;  %s5861_s0 = inlined_call_operand.vmem [shape: f32[2,362,16], index: 0, kind: input, shape index: {}]   ;;  %s5862_s1 = inlined_call_operand.vmem [shape: bf16[9,16,128], index: 1, kind: input, shape index: {}]   ;;  %s5863_s2 = inlined_call_operand.vmem [shape: f32[1,128], index: 2, kind: input, shape index: {}]   ;;  %s5864_s3 = inlined_call_operand.vmem [shape: f32[324,1], index: 3, kind: input, shape index: {}]   ;;  %s5865_s4 = inlined_call_operand.vmem [shape: f32[2,324,128], index: 4, kind: output, shape index: {}]  }
   0x1 LB: > { %s3532_s16 = sadd.s32 4294967295, %s3817_s15   ;;  %p3536_p0 = scmp.ge.s32.totalorder %s3817_s15, 1  ;;  %s3817_s15 = sphi %s3845_s15, %s14_s15  }
   0x2   : > { %p162_p1 = scmp.lt.s32.totalorder %s3817_s15, 3 }
   0x4   : > { %p163_p2 = pnand %p3536_p0, %p162_p1 }
   0x6   : > { %166 = sbr.rel (%p163_p2) target bundleno = 1099 (0x44b), region = 36 }
   0xb   : > { %v3783_v0 = vld [vmem:[%s5862_s1 + $0x8] sm:$0xff]  ;;  %p188_p3 = scmp.lt.s32.totalorder %s3532_s16, 1  ;;  %v3784_v1 = vld [vmem:[%s5862_s1 + $0x10] sm:$0xff]  ;;  %v3782_v2 = vld [vmem:[%s5862_s1] sm:$0xff]  ;;  %vm334_vm0 = vcmask 130048   ;;  %vm3080_vm1 = vcmask 1043456  }
   0xc   : > { %v3786_v3 = vld [vmem:[%s5862_s1 + $0x20] sm:$0xff]  ;;  %3791 = vmatpush.bf16.msra.mxu1 %v3783_v0  ;;  %3792 = vmatpush.bf16.msra.mxu2 %v3783_v0  ;;  %v3785_v25 = vld [vmem:[%s5862_s1 + $0x18] sm:$0xff]  ;;  %v3788_v61 = vld [vmem:[%s5862_s1 + $0x30] sm:$0xff] }
   0xd   : > { %s6016_s16 = smov (!%p188_p3, %s3532_s16), 1  ;;  %405 = vmatpush.bf16.msra.mxu0 %v3783_v0  ;;  %3793 = vmatpush.bf16.msra.mxu3 %v3783_v0  ;;  %v3789_v62 = vld [vmem:[%s5862_s1 + $0x38] sm:$0xff]  ;;  %v3787_v63 = vld [vmem:[%s5862_s1 + $0x28] sm:$0xff] }
   0xe   : > { %s3794_s25 = smul.u32 368, %s6016_s16 }
   0xf   : > { %s3795_s30 = smul.u32 328, %s6016_s16 }
  0x10   : > { %834 = vmatpush.bf16.msrb.mxu2 %v3784_v1  ;;  %587 = vmatpush.bf16.msrb.mxu1 %v3782_v2  ;;  %s3871_s28 = scalar_lea.vmem %s5861_s0, %s3794_s25  ;;  %v3790_v2 = vld [vmem:[%s5862_s1 + $0x40] sm:$0xff] }
  0x11   : > { %1410 = vmatpush.bf16.msrb.mxu0 %v3786_v3  ;;  %v275_v4 = vld [vmem:[%s3871_s28 + $0x61] sm:$0xff]  ;;  %v276_v5 = vld [vmem:[%s3871_s28 + $0x69] sm:$0xff]  ;;  %v277_v16 = vld [vmem:[%s3871_s28 + $0x71] sm:$0xff]  ;;  %1122 = vmatpush.bf16.msrb.mxu3 %v3785_v25  ;;  %s5707_s7 = scalar_lea.vmem %s5865_s4, %s3795_s30 }
  0x12   : > { %v287_v6 = vld [vmem:[%s3871_s28 + $0xc1] sm:$0xff]  ;;  %v310_v7 = vpack.c.bf16 %v276_v5, %v275_v4  ;;  %v288_v8 = vld [vmem:[%s3871_s28 + $0xc9] sm:$0xff]  ;;  %v278_v17 = vld [vmem:[%s3871_s28 + $0x79] sm:$0xff] }
  0x13   : > { %v263_v9 = vld [vmem:[%s3871_s28 + $0x1] sm:$0xff]  ;;  %v264_v10 = vld [vmem:[%s3871_s28 + $0x9] sm:$0xff]  ;;  %v316_v11 = vpack.c.bf16 %v288_v8, %v287_v6  ;;  %v289_v18 = vld [vmem:[%s3871_s28 + $0xd1] sm:$0xff]  ;;  %v311_v22 = vpack.c.bf16 %v278_v17, %v277_v16 }
  0x14   : > { %v304_v12 = vpack.c.bf16 %v264_v10, %v263_v9  ;;  %3551 = vmatmul.msk.bf16.vlgmr.msra.gmra.mxu1 %vm334_vm0, %v310_v7  ;;  %v299_v13 = vld [vmem:[%s3871_s28 + $0x121] sm:$0xff]  ;;  %v300_v14 = vld [vmem:[%s3871_s28 + $0x129] sm:$0xff]  ;;  %v290_v19 = vld [vmem:[%s3871_s28 + $0xd9] sm:$0xff] }
  0x15   : > { %3557 = vmatmul.msk.bf16.vlgmr.msra.gmra.mxu2 %vm334_vm0, %v316_v11  ;;  %v322_v15 = vpack.c.bf16 %v300_v14, %v299_v13  ;;  %v265_v20 = vld [vmem:[%s3871_s28 + $0x11] sm:$0xff]  ;;  %v266_v21 = vld [vmem:[%s3871_s28 + $0x19] sm:$0xff]  ;;  %v317_v23 = vpack.c.bf16 %v290_v19, %v289_v18  ;;  %v279_v29 = vld [vmem:[%s3871_s28 + $0x81] sm:$0xff]  ;;  %1698 = vmatpush.bf16.msra.mxu1 %v3787_v63 }
  0x16   : > { %3545 = vmatmul.msk.bf16.vlgmr.msra.gmra.mxu0 %vm334_vm0, %v304_v12  ;;  %v305_v24 = vpack.c.bf16 %v266_v21, %v265_v20  ;;  %v301_v26 = vld [vmem:[%s3871_s28 + $0x131] sm:$0xff]  ;;  %v302_v27 = vld [vmem:[%s3871_s28 + $0x139] sm:$0xff]  ;;  %v280_v30 = vld [vmem:[%s3871_s28 + $0x89] sm:$0xff]  ;;  %1986 = vmatpush.bf16.msra.mxu2 %v3788_v61 }
  0x17   : > { %3563 = vmatmul.msk.bf16.vlgmr.msra.gmra.mxu3 %vm334_vm0, %v322_v15  ;;  %v323_v28 = vpack.c.bf16 %v302_v27, %v301_v26  ;;  %v291_v31 = vld [vmem:[%s3871_s28 + $0xe1] sm:$0xff]  ;;  %v292_v32 = vld [vmem:[%s3871_s28 + $0xe9] sm:$0xff]  ;;  %v312_v35 = vpack.c.bf16 %v280_v30, %v279_v29  ;;  %v281_v40 = vld [vmem:[%s3871_s28 + $0x91] sm:$0xff]  ;;  %2562 = vmatpush.bf16.msra.mxu0 %v3790_v2 }
  0x18   : > { %v267_v33 = vld [vmem:[%s3871_s28 + $0x21] sm:$0xff]  ;;  %v268_v34 = vld [vmem:[%s3871_s28 + $0x29] sm:$0xff]  ;;  %v318_v36 = vpack.c.bf16 %v292_v32, %v291_v31  ;;  %v282_v41 = vld [vmem:[%s3871_s28 + $0x99] sm:$0xff]  ;;  %2274 = vmatpush.bf16.msra.mxu3 %v3789_v62 }
  0x19   : > { %v306_v37 = vpack.c.bf16 %v268_v34, %v267_v33  ;;  %v303_v38 = vld [vmem:[%s3871_s28 + $0x141] sm:$0xf]  ;;  %v293_v42 = vld [vmem:[%s3871_s28 + $0xf1] sm:$0xff]  ;;  %v294_v43 = vld [vmem:[%s3871_s28 + $0xf9] sm:$0xff]  ;;  %v313_v46 = vpack.c.bf16 %v282_v41, %v281_v40 }
  0x1a   : > { %v324_v39 = vpack.c.bf16 %v303_v38, %v303_v38  ;;  %v269_v44 = vld [vmem:[%s3871_s28 + $0x31] sm:$0xff]  ;;  %v270_v45 = vld [vmem:[%s3871_s28 + $0x39] sm:$0xff]  ;;  %v319_v47 = vpack.c.bf16 %v294_v43, %v293_v42  ;;  %v283_v52 = vld [vmem:[%s3871_s28 + $0xa1] sm:$0xff] }
  0x1b   : > { %v307_v48 = vpack.c.bf16 %v270_v45, %v269_v44  ;;  %v981_v49 = vld [vmem:[%s3871_s28 + $0x12] sm:$0xff]  ;;  %v982_v50 = vld [vmem:[%s3871_s28 + $0x1a] sm:$0xff]  ;;  %v284_v53 = vld [vmem:[%s3871_s28 + $0xa9] sm:$0xff] }
  0x1c   : > { %v3922_v51 = vpack.c.bf16 %v982_v50, %v981_v49  ;;  %v295_v54 = vld [vmem:[%s3871_s28 + $0x101] sm:$0xff]  ;;  %v296_v55 = vld [vmem:[%s3871_s28 + $0x109] sm:$0xff]  ;;  %v314_v58 = vpack.c.bf16 %v284_v53, %v283_v52  ;;  %v285_v4 = vld [vmem:[%s3871_s28 + $0xb1] sm:$0xff] }
  0x1d   : > { %v271_v56 = vld [vmem:[%s3871_s28 + $0x41] sm:$0xff]  ;;  %v272_v57 = vld [vmem:[%s3871_s28 + $0x49] sm:$0xff]  ;;  %v320_v59 = vpack.c.bf16 %v296_v55, %v295_v54  ;;  %v286_v5 = vld [vmem:[%s3871_s28 + $0xb9] sm:$0xff] }
  0x1e   : > { %v308_v60 = vpack.c.bf16 %v272_v57, %v271_v56  ;;  %v983_v0 = vld [vmem:[%s3871_s28 + $0x22] sm:$0xff]  ;;  %v984_v1 = vld [vmem:[%s3871_s28 + $0x2a] sm:$0xff]  ;;  %v298_v7 = vld [vmem:[%s3871_s28 + $0x119] sm:$0xff]  ;;  %v315_v10 = vpack.c.bf16 %v286_v5, %v285_v4 }
  0x1f   : > { %v1023_v3 = vpack.c.bf16 %v984_v1, %v983_v0  ;;  %v297_v6 = vld [vmem:[%s3871_s28 + $0x111] sm:$0xff]  ;;  %v274_v9 = vld [vmem:[%s3871_s28 + $0x59] sm:$0xff]  ;;  %v200_v17 = vld [vmem:[%s3871_s28 + $0x8] sm:$0xff] }
  0x20   : > { %v273_v8 = vld [vmem:[%s3871_s28 + $0x51] sm:$0xff]  ;;  %v321_v11 = vpack.c.bf16 %v298_v7, %v297_v6  ;;  %v986_v14 = vld [vmem:[%s3871_s28 + $0x3a] sm:$0xff]  ;;  %v693_v18 = vld [vmem:[%s3871_s28 + $0x2] sm:$0xff] }
  0x21   : > { %v309_v12 = vpack.c.bf16 %v274_v9, %v273_v8  ;;  %v985_v13 = vld [vmem:[%s3871_s28 + $0x32] sm:$0xff]  ;;  %v199_v16 = vld [vmem:[%s3871_s28] sm:$0xff]  ;;  %v694_v19 = vld [vmem:[%s3871_s28 + $0xa] sm:$0xff] }
  0x22   : > { %v1024_v15 = vpack.c.bf16 %v986_v14, %v985_v13  ;;  %v1269_v20 = vld [vmem:[%s3871_s28 + $0x13] sm:$0xff]  ;;  %v1270_v21 = vld [vmem:[%s3871_s28 + $0x1b] sm:$0xff]  ;;  %v988_v26 = vld [vmem:[%s3871_s28 + $0x4a] sm:$0xff] }
  0x23   : > { %v987_v25 = vld [vmem:[%s3871_s28 + $0x42] sm:$0xff]  ;;  %v202_v29 = vld [vmem:[%s3871_s28 + $0x18] sm:$0xff]  ;;  %v1272_v31 = vld [vmem:[%s3871_s28 + $0x2b] sm:$0xff] }
  0x24   : > { %3552 = vmatmul.msk.bf16.gmra.mxu1 %vm334_vm0, %v311_v22  ;;  %v240_v22 = vpack.c.bf16 %v200_v17, %v199_v16  ;;  %v3973_v27 = vpack.c.bf16 %v988_v26, %v987_v25  ;;  %v1271_v30 = vld [vmem:[%s3871_s28 + $0x23] sm:$0xff]  ;;  %v989_v34 = vld [vmem:[%s3871_s28 + $0x52] sm:$0xff]  ;;  %v1274_v40 = vld [vmem:[%s3871_s28 + $0x3b] sm:$0xff] }
  0x25   : > { %3558 = vmatmul.msk.bf16.gmra.mxu2 %vm334_vm0, %v317_v23  ;;  %v734_v23 = vpack.c.bf16 %v694_v19, %v693_v18  ;;  %v1311_v33 = vpack.c.bf16 %v1272_v31, %v1271_v30  ;;  %v204_v38 = vld [vmem:[%s3871_s28 + $0x28] sm:$0xff]  ;;  %v206_v52 = vld [vmem:[%s3871_s28 + $0x38] sm:$0xff]  ;;  %v207_v4 = vld [vmem:[%s3871_s28 + $0x40] sm:$0xff] }
  0x26   : > { %3546 = vmatmul.msk.bf16.gmra.mxu0 %vm334_vm0, %v305_v24  ;;  %v1310_v24 = vpack.c.bf16 %v1270_v21, %v1269_v20  ;;  %v992_v49 = vld [vmem:[%s3871_s28 + $0x6a] sm:$0xff]  ;;  %v993_v1 = vld [vmem:[%s3871_s28 + $0x72] sm:$0xff]  ;;  %v994_v2 = vld [vmem:[%s3871_s28 + $0x7a] sm:$0xff] }
  0x27   : > { %3564 = vmatmul.msk.bf16.gmra.mxu3 %vm334_vm0, %v323_v28  ;;  %v201_v28 = vld [vmem:[%s3871_s28 + $0x10] sm:$0xff]  ;;  %v1275_v53 = vld [vmem:[%s3871_s28 + $0x43] sm:$0xff]  ;;  %v1278_v7 = vld [vmem:[%s3871_s28 + $0x5b] sm:$0xff] }
  0x28   : > { %v241_v32 = vpack.c.bf16 %v202_v29, %v201_v28  ;;  %v1276_v54 = vld [vmem:[%s3871_s28 + $0x4b] sm:$0xff]  ;;  %v1277_v6 = vld [vmem:[%s3871_s28 + $0x53] sm:$0xff]  ;;  %v995_v18 = vld [vmem:[%s3871_s28 + $0x82] sm:$0xff] }
  0x29   : > { %v208_v5 = vld [vmem:[%s3871_s28 + $0x48] sm:$0xff]  ;;  %v209_v21 = vld [vmem:[%s3871_s28 + $0x50] sm:$0xff] }
  0x2a   : > { %v244_v9 = vpack.c.bf16 %v208_v5, %v207_v4  ;;  %v996_v19 = vld [vmem:[%s3871_s28 + $0x8a] sm:$0xff] }
  0x2b   : > { %v4069_v20 = vpack.c.bf16 %v996_v19, %v995_v18  ;;  %v1000_v4 = vld [vmem:[%s3871_s28 + $0xaa] sm:$0xff] }
  0x34   : > { %3553 = vmatmul.msk.bf16.gmra.mxu1 %vm334_vm0, %v312_v35  ;;  %v990_v35 = vld [vmem:[%s3871_s28 + $0x5a] sm:$0xff] }
  0x35   : > { %3559 = vmatmul.msk.bf16.gmra.mxu2 %vm334_vm0, %v318_v36  ;;  %v3987_v36 = vpack.c.bf16 %v990_v35, %v989_v34  ;;  %v997_v35 = vld [vmem:[%s3871_s28 + $0x92] sm:$0xff] }
  0x36   : > { %3547 = vmatmul.msk.bf16.gmra.mxu0 %vm334_vm0, %v306_v37  ;;  %v203_v37 = vld [vmem:[%s3871_s28 + $0x20] sm:$0xff] }
  0x37   : > { %3565 = vmatmul.msk.bf16.gmra.mxu3 %vm334_vm0, %v324_v39  ;;  %v1273_v39 = vld [vmem:[%s3871_s28 + $0x33] sm:$0xff]  ;;  %v242_v41 = vpack.c.bf16 %v204_v38, %v203_v37 }
  0x38   : > { %v1312_v43 = vpack.c.bf16 %v1274_v40, %v1273_v39  ;;  %v998_v37 = vld [vmem:[%s3871_s28 + $0x9a] sm:$0xff]  ;;  %v212_v40 = vld [vmem:[%s3871_s28 + $0x68] sm:$0xff] }
  0x39   : > { %v4097_v38 = vpack.c.bf16 %v998_v37, %v997_v35  ;;  %v211_v39 = vld [vmem:[%s3871_s28 + $0x60] sm:$0xff]  ;;  %v1001_v35 = vld [vmem:[%s3871_s28 + $0xb2] sm:$0xff] }
  0x3a   : > { %v1002_v37 = vld [vmem:[%s3871_s28 + $0xba] sm:$0xff] }
  0x44   : > { %3554 = vmatmul.msk.bf16.gmra.mxu1 %vm334_vm0, %v313_v46 }
  0x45   : > { %3560 = vmatmul.msk.bf16.gmra.mxu2 %vm334_vm0, %v319_v47 }
  0x46   : > { %3548 = vmatmul.msk.bf16.gmra.mxu0 %vm334_vm0, %v307_v48  ;;  %v991_v48 = vld [vmem:[%s3871_s28 + $0x62] sm:$0xff] }
  0x47   : > { %3624 = vmatmul.msk.bf16.vlgmr.msrb.gmra.mxu3 %vm334_vm0, %v3922_v51  ;;  %v4010_v50 = vpack.c.bf16 %v992_v49, %v991_v48  ;;  %v246_v48 = vpack.c.bf16 %v212_v40, %v211_v39  ;;  %v4153_v39 = vpack.c.bf16 %v1002_v37, %v1001_v35  ;;  %v215_v40 = vld [vmem:[%s3871_s28 + $0x80] sm:$0xff] }
  0x54   : > { %3555 = vmatmul.msk.bf16.gmra.mxu1 %vm334_vm0, %v314_v58  ;;  %v1313_v58 = vpack.c.bf16 %v1276_v54, %v1275_v53 }
  0x55   : > { %3561 = vmatmul.msk.bf16.gmra.mxu2 %vm334_vm0, %v320_v59 }
  0x56   : > { %3549 = vmatmul.msk.bf16.gmra.mxu0 %vm334_vm0, %v308_v60 }
  0x57   : > { %3625 = vmatmul.msk.bf16.gmra.mxu3 %vm334_vm0, %v1023_v3 }
  0x64   : > { %3556 = vmatmul.msk.bf16.gmra.mxu1 %vm334_vm0, %v315_v10 }
  0x65   : > { %3562 = vmatmul.msk.bf16.gmra.mxu2 %vm334_vm0, %v321_v11  ;;  %v1314_v11 = vpack.c.bf16 %v1278_v7, %v1277_v6  ;;  %v213_v6 = vld [vmem:[%s3871_s28 + $0x70] sm:$0xff]  ;;  %v214_v7 = vld [vmem:[%s3871_s28 + $0x78] sm:$0xff] }
  0x66   : > { %3550 = vmatmul.msk.bf16.gmra.mxu0 %vm334_vm0, %v309_v12  ;;  %v247_v18 = vpack.c.bf16 %v214_v7, %v213_v6 }
  0x67   : > { %3626 = vmatmul.msk.bf16.gmra.mxu3 %vm334_vm0, %v1024_v15 }
  0x74   : > { %3570 = vmatmul.msk.bf16.vlgmr.msrb.gmra.mxu1 %vm334_vm0, %v240_v22  ;;  %v210_v22 = vld [vmem:[%s3871_s28 + $0x58] sm:$0xff] }
  0x75   : > { %3597 = vmatmul.msk.bf16.vlgmr.msrb.gmra.mxu2 %vm334_vm0, %v734_v23  ;;  %v1279_v23 = vld [vmem:[%s3871_s28 + $0x63] sm:$0xff]  ;;  %v245_v26 = vpack.c.bf16 %v210_v22, %v209_v21 }
  0x76   : > { %3651 = vmatmul.msk.bf16.vlgmr.msrb.gmra.mxu0 %vm334_vm0, %v1310_v24  ;;  %v1280_v24 = vld [vmem:[%s3871_s28 + $0x6b] sm:$0xff] }
  0x77   : > { %3627 = vmatmul.msk.bf16.gmra.mxu3 %vm334_vm0, %v3973_v27  ;;  %v1315_v28 = vpack.c.bf16 %v1280_v24, %v1279_v23 }
  0x84   : > { %3571 = vmatmul.msk.bf16.gmra.mxu1 %vm334_vm0, %v241_v32 }
  0x85   : > { %3598 = vmatmul.msk.bf16.gmra.mxu2 %vm334_vm0, %v3922_v51  ;;  %v205_v51 = vld [vmem:[%s3871_s28 + $0x30] sm:$0xff] }
  0x86   : > { %3652 = vmatmul.msk.bf16.gmra.mxu0 %vm334_vm0, %v1311_v33  ;;  %v243_v56 = vpack.c.bf16 %v206_v52, %v205_v51 }
  0x87   : > { %3628 = vmatmul.msk.bf16.gmra.mxu3 %vm334_vm0, %v3987_v36 }
  0x91   : > { %v3995_v42 = vpop.f32.mrf.mxu1 }
  0x93   : > { %v3997_v44 = vpop.f32.mrf.mxu0 }
  0x94   : > { %3572 = vmatmul.msk.bf16.gmra.mxu1 %vm334_vm0, %v242_v41  ;;  %v1282_v41 = vld [vmem:[%s3871_s28 + $0x7b] sm:$0xff] }
  0x95   : > { %3599 = vmatmul.msk.bf16.gmra.mxu2 %vm334_vm0, %v1023_v3  ;;  %v4039_v3 = vpack.c.bf16 %v994_v2, %v993_v1  ;;  %v999_v2 = vld [vmem:[%s3871_s28 + $0xa2] sm:$0xff] }
  0x96   : > { %3653 = vmatmul.msk.bf16.gmra.mxu0 %vm334_vm0, %v1312_v43  ;;  %v4125_v5 = vpack.c.bf16 %v1000_v4, %v999_v2 }
  0x97   : > { %3629 = vmatmul.msk.bf16.gmra.mxu3 %vm334_vm0, %v4010_v50 }
  0x98   : > { %v4002_v45 = vpop.f32.mrf.mxu2 }
  0x99   : > { %v4004_v46 = vpop.f32.mrf.mxu1 }
  0x9a   : > { %v4022_v59 = vpop.f32.mrf.mxu3 }
  0x9b   : > { %v4006_v47 = vpop.f32.mrf.mxu0 }
  0xa0   : > { %v4018_v55 = vpop.f32.mrf.mxu2 }
  0xa1   : > { %v4020_v57 = vpop.f32.mrf.mxu1 }
  0xa2   : > { %v4033_v63 = vpop.f32.mrf.mxu3 }
  0xa3   : > { %v4024_v60 = vpop.f32.mrf.mxu0 }
  0xa4   : > { %3573 = vmatmul.msk.bf16.gmra.mxu1 %vm334_vm0, %v243_v56 }
  0xa5   : > { %3600 = vmatmul.msk.bf16.gmra.mxu2 %vm334_vm0, %v1024_v15 }
  0xa6   : > { %3654 = vmatmul.msk.bf16.gmra.mxu0 %vm334_vm0, %v1313_v58 }
  0xa7   : > { %3630 = vmatmul.msk.bf16.gmra.mxu3 %vm334_vm0, %v4039_v3 }
  0xa8   : > { %v4029_v61 = vpop.f32.mrf.mxu2 }
  0xa9   : > { %v4031_v62 = vpop.f32.mrf.mxu1 }
  0xaa   : > { %v4051_v12 = vpop.f32.mrf.mxu3 }
  0xab   : > { %v4035_v0 = vpop.f32.mrf.mxu0  ;;  %5907 = vst [vmem:[#allocation2_spill] sm:$0xff] %v4051_v12  ;;  %v1288_v12 = vld [vmem:[%s3871_s28 + $0xab] sm:$0xff] }
  0xb0   : > { %v4047_v8 = vpop.f32.mrf.mxu2 }
  0xb1   : > { %v4049_v10 = vpop.f32.mrf.mxu1 }
  0xb2   : > { %v4063_v16 = vpop.f32.mrf.mxu3 }
  0xb3   : > { %v4053_v13 = vpop.f32.mrf.mxu0  ;;  %5908 = vst [vmem:[#allocation3_spill] sm:$0xff] %v4063_v16 }
  0xb4   : > { %3574 = vmatmul.msk.bf16.gmra.mxu1 %vm334_vm0, %v244_v9  ;;  %v1283_v9 = vld [vmem:[%s3871_s28 + $0x83] sm:$0xff] }
  0xb5   : > { %3601 = vmatmul.msk.bf16.gmra.mxu2 %vm334_vm0, %v3973_v27 }
  0xb6   : > { %3655 = vmatmul.msk.bf16.gmra.mxu0 %vm334_vm0, %v1314_v11  ;;  %v1284_v11 = vld [vmem:[%s3871_s28 + $0x8b] sm:$0xff] }
  0xb7   : > { %3631 = vmatmul.msk.bf16.gmra.mxu3 %vm334_vm0, %v4069_v20  ;;  %v1317_v21 = vpack.c.bf16 %v1284_v11, %v1283_v9 }
  0xb8   : > { %v4059_v14 = vpop.f32.mrf.mxu2 }
  0xb9   : > { %v4061_v15 = vpop.f32.mrf.mxu1 }
  0xba   : > { %v4081_v29 = vpop.f32.mrf.mxu3 }
  0xbb   : > { %v4065_v17 = vpop.f32.mrf.mxu0  ;;  %5909 = vst [vmem:[#allocation4_spill] sm:$0xff] %v4081_v29  ;;  %v218_v29 = vld [vmem:[%s3871_s28 + $0x98] sm:$0xff] }
  0xc0   : > { %v4077_v25 = vpop.f32.mrf.mxu2 }
  0xc1   : > { %v4079_v27 = vpop.f32.mrf.mxu1 }
  0xc2   : > { %v509_v33 = vpop.f32.mrf.mxu3 }
  0xc3   : > { %v4083_v30 = vpop.f32.mrf.mxu0 }
  0xc4   : > { %3575 = vmatmul.msk.bf16.gmra.mxu1 %vm334_vm0, %v245_v26 }
  0xc5   : > { %3602 = vmatmul.msk.bf16.gmra.mxu2 %vm334_vm0, %v3987_v36  ;;  %v1281_v36 = vld [vmem:[%s3871_s28 + $0x73] sm:$0xff] }
  0xc6   : > { %3656 = vmatmul.msk.bf16.gmra.mxu0 %vm334_vm0, %v1315_v28  ;;  %v1316_v51 = vpack.c.bf16 %v1282_v41, %v1281_v36  ;;  %v216_v36 = vld [vmem:[%s3871_s28 + $0x88] sm:$0xff]  ;;  %v1285_v41 = vld [vmem:[%s3871_s28 + $0x93] sm:$0xff] }
  0xc7   : > { %3632 = vmatmul.msk.bf16.gmra.mxu3 %vm334_vm0, %v4097_v38 }
  0xc8   : > { %v4089_v31 = vpop.f32.mrf.mxu2 }
  0xc9   : > { %v4091_v32 = vpop.f32.mrf.mxu1 }
  0xca   : > { %v1124_v53 = vpop.f32.mrf.mxu3 }
  0xcb   : > { %v4093_v34 = vpop.f32.mrf.mxu0 }
  0xd0   : > { %v4105_v43 = vpop.f32.mrf.mxu2 }
  0xd1   : > { %v4107_v49 = vpop.f32.mrf.mxu1 }
  0xd2   : > { %v4121_v1 = vpop.f32.mrf.mxu3 }
  0xd3   : > { %v4109_v52 = vpop.f32.mrf.mxu0 }
  0xd4   : > { %3576 = vmatmul.msk.bf16.gmra.mxu1 %vm334_vm0, %v246_v48  ;;  %v1286_v48 = vld [vmem:[%s3871_s28 + $0x9b] sm:$0xff] }
  0xd5   : > { %3603 = vmatmul.msk.bf16.gmra.mxu2 %vm334_vm0, %v4010_v50  ;;  %v1318_v4 = vpack.c.bf16 %v1286_v48, %v1285_v41  ;;  %v1004_v41 = vld [vmem:[%s3871_s28 + $0xca] sm:$0xff] }
  0xd6   : > { %3657 = vmatmul.msk.bf16.gmra.mxu0 %vm334_vm0, %v1316_v51  ;;  %v248_v51 = vpack.c.bf16 %v216_v36, %v215_v40  ;;  %v1003_v36 = vld [vmem:[%s3871_s28 + $0xc2] sm:$0xff] }
  0xd7   : > { %3633 = vmatmul.msk.bf16.gmra.mxu3 %vm334_vm0, %v4125_v5  ;;  %v4174_v48 = vpack.c.bf16 %v1004_v41, %v1003_v36 }
  0xd8   : > { %v4115_v54 = vpop.f32.mrf.mxu2 }
  0xd9   : > { %v4117_v56 = vpop.f32.mrf.mxu1 }
  0xda   : > { %v1129_v23 = vpop.f32.mrf.mxu3 }
  0xdb   : > { %v4119_v58 = vpop.f32.mrf.mxu0 }
  0xe0   : > { %v4133_v50 = vpop.f32.mrf.mxu2 }
  0xe1   : > { %v4135_v19 = vpop.f32.mrf.mxu1 }
  0xe2   : > { %v4149_v33 = vpop.f32.mrf.mxu3 }
  0xe3   : > { %v4137_v22 = vpop.f32.mrf.mxu0 }
  0xe4   : > { %3577 = vmatmul.msk.bf16.gmra.mxu1 %vm334_vm0, %v247_v18 }
  0xe5   : > { %3604 = vmatmul.msk.bf16.gmra.mxu2 %vm334_vm0, %v4039_v3 }
  0xe6   : > { %3658 = vmatmul.msk.bf16.gmra.mxu0 %vm334_vm0, %v1317_v21 }
  0xe7   : > { %3634 = vmatmul.msk.bf16.gmra.mxu3 %vm334_vm0, %v4153_v39 }
  0xe8   : > { %v4143_v24 = vpop.f32.mrf.mxu2 }
  0xe9   : > { %v4145_v26 = vpop.f32.mrf.mxu1 }
  0xea   : > { %v4163_v7 = vpop.f32.mrf.mxu3 }
  0xeb   : > { %v4147_v28 = vpop.f32.mrf.mxu0 }
  0xf0   : > { %v4161_v3 = vpop.f32.mrf.mxu2 }
  0xf1   : > { %v589_v2 = vpop.f32.mrf.mxu1 }
  0xf2   : > { %v590_v9 = vadd.f32 %v589_v2, %v3997_v44  ;;  %v4170_v37 = vpop.f32.mrf.mxu3 }
  0xf3   : > { %v1412_v6 = vpop.f32.mrf.mxu0 }
  0xf4   : > { %3578 = vmatmul.msk.bf16.gmra.mxu1 %vm334_vm0, %v248_v51  ;;  %v217_v51 = vld [vmem:[%s3871_s28 + $0x90] sm:$0xff] }
  0xf5   : > { %3605 = vmatmul.msk.bf16.gmra.mxu2 %vm334_vm0, %v4069_v20  ;;  %v1287_v20 = vld [vmem:[%s3871_s28 + $0xa3] sm:$0xff] }
  0xf6   : > { %3659 = vmatmul.msk.bf16.gmra.mxu0 %vm334_vm0, %v1318_v4  ;;  %v249_v4 = vpack.c.bf16 %v218_v29, %v217_v51 }
  0xf7   : > { %3635 = vmatmul.msk.bf16.gmra.mxu3 %vm334_vm0, %v4174_v48 }
  0xf8   : > { %v836_v11 = vpop.f32.mrf.mxu2 }
  0xf9   : > { %v940_v18 = vadd.f32 %v836_v11, %v590_v9  ;;  %v591_v21 = vpop.f32.mrf.mxu1 }
  0xfa   : > { %v592_v44 = vadd.f32 %v591_v21, %v4006_v47  ;;  %v4185_v36 = vpop.f32.mrf.mxu3 }
  0xfb   : > { %v1414_v35 = vpop.f32.mrf.mxu0  ;;  %v1228_v40 = vadd.f32 %v1124_v53, %v940_v18  ;;  %v1319_v53 = vpack.c.bf16 %v1288_v12, %v1287_v20  ;;  %v1005_v20 = vld [vmem:[%s3871_s28 + $0xd2] sm:$0xff] }
  0xfd   : > { %v4178_v16 = vadd.f32 %v1412_v6, %v1228_v40 }
 0x100   : > { %v838_v2 = vpop.f32.mrf.mxu2 }
 0x101   : > { %v941_v9 = vadd.f32 %v838_v2, %v592_v44  ;;  %v594_v11 = vpop.f32.mrf.mxu1  ;;  %v1006_v44 = vld [vmem:[%s3871_s28 + $0xda] sm:$0xff] }
 0x102   : > { %v595_v12 = vadd.f32 %v594_v11, %v4024_v60  ;;  %v4195_v51 = vpop.f32.mrf.mxu3  ;;  %v4199_v2 = vpack.c.bf16 %v1006_v44, %v1005_v20 }
 0x103   : > { %v1417_v18 = vpop.f32.mrf.mxu0  ;;  %v1229_v6 = vadd.f32 %v4121_v1, %v941_v9 }
 0x104   : > { %3579 = vmatmul.msk.bf16.gmra.mxu1 %vm334_vm0, %v249_v4  ;;  %v220_v4 = vld [vmem:[%s3871_s28 + $0xa8] sm:$0xff] }
 0x105   : > { %3606 = vmatmul.msk.bf16.gmra.mxu2 %vm334_vm0, %v4097_v38  ;;  %v4192_v47 = vadd.f32 %v1414_v35, %v1229_v6  ;;  %v219_v38 = vld [vmem:[%s3871_s28 + $0xa0] sm:$0xff] }
 0x106   : > { %3660 = vmatmul.msk.bf16.gmra.mxu0 %vm334_vm0, %v1319_v53  ;;  %v1289_v53 = vld [vmem:[%s3871_s28 + $0xb3] sm:$0xff]  ;;  %v1290_v35 = vld [vmem:[%s3871_s28 + $0xbb] sm:$0xff]  ;;  %v250_v6 = vpack.c.bf16 %v220_v4, %v219_v38 }
 0x107   : > { %3636 = vmatmul.msk.bf16.gmra.mxu3 %vm334_vm0, %v4199_v2 }
 0x108   : > { %v841_v29 = vpop.f32.mrf.mxu2 }
 0x109   : > { %v942_v21 = vadd.f32 %v841_v29, %v595_v12  ;;  %v596_v40 = vpop.f32.mrf.mxu1 }
 0x10a   : > { %v597_v60 = vadd.f32 %v596_v40, %v4035_v0  ;;  %v4210_v20 = vpop.f32.mrf.mxu3 }
 0x10b   : > { %v1419_v41 = vpop.f32.mrf.mxu0  ;;  %v1230_v1 = vadd.f32 %v1129_v23, %v942_v21  ;;  %v1320_v23 = vpack.c.bf16 %v1290_v35, %v1289_v53  ;;  %v1007_v35 = vld [vmem:[%s3871_s28 + $0xe2] sm:$0xff] }
 0x10d   : > { %v4203_v9 = vadd.f32 %v1417_v18, %v1230_v1 }
 0x110   : > { %v843_v11 = vpop.f32.mrf.mxu2 }
 0x111   : > { %v943_v12 = vadd.f32 %v843_v11, %v597_v60  ;;  %v599_v29 = vpop.f32.mrf.mxu1  ;;  %v1008_v60 = vld [vmem:[%s3871_s28 + $0xea] sm:$0xff] }
 0x112   : > { %v600_v40 = vadd.f32 %v599_v29, %v4053_v13  ;;  %v4220_v53 = vpop.f32.mrf.mxu3  ;;  %v4225_v11 = vpack.c.bf16 %v1008_v60, %v1007_v35 }
 0x113   : > { %v1422_v21 = vpop.f32.mrf.mxu0  ;;  %v1231_v18 = vadd.f32 %v4149_v33, %v943_v12 }
 0x114   : > { %3580 = vmatmul.msk.bf16.gmra.mxu1 %vm334_vm0, %v250_v6  ;;  %v222_v6 = vld [vmem:[%s3871_s28 + $0xb8] sm:$0xff] }
 0x115   : > { %3607 = vmatmul.msk.bf16.gmra.mxu2 %vm334_vm0, %v4125_v5  ;;  %v4217_v0 = vadd.f32 %v1419_v41, %v1231_v18  ;;  %v221_v5 = vld [vmem:[%s3871_s28 + $0xb0] sm:$0xff]  ;;  %v1291_v41 = vld [vmem:[%s3871_s28 + $0xc3] sm:$0xff] }
 0x116   : > { %3661 = vmatmul.msk.bf16.gmra.mxu0 %vm334_vm0, %v1320_v23  ;;  %v1292_v23 = vld [vmem:[%s3871_s28 + $0xcb] sm:$0xff]  ;;  %v251_v18 = vpack.c.bf16 %v222_v6, %v221_v5 }
 0x117   : > { %3637 = vmatmul.msk.bf16.gmra.mxu3 %vm334_vm0, %v4225_v11 }
 0x118   : > { %v846_v1 = vpop.f32.mrf.mxu2 }
 0x119   : > { %v944_v44 = vadd.f32 %v846_v1, %v600_v40  ;;  %v601_v38 = vpop.f32.mrf.mxu1 }
 0x11a   : > { %v602_v13 = vadd.f32 %v601_v38, %v4065_v17  ;;  %v4236_v35 = vpop.f32.mrf.mxu3 }
 0x11b   : > { %v1424_v4 = vpop.f32.mrf.mxu0  ;;  %v1232_v33 = vadd.f32 %v4163_v7, %v944_v44  ;;  %v1321_v7 = vpack.c.bf16 %v1292_v23, %v1291_v41  ;;  %v1009_v23 = vld [vmem:[%s3871_s28 + $0xf2] sm:$0xff] }
 0x11d   : > { %v4229_v12 = vadd.f32 %v1422_v21, %v1232_v33 }
 0x120   : > { %v848_v29 = vpop.f32.mrf.mxu2 }
 0x121   : > { %v945_v40 = vadd.f32 %v848_v29, %v602_v13  ;;  %v604_v1 = vpop.f32.mrf.mxu1  ;;  %v1010_v13 = vld [vmem:[%s3871_s28 + $0xfa] sm:$0xff] }
 0x122   : > { %v605_v38 = vadd.f32 %v604_v1, %v4083_v30  ;;  %v4246_v41 = vpop.f32.mrf.mxu3  ;;  %v4251_v29 = vpack.c.bf16 %v1010_v13, %v1009_v23 }
 0x123   : > { %v1427_v44 = vpop.f32.mrf.mxu0  ;;  %v1233_v21 = vadd.f32 %v4170_v37, %v945_v40 }
 0x124   : > { %3581 = vmatmul.msk.bf16.gmra.mxu1 %vm334_vm0, %v251_v18  ;;  %v224_v18 = vld [vmem:[%s3871_s28 + $0xc8] sm:$0xff] }
 0x125   : > { %3608 = vmatmul.msk.bf16.gmra.mxu2 %vm334_vm0, %v4153_v39  ;;  %v4243_v17 = vadd.f32 %v1424_v4, %v1233_v21  ;;  %v223_v39 = vld [vmem:[%s3871_s28 + $0xc0] sm:$0xff]  ;;  %v1293_v4 = vld [vmem:[%s3871_s28 + $0xd3] sm:$0xff] }
 0x126   : > { %3662 = vmatmul.msk.bf16.gmra.mxu0 %vm334_vm0, %v1321_v7  ;;  %v1294_v7 = vld [vmem:[%s3871_s28 + $0xdb] sm:$0xff]  ;;  %v252_v21 = vpack.c.bf16 %v224_v18, %v223_v39 }
 0x127   : > { %3638 = vmatmul.msk.bf16.gmra.mxu3 %vm334_vm0, %v4251_v29 }
 0x128   : > { %v851_v33 = vpop.f32.mrf.mxu2 }
 0x129   : > { %v946_v60 = vadd.f32 %v851_v33, %v605_v38  ;;  %v606_v5 = vpop.f32.mrf.mxu1 }
 0x12a   : > { %v607_v30 = vadd.f32 %v606_v5, %v4093_v34  ;;  %v4262_v23 = vpop.f32.mrf.mxu3 }
 0x12b   : > { %v1429_v6 = vpop.f32.mrf.mxu0  ;;  %v1234_v37 = vadd.f32 %v4185_v36, %v946_v60  ;;  %v1322_v36 = vpack.c.bf16 %v1294_v7, %v1293_v4  ;;  %v1011_v7 = vld [vmem:[%s3871_s28 + $0x102] sm:$0xff] }
 0x12d   : > { %v4255_v40 = vadd.f32 %v1427_v44, %v1234_v37 }
 0x130   : > { %v853_v1 = vpop.f32.mrf.mxu2 }
 0x131   : > { %v947_v38 = vadd.f32 %v853_v1, %v607_v30  ;;  %v609_v33 = vpop.f32.mrf.mxu1  ;;  %v1012_v30 = vld [vmem:[%s3871_s28 + $0x10a] sm:$0xff] }
 0x132   : > { %v610_v5 = vadd.f32 %v609_v33, %v4109_v52  ;;  %v4272_v4 = vpop.f32.mrf.mxu3  ;;  %v4277_v1 = vpack.c.bf16 %v1012_v30, %v1011_v7 }
 0x133   : > { %v1432_v60 = vpop.f32.mrf.mxu0  ;;  %v1235_v44 = vadd.f32 %v4195_v51, %v947_v38 }
 0x134   : > { %3582 = vmatmul.msk.bf16.gmra.mxu1 %vm334_vm0, %v252_v21  ;;  %v226_v21 = vld [vmem:[%s3871_s28 + $0xd8] sm:$0xff] }
 0x135   : > { %3609 = vmatmul.msk.bf16.gmra.mxu2 %vm334_vm0, %v4174_v48  ;;  %v4269_v34 = vadd.f32 %v1429_v6, %v1235_v44  ;;  %v225_v48 = vld [vmem:[%s3871_s28 + $0xd0] sm:$0xff]  ;;  %v1295_v6 = vld [vmem:[%s3871_s28 + $0xe3] sm:$0xff] }
 0x136   : > { %3663 = vmatmul.msk.bf16.gmra.mxu0 %vm334_vm0, %v1322_v36  ;;  %v1296_v36 = vld [vmem:[%s3871_s28 + $0xeb] sm:$0xff]  ;;  %v253_v44 = vpack.c.bf16 %v226_v21, %v225_v48 }
 0x137   : > { %3639 = vmatmul.msk.bf16.gmra.mxu3 %vm334_vm0, %v4277_v1 }
 0x138   : > { %v856_v37 = vpop.f32.mrf.mxu2 }
 0x139   : > { %v948_v13 = vadd.f32 %v856_v37, %v610_v5  ;;  %v611_v39 = vpop.f32.mrf.mxu1 }
 0x13a   : > { %v612_v52 = vadd.f32 %v611_v39, %v4119_v58  ;;  %v4288_v7 = vpop.f32.mrf.mxu3 }
 0x13b   : > { %v1434_v18 = vpop.f32.mrf.mxu0  ;;  %v1236_v51 = vadd.f32 %v4210_v20, %v948_v13  ;;  %v1323_v20 = vpack.c.bf16 %v1296_v36, %v1295_v6  ;;  %v1013_v36 = vld [vmem:[%s3871_s28 + $0x112] sm:$0xff] }
 0x13d   : > { %v4281_v38 = vadd.f32 %v1432_v60, %v1236_v51 }
 0x140   : > { %v858_v33 = vpop.f32.mrf.mxu2 }
 0x141   : > { %v949_v5 = vadd.f32 %v858_v33, %v612_v52  ;;  %v614_v37 = vpop.f32.mrf.mxu1  ;;  %v1014_v52 = vld [vmem:[%s3871_s28 + $0x11a] sm:$0xff] }
 0x142   : > { %v615_v39 = vadd.f32 %v614_v37, %v4137_v22  ;;  %v4298_v6 = vpop.f32.mrf.mxu3  ;;  %v4303_v33 = vpack.c.bf16 %v1014_v52, %v1013_v36 }
 0x143   : > { %v1437_v13 = vpop.f32.mrf.mxu0  ;;  %v1237_v60 = vadd.f32 %v4220_v53, %v949_v5 }
 0x144   : > { %3583 = vmatmul.msk.bf16.gmra.mxu1 %vm334_vm0, %v253_v44  ;;  %v228_v44 = vld [vmem:[%s3871_s28 + $0xe8] sm:$0xff] }
 0x145   : > { %3610 = vmatmul.msk.bf16.gmra.mxu2 %vm334_vm0, %v4199_v2  ;;  %v4295_v58 = vadd.f32 %v1434_v18, %v1237_v60  ;;  %v227_v2 = vld [vmem:[%s3871_s28 + $0xe0] sm:$0xff]  ;;  %v1297_v18 = vld [vmem:[%s3871_s28 + $0xf3] sm:$0xff] }
 0x146   : > { %3664 = vmatmul.msk.bf16.gmra.mxu0 %vm334_vm0, %v1323_v20  ;;  %v1298_v20 = vld [vmem:[%s3871_s28 + $0xfb] sm:$0xff]  ;;  %v254_v60 = vpack.c.bf16 %v228_v44, %v227_v2 }
 0x147   : > { %3640 = vmatmul.msk.bf16.gmra.mxu3 %vm334_vm0, %v4303_v33 }
 0x148   : > { %v861_v51 = vpop.f32.mrf.mxu2 }
 0x149   : > { %v950_v30 = vadd.f32 %v861_v51, %v615_v39  ;;  %v616_v48 = vpop.f32.mrf.mxu1 }
 0x14a   : > { %v617_v22 = vadd.f32 %v616_v48, %v4147_v28  ;;  %v4314_v36 = vpop.f32.mrf.mxu3 }
 0x14b   : > { %v1439_v21 = vpop.f32.mrf.mxu0  ;;  %v1238_v53 = vadd.f32 %v4236_v35, %v950_v30  ;;  %v1324_v35 = vpack.c.bf16 %v1298_v20, %v1297_v18  ;;  %v1015_v20 = vld [vmem:[%s3871_s28 + $0x122] sm:$0xff] }
 0x14d   : > { %v4307_v5 = vadd.f32 %v1437_v13, %v1238_v53 }
 0x150   : > { %v863_v37 = vpop.f32.mrf.mxu2 }
 0x151   : > { %v951_v39 = vadd.f32 %v863_v37, %v617_v22  ;;  %v619_v51 = vpop.f32.mrf.mxu1  ;;  %v1016_v22 = vld [vmem:[%s3871_s28 + $0x12a] sm:$0xff] }
 0x152   : > { %v620_v48 = vadd.f32 %v619_v51, %v3995_v42  ;;  %v4324_v18 = vpop.f32.mrf.mxu3  ;;  %v4329_v37 = vpack.c.bf16 %v1016_v22, %v1015_v20 }
 0x153   : > { %v1442_v30 = vpop.f32.mrf.mxu0  ;;  %v1239_v13 = vadd.f32 %v4246_v41, %v951_v39 }
 0x154   : > { %3584 = vmatmul.msk.bf16.gmra.mxu1 %vm334_vm0, %v254_v60  ;;  %v230_v60 = vld [vmem:[%s3871_s28 + $0xf8] sm:$0xff] }
 0x155   : > { %3611 = vmatmul.msk.bf16.gmra.mxu2 %vm334_vm0, %v4225_v11  ;;  %v4321_v28 = vadd.f32 %v1439_v21, %v1239_v13  ;;  %v229_v11 = vld [vmem:[%s3871_s28 + $0xf0] sm:$0xff]  ;;  %v1299_v21 = vld [vmem:[%s3871_s28 + $0x103] sm:$0xff] }
 0x156   : > { %3665 = vmatmul.msk.bf16.gmra.mxu0 %vm334_vm0, %v1324_v35  ;;  %v1300_v35 = vld [vmem:[%s3871_s28 + $0x10b] sm:$0xff]  ;;  %v255_v13 = vpack.c.bf16 %v230_v60, %v229_v11 }
 0x157   : > { %3641 = vmatmul.msk.bf16.gmra.mxu3 %vm334_vm0, %v4329_v37 }
 0x158   : > { %v866_v53 = vpop.f32.mrf.mxu2 }
 0x159   : > { %v952_v52 = vadd.f32 %v866_v53, %v620_v48  ;;  %v621_v2 = vpop.f32.mrf.mxu1 }
 0x15a   : > { %v622_v42 = vadd.f32 %v621_v2, %v4004_v46  ;;  %v4340_v20 = vpop.f32.mrf.mxu3 }
 0x15b   : > { %v1444_v44 = vpop.f32.mrf.mxu0  ;;  %v1240_v41 = vadd.f32 %v4262_v23, %v952_v52  ;;  %v1325_v23 = vpack.c.bf16 %v1300_v35, %v1299_v21  ;;  %v1017_v35 = vld [vmem:[%s3871_s28 + $0x132] sm:$0xff] }
 0x15d   : > { %v4333_v39 = vadd.f32 %v1442_v30, %v1240_v41 }
 0x160   : > { %v868_v51 = vpop.f32.mrf.mxu2 }
 0x161   : > { %v953_v48 = vadd.f32 %v868_v51, %v622_v42  ;;  %v624_v53 = vpop.f32.mrf.mxu1  ;;  %v1018_v42 = vld [vmem:[%s3871_s28 + $0x13a] sm:$0xff] }
 0x162   : > { %v625_v2 = vadd.f32 %v624_v53, %v4020_v57  ;;  %v4350_v21 = vpop.f32.mrf.mxu3  ;;  %v4355_v51 = vpack.c.bf16 %v1018_v42, %v1017_v35 }
 0x163   : > { %v1447_v52 = vpop.f32.mrf.mxu0  ;;  %v1241_v30 = vadd.f32 %v4272_v4, %v953_v48 }
 0x164   : > { %3585 = vmatmul.msk.bf16.gmra.mxu1 %vm334_vm0, %v255_v13  ;;  %v232_v13 = vld [vmem:[%s3871_s28 + $0x108] sm:$0xff] }
 0x165   : > { %3612 = vmatmul.msk.bf16.gmra.mxu2 %vm334_vm0, %v4251_v29  ;;  %v4347_v46 = vadd.f32 %v1444_v44, %v1241_v30  ;;  %v231_v29 = vld [vmem:[%s3871_s28 + $0x100] sm:$0xff]  ;;  %v1301_v44 = vld [vmem:[%s3871_s28 + $0x113] sm:$0xff] }
 0x166   : > { %3666 = vmatmul.msk.bf16.gmra.mxu0 %vm334_vm0, %v1325_v23  ;;  %v1302_v23 = vld [vmem:[%s3871_s28 + $0x11b] sm:$0xff]  ;;  %v256_v30 = vpack.c.bf16 %v232_v13, %v231_v29 }
 0x167   : > { %3642 = vmatmul.msk.bf16.gmra.mxu3 %vm334_vm0, %v4355_v51 }
 0x168   : > { %v871_v41 = vpop.f32.mrf.mxu2 }
 0x169   : > { %v954_v22 = vadd.f32 %v871_v41, %v625_v2  ;;  %v626_v11 = vpop.f32.mrf.mxu1 }
 0x16a   : > { %v627_v57 = vadd.f32 %v626_v11, %v4031_v62  ;;  %v4366_v35 = vpop.f32.mrf.mxu3 }
 0x16b   : > { %v1449_v60 = vpop.f32.mrf.mxu0  ;;  %v1242_v4 = vadd.f32 %v4288_v7, %v954_v22  ;;  %v1326_v7 = vpack.c.bf16 %v1302_v23, %v1301_v44  ;;  %v1019_v23 = vld [vmem:[%s3871_s28 + $0x142] sm:$0xff] }
 0x16d   : > { %v4359_v48 = vadd.f32 %v1447_v52, %v1242_v4 }
 0x170   : > { %v873_v53 = vpop.f32.mrf.mxu2 }
 0x171   : > { %v955_v2 = vadd.f32 %v873_v53, %v627_v57  ;;  %v629_v41 = vpop.f32.mrf.mxu1  ;;  %v1020_v57 = vld [vmem:[%s3871_s28 + $0x14a] sm:$0xff] }
 0x172   : > { %v630_v11 = vadd.f32 %v629_v41, %v4049_v10  ;;  %v4376_v44 = vpop.f32.mrf.mxu3  ;;  %v1041_v53 = vpack.c.bf16 %v1020_v57, %v1019_v23 }
 0x173   : > { %v1452_v22 = vpop.f32.mrf.mxu0  ;;  %v1243_v52 = vadd.f32 %v4298_v6, %v955_v2 }
 0x174   : > { %3586 = vmatmul.msk.bf16.gmra.mxu1 %vm334_vm0, %v256_v30  ;;  %v234_v30 = vld [vmem:[%s3871_s28 + $0x118] sm:$0xff] }
 0x175   : > { %3613 = vmatmul.msk.bf16.gmra.mxu2 %vm334_vm0, %v4277_v1  ;;  %v4373_v62 = vadd.f32 %v1449_v60, %v1243_v52  ;;  %v233_v1 = vld [vmem:[%s3871_s28 + $0x110] sm:$0xff] }
 0x176   : > { %3667 = vmatmul.msk.bf16.gmra.mxu0 %vm334_vm0, %v1326_v7  ;;  %v1303_v7 = vld [vmem:[%s3871_s28 + $0x123] sm:$0xff]  ;;  %v1304_v60 = vld [vmem:[%s3871_s28 + $0x12b] sm:$0xff]  ;;  %v257_v52 = vpack.c.bf16 %v234_v30, %v233_v1 }
 0x177   : > { %5910 = vst [vmem:[#allocation5_spill] sm:$0xff] %v4373_v62  ;;  %3643 = vmatmul.msk.bf16.gmra.mxu3 %vm334_vm0, %v1041_v53  ;;  %v1327_v62 = vpack.c.bf16 %v1304_v60, %v1303_v7  ;;  %v1021_v30 = vld [vmem:[%s3871_s28 + $0x152] sm:$0xf]  ;;  %v235_v60 = vld [vmem:[%s3871_s28 + $0x120] sm:$0xff] }
 0x178   : > { %v876_v4 = vpop.f32.mrf.mxu2  ;;  %v1042_v7 = vpack.c.bf16 %v1021_v30, %v1021_v30 }
 0x179   : > { %v956_v42 = vadd.f32 %v876_v4, %v630_v11  ;;  %v631_v29 = vpop.f32.mrf.mxu1 }
 0x17a   : > { %v632_v10 = vadd.f32 %v631_v29, %v4061_v15 }
 0x17b   : > { %v1454_v13 = vpop.f32.mrf.mxu0  ;;  %v1244_v6 = vadd.f32 %v4314_v36, %v956_v42  ;;  %v4389_v42 = vpop.f32.mrf.mxu3 }
 0x17d   : > { %v4383_v2 = vadd.f32 %v1452_v22, %v1244_v6 }
 0x180   : > { %v878_v41 = vpop.f32.mrf.mxu2 }
 0x181   : > { %v957_v11 = vadd.f32 %v878_v41, %v632_v10  ;;  %v634_v4 = vpop.f32.mrf.mxu1  ;;  %v236_v10 = vld [vmem:[%s3871_s28 + $0x128] sm:$0xff]  ;;  %v1305_v41 = vld [vmem:[%s3871_s28 + $0x133] sm:$0xff] }
 0x182   : > { %v635_v29 = vadd.f32 %v634_v4, %v4079_v27 }
 0x183   : > { %v1457_v36 = vpop.f32.mrf.mxu0  ;;  %v1245_v22 = vadd.f32 %v4324_v18, %v957_v11  ;;  %v4399_v1 = vpop.f32.mrf.mxu3 }
 0x184   : > { %3587 = vmatmul.msk.bf16.gmra.mxu1 %vm334_vm0, %v257_v52  ;;  %v258_v52 = vpack.c.bf16 %v236_v10, %v235_v60  ;;  %v2133_v60 = vld [vmem:[%s3871_s28 + $0x25] sm:$0xff]  ;;  %v2134_v10 = vld [vmem:[%s3871_s28 + $0x2d] sm:$0xff] }
 0x185   : > { %3614 = vmatmul.msk.bf16.gmra.mxu2 %vm334_vm0, %v4303_v33  ;;  %v4396_v15 = vadd.f32 %v1454_v13, %v1245_v22 }
 0x186   : > { %3668 = vmatmul.msk.bf16.gmra.mxu0 %vm334_vm0, %v1327_v62  ;;  %v1306_v62 = vld [vmem:[%s3871_s28 + $0x13b] sm:$0xff] }
 0x187   : > { %3644 = vmatmul.msk.bf16.gmra.mxu3 %vm334_vm0, %v1042_v7  ;;  %v1328_v22 = vpack.c.bf16 %v1306_v62, %v1305_v41  ;;  %v2174_v41 = vpack.c.bf16 %v2134_v10, %v2133_v60  ;;  %v238_v62 = vld [vmem:[%s3871_s28 + $0x138] sm:$0xff] }
 0x188   : > { %v881_v6 = vpop.f32.mrf.mxu2 }
 0x189   : > { %v958_v23 = vadd.f32 %v881_v6, %v635_v29  ;;  %v636_v57 = vpop.f32.mrf.mxu1 }
 0x18a   : > { %v637_v27 = vadd.f32 %v636_v57, %v4091_v32 }
 0x18b   : > { %v1459_v53 = vpop.f32.mrf.mxu0  ;;  %v1246_v18 = vadd.f32 %v4340_v20, %v958_v23  ;;  %v4411_v29 = vpop.f32.mrf.mxu3 }
 0x18d   : > { %v4405_v33 = vadd.f32 %v1457_v36, %v1246_v18 }
 0x190   : > { %v883_v13 = vpop.f32.mrf.mxu2 }
 0x191   : > { %v959_v11 = vadd.f32 %v883_v13, %v637_v27  ;;  %v639_v4 = vpop.f32.mrf.mxu1  ;;  %v1307_v13 = vld [vmem:[%s3871_s28 + $0x143] sm:$0xff] }
 0x192   : > { %v640_v6 = vadd.f32 %v639_v4, %v4107_v49 }
 0x193   : > { %v1462_v20 = vpop.f32.mrf.mxu0  ;;  %v1247_v36 = vadd.f32 %v4350_v21, %v959_v11  ;;  %v4421_v7 = vpop.f32.mrf.mxu3 }
 0x194   : > { %3588 = vmatmul.msk.bf16.gmra.mxu1 %vm334_vm0, %v258_v52 }
 0x195   : > { %3615 = vmatmul.msk.bf16.gmra.mxu2 %vm334_vm0, %v4329_v37  ;;  %v4418_v32 = vadd.f32 %v1459_v53, %v1247_v36  ;;  %v237_v37 = vld [vmem:[%s3871_s28 + $0x130] sm:$0xff] }
 0x196   : > { %3669 = vmatmul.msk.bf16.gmra.mxu0 %vm334_vm0, %v1328_v22  ;;  %v1308_v53 = vld [vmem:[%s3871_s28 + $0x14b] sm:$0xff]  ;;  %v259_v11 = vpack.c.bf16 %v238_v62, %v237_v37  ;;  %v2136_v37 = vld [vmem:[%s3871_s28 + $0x3d] sm:$0xff] }
 0x197   : > { %3732 = vmatmul.msk.bf16.vlgmr.msra.gmra.mxu3 %vm334_vm0, %v2174_v41  ;;  %v1329_v36 = vpack.c.bf16 %v1308_v53, %v1307_v13  ;;  %v2135_v41 = vld [vmem:[%s3871_s28 + $0x35] sm:$0xff]  ;;  %v239_v13 = vld [vmem:[%s3871_s28 + $0x140] sm:$0xf] }
 0x198   : > { %v886_v23 = vpop.f32.mrf.mxu2  ;;  %v2175_v62 = vpack.c.bf16 %v2136_v37, %v2135_v41  ;;  %v733_v53 = vld [vmem:[%s3871_s28 + $0x142] sm:$0xf] }
 0x199   : > { %v960_v57 = vadd.f32 %v886_v23, %v640_v6  ;;  %v641_v18 = vpop.f32.mrf.mxu1  ;;  %v2137_v37 = vld [vmem:[%s3871_s28 + $0x45] sm:$0xff] }
 0x19a   : > { %v642_v49 = vadd.f32 %v641_v18, %v4117_v56 }
 0x19b   : > { %v1464_v30 = vpop.f32.mrf.mxu0  ;;  %v1248_v21 = vadd.f32 %v4366_v35, %v960_v57  ;;  %v4434_v6 = vpop.f32.mrf.mxu3 }
 0x19d   : > { %v4428_v27 = vadd.f32 %v1462_v20, %v1248_v21 }
 0x1a0   : > { %v888_v52 = vpop.f32.mrf.mxu2 }
 0x1a1   : > { %v961_v4 = vadd.f32 %v888_v52, %v642_v49  ;;  %v644_v22 = vpop.f32.mrf.mxu1  ;;  %v1309_v49 = vld [vmem:[%s3871_s28 + $0x153] sm:$0xf]  ;;  %v260_v52 = vpack.c.bf16 %v239_v13, %v239_v13  ;;  %v3819_v13 = vmov 0  }
 0x1a2   : > { %v645_v23 = vadd.f32 %v644_v22, %v4135_v19  ;;  %v754_v22 = vpack.c.bf16 %v733_v53, %v733_v53  ;;  %3805 = vset.pattern.permute.xlu0 %v3819_v13  ;;  %3806 = vset.pattern.permute.xlu1 %v3819_v13  ;;  %v1557_v53 = vld [vmem:[%s3871_s28 + $0x14] sm:$0xff] }
 0x1a3   : > { %v1467_v35 = vpop.f32.mrf.mxu0  ;;  %v1249_v20 = vadd.f32 %v4376_v44, %v961_v4  ;;  %v4444_v10 = vpop.f32.mrf.mxu3  ;;  %3807 = vset.pattern.permute.xlu2 %v3819_v13 }
 0x1a4   : > { %3589 = vmatmul.msk.bf16.gmra.mxu1 %vm334_vm0, %v259_v11 }
 0x1a5   : > { %3616 = vmatmul.msk.bf16.gmra.mxu2 %vm334_vm0, %v4355_v51  ;;  %v4441_v56 = vadd.f32 %v1464_v30, %v1249_v20 }
 0x1a6   : > { %3670 = vmatmul.msk.bf16.gmra.mxu0 %vm334_vm0, %v1329_v36  ;;  %v1330_v36 = vpack.c.bf16 %v1309_v49, %v1309_v49  ;;  %v1558_v49 = vld [vmem:[%s3871_s28 + $0x1c] sm:$0xff] }
 0x1a7   : > { %3733 = vmatmul.msk.bf16.gmra.mxu3 %vm334_vm0, %v2175_v62  ;;  %v2138_v62 = vld [vmem:[%s3871_s28 + $0x4d] sm:$0xff] }
 0x1a8   : > { %v891_v57 = vpop.f32.mrf.mxu2 }
 0x1a9   : > { %v962_v18 = vadd.f32 %v891_v57, %v645_v23  ;;  %v646_v21 = vpop.f32.mrf.mxu1 }
 0x1aa   : > { %v647_v19 = vadd.f32 %v646_v21, %v4145_v26 }
 0x1ab   : > { %v1469_v60 = vpop.f32.mrf.mxu0  ;;  %v1250_v44 = vadd.f32 %v4389_v42, %v962_v18  ;;  %v4456_v20 = vpop.f32.mrf.mxu3 }
 0x1ad   : > { %v4450_v51 = vadd.f32 %v1467_v35, %v1250_v44 }
 0x1b0   : > { %v893_v30 = vpop.f32.mrf.mxu2 }
 0x1b1   : > { %v963_v11 = vadd.f32 %v893_v30, %v647_v19  ;;  %v649_v4 = vpop.f32.mrf.mxu1  ;;  %v1845_v19 = vld [vmem:[%s3871_s28 + $0x24] sm:$0xff] }
 0x1b2   : > { %v650_v23 = vadd.f32 %v649_v4, %v4002_v45  ;;  %v2176_v45 = vpack.c.bf16 %v2138_v62, %v2137_v37 }
 0x1b3   : > { %v1472_v42 = vpop.f32.mrf.mxu0  ;;  %v1251_v35 = vadd.f32 %v4399_v1, %v963_v11  ;;  %v4465_v41 = vpop.f32.mrf.mxu3  ;;  %v2422_v11 = vld [vmem:[%s3871_s28 + $0x2e] sm:$0xff] }
 0x1b4   : > { %3590 = vmatmul.msk.bf16.gmra.mxu1 %vm334_vm0, %v260_v52  ;;  %v1846_v52 = vld [vmem:[%s3871_s28 + $0x2c] sm:$0xff] }
 0x1b5   : > { %3617 = vmatmul.msk.bf16.gmra.mxu2 %vm334_vm0, %v754_v22  ;;  %v4462_v26 = vadd.f32 %v1469_v60, %v1251_v35  ;;  %v2754_v60 = vld [vmem:[%s5864_s3] sm:$0xff] }
 0x1b6   : > { %3671 = vmatmul.msk.bf16.gmra.mxu0 %vm334_vm0, %v1330_v36  ;;  %2797 = vperm.xlu0 %3805, %v2754_v60   ;;  %v1598_v36 = vpack.c.bf16 %v1558_v49, %v1557_v53 }
 0x1b7   : > { %3734 = vmatmul.msk.bf16.gmra.mxu3 %vm334_vm0, %v2176_v45 }
 0x1b8   : > { %v896_v57 = vpop.f32.mrf.mxu2 }
 0x1b9   : > { %v964_v18 = vadd.f32 %v896_v57, %v650_v23  ;;  %v651_v21 = vpop.f32.mrf.mxu1  ;;  %v1886_v57 = vpack.c.bf16 %v1846_v52, %v1845_v19  ;;  %v2756_v19 = vld [vmem:[%s5864_s3 + $0x10] sm:$0xff]  ;;  %v2140_v52 = vld [vmem:[%s3871_s28 + $0x5d] sm:$0xff] }
 0x1ba   : > { %v652_v4 = vadd.f32 %v651_v21, %v4018_v55  ;;  %v2755_v55 = vld [vmem:[%s5864_s3 + $0x8] sm:$0xff]  ;;  %2807 = vperm.xlu1 %3806, %v2756_v19  }
 0x1bb   : > { %v1474_v44 = vpop.f32.mrf.mxu0  ;;  %v1252_v1 = vadd.f32 %v4411_v29, %v964_v18  ;;  %v2421_v29 = vld [vmem:[%s3871_s28 + $0x26] sm:$0xff]  ;;  %v4483_v62 = vpop.f32.mrf.mxu3 }
 0x1bc   : > { %v2462_v18 = vpack.c.bf16 %v2422_v11, %v2421_v29  ;;  %v1847_v11 = vld [vmem:[%s3871_s28 + $0x34] sm:$0xff] }
 0x1bd   : > { %v4476_v30 = vadd.f32 %v1472_v42, %v1252_v1 }
 0x1be   : > { %2802 = vperm.xlu0 %3805, %v2755_v55  }
 0x1c0   : > { %v898_v22 = vpop.f32.mrf.mxu2 }
 0x1c1   : > { %v965_v35 = vadd.f32 %v898_v22, %v652_v4  ;;  %v654_v23 = vpop.f32.mrf.mxu1  ;;  %v2423_v22 = vld [vmem:[%s3871_s28 + $0x36] sm:$0xff] }
 0x1c2   : > { %v655_v1 = vadd.f32 %v654_v23, %v4029_v61  ;;  %v1848_v61 = vld [vmem:[%s3871_s28 + $0x3c] sm:$0xff] }
 0x1c3   : > { %v1477_v37 = vpop.f32.mrf.mxu0  ;;  %v1253_v42 = vadd.f32 %v4421_v7, %v965_v35  ;;  %v4495_v53 = vpop.f32.mrf.mxu3 }
 0x1c4   : > { %3678 = vmatmul.msk.bf16.vlgmr.msra.gmra.mxu1 %vm334_vm0, %v1598_v36  ;;  %v2424_v36 = vld [vmem:[%s3871_s28 + $0x3e] sm:$0xff] }
 0x1c5   : > { %3705 = vmatmul.msk.bf16.vlgmr.msra.gmra.mxu2 %vm334_vm0, %v1886_v57  ;;  %v4492_v21 = vadd.f32 %v1474_v44, %v1253_v42  ;;  %v2139_v44 = vld [vmem:[%s3871_s28 + $0x55] sm:$0xff]  ;;  %v1887_v42 = vpack.c.bf16 %v1848_v61, %v1847_v11  ;;  %v2463_v55 = vpack.c.bf16 %v2424_v36, %v2423_v22  ;;  %v2142_v11 = vld [vmem:[%s3871_s28 + $0x6d] sm:$0xff]  ;;  %v1849_v22 = vld [vmem:[%s3871_s28 + $0x44] sm:$0xff] }
 0x1c6   : > { %3759 = vmatmul.msk.bf16.vlgmr.msra.gmra.mxu0 %vm334_vm0, %v2462_v18  ;;  %v2177_v29 = vpack.c.bf16 %v2140_v52, %v2139_v44 }
 0x1c8   : > { %v901_v7 = vpop.f32.mrf.mxu2  ;;  %3735 = vmatmul.msk.bf16.gmra.mxu3 %vm334_vm0, %v2177_v29  ;;  %v2141_v29 = vld [vmem:[%s3871_s28 + $0x65] sm:$0xff] }
 0x1c9   : > { %v966_v60 = vadd.f32 %v901_v7, %v655_v1  ;;  %v656_v13 = vpop.f32.mrf.mxu1  ;;  %v2178_v61 = vpack.c.bf16 %v2142_v11, %v2141_v29 }
 0x1ca   : > { %v657_v35 = vadd.f32 %v656_v13, %v4047_v8  ;;  %v2757_v8 = vld [vmem:[%s5864_s3 + $0x18] sm:$0xff] }
 0x1cb   : > { %v1479_v45 = vpop.f32.mrf.mxu0  ;;  %v1254_v49 = vadd.f32 %v4434_v6, %v966_v60  ;;  %v4511_v7 = vpop.f32.mrf.mxu3  ;;  %2812 = vperm.xlu1 %3806, %v2757_v8  }
 0x1cd   : > { %v4504_v4 = vadd.f32 %v1477_v37, %v1254_v49 }
 0x1d0   : > { %v903_v23 = vpop.f32.mrf.mxu2 }
 0x1d1   : > { %v967_v6 = vadd.f32 %v903_v23, %v657_v35  ;;  %v659_v18 = vpop.f32.mrf.mxu1  ;;  %v2425_v35 = vld [vmem:[%s3871_s28 + $0x46] sm:$0xff]  ;;  %v2426_v23 = vld [vmem:[%s3871_s28 + $0x4e] sm:$0xff] }
 0x1d2   : > { %v660_v13 = vadd.f32 %v659_v18, %v4059_v14  ;;  %v2464_v8 = vpack.c.bf16 %v2426_v23, %v2425_v35  ;;  %v2427_v23 = vld [vmem:[%s3871_s28 + $0x56] sm:$0xff] }
 0x1d3   : > { %v1482_v1 = vpop.f32.mrf.mxu0  ;;  %v1255_v37 = vadd.f32 %v4444_v10, %v967_v6  ;;  %v4523_v44 = vpop.f32.mrf.mxu3 }
 0x1d4   : > { %3679 = vmatmul.msk.bf16.gmra.mxu1 %vm334_vm0, %v1886_v57 }
 0x1d5   : > { %3706 = vmatmul.msk.bf16.gmra.mxu2 %vm334_vm0, %v1887_v42  ;;  %v4520_v60 = vadd.f32 %v1479_v45, %v1255_v37  ;;  %v1850_v45 = vld [vmem:[%s3871_s28 + $0x4c] sm:$0xff] }
 0x1d6   : > { %3760 = vmatmul.msk.bf16.gmra.mxu0 %vm334_vm0, %v2463_v55  ;;  %v1888_v37 = vpack.c.bf16 %v1850_v45, %v1849_v22  ;;  %v2144_v22 = vld [vmem:[%s3871_s28 + $0x7d] sm:$0xff]  ;;  %v1851_v45 = vld [vmem:[%s3871_s28 + $0x54] sm:$0xff] }
 0x1d8   : > { %v906_v10 = vpop.f32.mrf.mxu2  ;;  %3736 = vmatmul.msk.bf16.gmra.mxu3 %vm334_vm0, %v2178_v61  ;;  %v2143_v61 = vld [vmem:[%s3871_s28 + $0x75] sm:$0xff] }
 0x1d9   : > { %v968_v49 = vadd.f32 %v906_v10, %v660_v13  ;;  %v661_v57 = vpop.f32.mrf.mxu1 }
 0x1da   : > { %v662_v14 = vadd.f32 %v661_v57, %v4077_v25 }
 0x1db   : > { %v1484_v19 = vpop.f32.mrf.mxu0  ;;  %v1256_v52 = vadd.f32 %v4456_v20, %v968_v49  ;;  %v4536_v13 = vpop.f32.mrf.mxu3 }
 0x1dd   : > { %v4529_v36 = vadd.f32 %v1482_v1, %v1256_v52 }
 0x1e0   : > { %v908_v6 = vpop.f32.mrf.mxu2 }
 0x1e1   : > { %v969_v18 = vadd.f32 %v908_v6, %v662_v14  ;;  %v664_v55 = vpop.f32.mrf.mxu1  ;;  %v2428_v14 = vld [vmem:[%s3871_s28 + $0x5e] sm:$0xff] }
 0x1e2   : > { %v665_v10 = vadd.f32 %v664_v55, %v4089_v31  ;;  %v1852_v31 = vld [vmem:[%s3871_s28 + $0x5c] sm:$0xff] }
 0x1e3   : > { %v1487_v20 = vpop.f32.mrf.mxu0  ;;  %v1257_v1 = vadd.f32 %v4465_v41, %v969_v18  ;;  %v4545_v11 = vpop.f32.mrf.mxu3 }
 0x1e4   : > { %3680 = vmatmul.msk.bf16.gmra.mxu1 %vm334_vm0, %v1887_v42  ;;  %v2760_v42 = vld [vmem:[%s5864_s3 + $0x30] sm:$0xff] }
 0x1e5   : > { %3707 = vmatmul.msk.bf16.gmra.mxu2 %vm334_vm0, %v1888_v37  ;;  %v4542_v25 = vadd.f32 %v1484_v19, %v1257_v1  ;;  %2827 = vperm.xlu0 %3805, %v2760_v42   ;;  %v2179_v19 = vpack.c.bf16 %v2144_v22, %v2143_v61  ;;  %v2465_v1 = vpack.c.bf16 %v2428_v14, %v2427_v23  ;;  %v1853_v14 = vld [vmem:[%s3871_s28 + $0x64] sm:$0xff] }
 0x1e6   : > { %3761 = vmatmul.msk.bf16.gmra.mxu0 %vm334_vm0, %v2464_v8  ;;  %v1889_v8 = vpack.c.bf16 %v1852_v31, %v1851_v45  ;;  %v2145_v45 = vld [vmem:[%s3871_s28 + $0x85] sm:$0xff]  ;;  %v2146_v31 = vld [vmem:[%s3871_s28 + $0x8d] sm:$0xff] }
 0x1e7   : > { %v2180_v23 = vpack.c.bf16 %v2146_v31, %v2145_v45 }
 0x1e8   : > { %v911_v49 = vpop.f32.mrf.mxu2  ;;  %3737 = vmatmul.msk.bf16.gmra.mxu3 %vm334_vm0, %v2179_v19 }
 0x1e9   : > { %v970_v57 = vadd.f32 %v911_v49, %v665_v10  ;;  %v666_v52 = vpop.f32.mrf.mxu1 }
 0x1ea   : > { %v667_v6 = vadd.f32 %v666_v52, %v4105_v43  ;;  %v2758_v43 = vld [vmem:[%s5864_s3 + $0x20] sm:$0xff] }
 0x1eb   : > { %v1489_v29 = vpop.f32.mrf.mxu0  ;;  %v1258_v41 = vadd.f32 %v4483_v62, %v970_v57  ;;  %v4561_v49 = vpop.f32.mrf.mxu3  ;;  %2817 = vperm.xlu2 %3807, %v2758_v43  }
 0x1ed   : > { %v4554_v35 = vadd.f32 %v1487_v20, %v1258_v41  ;;  %v2761_v20 = vld [vmem:[%s5864_s3 + $0x38] sm:$0xff] }
 0x1ee   : > { %2832 = vperm.xlu1 %3806, %v2761_v20  }
 0x1f0   : > { %v913_v18 = vpop.f32.mrf.mxu2 }
 0x1f1   : > { %v971_v62 = vadd.f32 %v913_v18, %v667_v6  ;;  %v669_v55 = vpop.f32.mrf.mxu1  ;;  %v1854_v18 = vld [vmem:[%s3871_s28 + $0x6c] sm:$0xff] }
 0x1f2   : > { %v1890_v43 = vpack.c.bf16 %v1854_v18, %v1853_v14  ;;  %v2148_v14 = vld [vmem:[%s3871_s28 + $0x9d] sm:$0xff] }
 0x1f3   : > { %v1492_v10 = vpop.f32.mrf.mxu0  ;;  %v1259_v57 = vadd.f32 %v4495_v53, %v971_v62  ;;  %v670_v53 = vadd.f32 %v669_v55, %v4115_v54  ;;  %v4576_v22 = vpop.f32.mrf.mxu3  ;;  %v2429_v54 = vld [vmem:[%s3871_s28 + $0x66] sm:$0xff]  ;;  %v2430_v62 = vld [vmem:[%s3871_s28 + $0x6e] sm:$0xff] }
 0x1f4   : > { %3681 = vmatmul.msk.bf16.gmra.mxu1 %vm334_vm0, %v1888_v37  ;;  %v2466_v20 = vpack.c.bf16 %v2430_v62, %v2429_v54  ;;  %v1855_v54 = vld [vmem:[%s3871_s28 + $0x74] sm:$0xff] }
 0x1f5   : > { %3708 = vmatmul.msk.bf16.gmra.mxu2 %vm334_vm0, %v1889_v8  ;;  %v4573_v52 = vadd.f32 %v1489_v29, %v1259_v57  ;;  %v2759_v29 = vld [vmem:[%s5864_s3 + $0x28] sm:$0xff] }
 0x1f6   : > { %3762 = vmatmul.msk.bf16.gmra.mxu0 %vm334_vm0, %v2465_v1  ;;  %2822 = vperm.xlu2 %3807, %v2759_v29  }
 0x1f8   : > { %v916_v37 = vpop.f32.mrf.mxu2  ;;  %3738 = vmatmul.msk.bf16.gmra.mxu3 %vm334_vm0, %v2180_v23  ;;  %v2764_v23 = vld [vmem:[%s5864_s3 + $0x50] sm:$0xff] }
 0x1f9   : > { %v972_v41 = vadd.f32 %v916_v37, %v670_v53  ;;  %v671_v42 = vpop.f32.mrf.mxu1  ;;  %2847 = vperm.xlu1 %3806, %v2764_v23  }
 0x1fa   : > { %v672_v55 = vadd.f32 %v671_v42, %v4133_v50  ;;  %v2763_v50 = vld [vmem:[%s5864_s3 + $0x48] sm:$0xff] }
 0x1fb   : > { %v1494_v61 = vpop.f32.mrf.mxu0  ;;  %v1260_v19 = vadd.f32 %v4511_v7, %v972_v41  ;;  %v4592_v37 = vpop.f32.mrf.mxu3  ;;  %2842 = vperm.xlu0 %3805, %v2763_v50  }
 0x1fd   : > { %v4585_v6 = vadd.f32 %v1492_v10, %v1260_v19 }
 0x200   : > { %v918_v1 = vpop.f32.mrf.mxu2 }
 0x201   : > { %v973_v7 = vadd.f32 %v918_v1, %v672_v55  ;;  %v674_v57 = vpop.f32.mrf.mxu1  ;;  %v2431_v55 = vld [vmem:[%s3871_s28 + $0x76] sm:$0xff]  ;;  %v2432_v1 = vld [vmem:[%s3871_s28 + $0x7e] sm:$0xff] }
 0x202   : > { %v675_v42 = vadd.f32 %v674_v57, %v4143_v24  ;;  %v1856_v24 = vld [vmem:[%s3871_s28 + $0x7c] sm:$0xff]  ;;  %v2467_v50 = vpack.c.bf16 %v2432_v1, %v2431_v55  ;;  %v1857_v55 = vld [vmem:[%s3871_s28 + $0x84] sm:$0xff] }
 0x203   : > { %v1497_v53 = vpop.f32.mrf.mxu0  ;;  %v1261_v10 = vadd.f32 %v4523_v44, %v973_v7  ;;  %v4604_v45 = vpop.f32.mrf.mxu3 }
 0x204   : > { %3682 = vmatmul.msk.bf16.gmra.mxu1 %vm334_vm0, %v1889_v8 }
 0x205   : > { %3709 = vmatmul.msk.bf16.gmra.mxu2 %vm334_vm0, %v1890_v43  ;;  %v4601_v41 = vadd.f32 %v1494_v61, %v1261_v10  ;;  %v2147_v61 = vld [vmem:[%s3871_s28 + $0x95] sm:$0xff]  ;;  %v1891_v10 = vpack.c.bf16 %v1856_v24, %v1855_v54  ;;  %v2149_v54 = vld [vmem:[%s3871_s28 + $0xa5] sm:$0xff] }
 0x206   : > { %3763 = vmatmul.msk.bf16.gmra.mxu0 %vm334_vm0, %v2466_v20  ;;  %v2181_v18 = vpack.c.bf16 %v2148_v14, %v2147_v61 }
 0x208   : > { %v921_v44 = vpop.f32.mrf.mxu2  ;;  %3739 = vmatmul.msk.bf16.gmra.mxu3 %vm334_vm0, %v2181_v18  ;;  %v2766_v18 = vld [vmem:[%s5864_s3 + $0x60] sm:$0xff] }
 0x209   : > { %v974_v19 = vadd.f32 %v921_v44, %v675_v42  ;;  %v676_v8 = vpop.f32.mrf.mxu1  ;;  %2857 = vperm.xlu0 %3805, %v2766_v18  }
 0x20a   : > { %v677_v7 = vadd.f32 %v676_v8, %v4161_v3  ;;  %v2762_v3 = vld [vmem:[%s5864_s3 + $0x40] sm:$0xff] }
 0x20b   : > { %v1499_v29 = vpop.f32.mrf.mxu0  ;;  %v1262_v31 = vadd.f32 %v4536_v13, %v974_v19  ;;  %v4620_v44 = vpop.f32.mrf.mxu3  ;;  %2837 = vperm.xlu2 %3807, %v2762_v3  }
 0x20d   : > { %v4613_v62 = vadd.f32 %v1497_v53, %v1262_v31 }
 0x210   : > { %v923_v57 = vpop.f32.mrf.mxu2 }
 0x211   : > { %v975_v13 = vadd.f32 %v923_v57, %v677_v7  ;;  %v679_v20 = vpop.f32.mrf.mxu1  ;;  %v2433_v7 = vld [vmem:[%s3871_s28 + $0x86] sm:$0xff]  ;;  %v2434_v57 = vld [vmem:[%s3871_s28 + $0x8e] sm:$0xff] }
 0x212   : > { %v680_v8 = vadd.f32 %v679_v20, %v4022_v59  ;;  %v1858_v59 = vld [vmem:[%s3871_s28 + $0x8c] sm:$0xff]  ;;  %v2468_v3 = vpack.c.bf16 %v2434_v57, %v2433_v7 }
 0x213   : > { %v1502_v42 = vpop.f32.mrf.mxu0  ;;  %v1263_v19 = vadd.f32 %v4545_v11, %v975_v13  ;;  %v1226_v61 = vpop.f32.mrf.mxu3 }
 0x214   : > { %3683 = vmatmul.msk.bf16.gmra.mxu1 %vm334_vm0, %v1890_v43 }
 0x215   : > { %3710 = vmatmul.msk.bf16.gmra.mxu2 %vm334_vm0, %v1891_v10  ;;  %v4629_v53 = vadd.f32 %v1499_v29, %v1263_v19  ;;  %v2150_v29 = vld [vmem:[%s3871_s28 + $0xad] sm:$0xff]  ;;  %v1892_v19 = vpack.c.bf16 %v1858_v59, %v1857_v55  ;;  %v2152_v55 = vld [vmem:[%s3871_s28 + $0xbd] sm:$0xff] }
 0x216   : > { %3764 = vmatmul.msk.bf16.gmra.mxu0 %vm334_vm0, %v2467_v50  ;;  %v2182_v24 = vpack.c.bf16 %v2150_v29, %v2149_v54  ;;  %v1859_v59 = vld [vmem:[%s3871_s28 + $0x94] sm:$0xff] }
 0x218   : > { %v926_v11 = vpop.f32.mrf.mxu2  ;;  %3740 = vmatmul.msk.bf16.gmra.mxu3 %vm334_vm0, %v2182_v24  ;;  %v2151_v24 = vld [vmem:[%s3871_s28 + $0xb5] sm:$0xff] }
 0x219   : > { %v976_v31 = vadd.f32 %v926_v11, %v680_v8  ;;  %v681_v43 = vpop.f32.mrf.mxu1  ;;  %v2183_v7 = vpack.c.bf16 %v2152_v55, %v2151_v24  ;;  %v5917_v24 = vld [vmem:[#allocation4_spill] sm:$0xff] }
 0x21a   : > { %v682_v13 = vadd.f32 %v681_v43, %v4033_v63  ;;  %v2767_v63 = vld [vmem:[%s5864_s3 + $0x68] sm:$0xff]  ;;  %v5913_v43 = vld [vmem:[#allocation2_spill] sm:$0xff] }
 0x21b   : > { %v1504_v23 = vpop.f32.mrf.mxu0  ;;  %v1264_v14 = vadd.f32 %v4561_v49, %v976_v31  ;;  %v4646_v11 = vpop.f32.mrf.mxu3  ;;  %2862 = vperm.xlu1 %3806, %v2767_v63  }
 0x21d   : > { %v4639_v1 = vadd.f32 %v1502_v42, %v1264_v14 }
 0x21f   : > { %5911 = vst [vmem:[#allocation6_spill] sm:$0xff] %v4639_v1 }
 0x220   : > { %v928_v20 = vpop.f32.mrf.mxu2 }
 0x221   : > { %v977_v49 = vadd.f32 %v928_v20, %v682_v13  ;;  %v684_v50 = vpop.f32.mrf.mxu1  ;;  %v1860_v13 = vld [vmem:[%s3871_s28 + $0x9c] sm:$0xff] }
 0x222   : > { %v685_v61 = vadd.f32 %v684_v50, %v5913_v43  ;;  %v2435_v20 = vld [vmem:[%s3871_s28 + $0x96] sm:$0xff]  ;;  %v5915_v50 = vld [vmem:[#allocation3_spill] sm:$0xff]  ;;  %v1893_v43 = vpack.c.bf16 %v1860_v13, %v1859_v59 }
 0x223   : > { %v1507_v8 = vpop.f32.mrf.mxu0  ;;  %v1265_v42 = vadd.f32 %v4576_v22, %v977_v49  ;;  %v4658_v54 = vpop.f32.mrf.mxu3  ;;  %v2436_v49 = vld [vmem:[%s3871_s28 + $0x9e] sm:$0xff] }
 0x224   : > { %3684 = vmatmul.msk.bf16.gmra.mxu1 %vm334_vm0, %v1891_v10 }
 0x225   : > { %3711 = vmatmul.msk.bf16.gmra.mxu2 %vm334_vm0, %v1892_v19  ;;  %v4655_v31 = vadd.f32 %v1504_v23, %v1265_v42  ;;  %v2765_v23 = vld [vmem:[%s5864_s3 + $0x58] sm:$0xff] }
 0x226   : > { %3765 = vmatmul.msk.bf16.gmra.mxu0 %vm334_vm0, %v2468_v3  ;;  %2852 = vperm.xlu2 %3807, %v2765_v23  }
 0x227   : > { %5912 = vst [vmem:[#allocation7_spill] sm:$0xff] %v4655_v31 }
 0x228   : > { %v931_v22 = vpop.f32.mrf.mxu2  ;;  %3741 = vmatmul.msk.bf16.gmra.mxu3 %vm334_vm0, %v2183_v7 }
 0x229   : > { %v978_v14 = vadd.f32 %v931_v22, %v685_v61  ;;  %v686_v18 = vpop.f32.mrf.mxu1  ;;  %v2469_v61 = vpack.c.bf16 %v2436_v49, %v2435_v20  ;;  %v2153_v20 = vld [vmem:[%s3871_s28 + $0xc5] sm:$0xff]  ;;  %v2154_v49 = vld [vmem:[%s3871_s28 + $0xcd] sm:$0xff] }
 0x22a   : > { %v687_v3 = vadd.f32 %v686_v18, %v5915_v50  ;;  %v2769_v18 = vld [vmem:[%s5864_s3 + $0x78] sm:$0xff]  ;;  %v1861_v50 = vld [vmem:[%s3871_s28 + $0xa4] sm:$0xff] }
 0x22b   : > { %v1509_v10 = vpop.f32.mrf.mxu0  ;;  %v1266_v29 = vadd.f32 %v4592_v37, %v978_v14  ;;  %v4674_v14 = vpop.f32.mrf.mxu3  ;;  %2872 = vperm.xlu0 %3805, %v2769_v18  }
 0x22d   : > { %v4667_v57 = vadd.f32 %v1507_v8, %v1266_v29 }
 0x22f   : > { %5914 = vst [vmem:[#allocation2_spill] sm:$0xff] %v4667_v57 }
 0x230   : > { %v933_v42 = vpop.f32.mrf.mxu2 }
 0x231   : > { %v979_v37 = vadd.f32 %v933_v42, %v687_v3  ;;  %v689_v63 = vpop.f32.mrf.mxu1  ;;  %v2184_v3 = vpack.c.bf16 %v2154_v49, %v2153_v20 }
 0x232   : > { %v690_v55 = vadd.f32 %v689_v63, %v5917_v24  ;;  %v2437_v63 = vld [vmem:[%s3871_s28 + $0xa6] sm:$0xff] }
 0x233   : > { %v1512_v22 = vpop.f32.mrf.mxu0  ;;  %v1267_v8 = vadd.f32 %v4604_v45, %v979_v37  ;;  %v4686_v7 = vpop.f32.mrf.mxu3  ;;  %v1862_v37 = vld [vmem:[%s3871_s28 + $0xac] sm:$0xff] }
 0x234   : > { %3685 = vmatmul.msk.bf16.gmra.mxu1 %vm334_vm0, %v1892_v19  ;;  %v1894_v24 = vpack.c.bf16 %v1862_v37, %v1861_v50  ;;  %v2155_v50 = vld [vmem:[%s3871_s28 + $0xd5] sm:$0xff] }
 0x235   : > { %3712 = vmatmul.msk.bf16.gmra.mxu2 %vm334_vm0, %v1893_v43  ;;  %v4683_v29 = vadd.f32 %v1509_v10, %v1267_v8  ;;  %v2770_v10 = vld [vmem:[%s5864_s3 + $0x80] sm:$0xff]  ;;  %v1863_v37 = vld [vmem:[%s3871_s28 + $0xb4] sm:$0xff] }
 0x236   : > { %3766 = vmatmul.msk.bf16.gmra.mxu0 %vm334_vm0, %v2469_v61  ;;  %v2438_v61 = vld [vmem:[%s3871_s28 + $0xae] sm:$0xff]  ;;  %2877 = vperm.xlu1 %3806, %v2770_v10   ;;  %v2156_v10 = vld [vmem:[%s3871_s28 + $0xdd] sm:$0xff] }
 0x237   : > { %5916 = vst [vmem:[#allocation3_spill] sm:$0xff] %v4683_v29 }
 0x238   : > { %v936_v45 = vpop.f32.mrf.mxu2  ;;  %3742 = vmatmul.msk.bf16.gmra.mxu3 %vm334_vm0, %v2184_v3 }
 0x239   : > { %v980_v59 = vadd.f32 %v936_v45, %v690_v55  ;;  %v691_v23 = vpop.f32.mrf.mxu1 }
 0x23b   : > { %v1514_v19 = vpop.f32.mrf.mxu0  ;;  %v1268_v13 = vadd.f32 %v4620_v44, %v980_v59  ;;  %v2470_v44 = vpack.c.bf16 %v2438_v61, %v2437_v63  ;;  %v4702_v59 = vpop.f32.mrf.mxu3  ;;  %v2772_v63 = vld [vmem:[%s5864_s3 + $0x90] sm:$0xff]  ;;  %v2185_v61 = vpack.c.bf16 %v2156_v10, %v2155_v50 }
 0x23c   : > { %2887 = vperm.xlu0 %3805, %v2772_v63  }
 0x23d   : > { %v4695_v42 = vadd.f32 %v1512_v22, %v1268_v13  ;;  %v2768_v22 = vld [vmem:[%s5864_s3 + $0x70] sm:$0xff] }
 0x23e   : > { %2867 = vperm.xlu2 %3807, %v2768_v22  }
 0x23f   : > { %5918 = vst [vmem:[#allocation4_spill] sm:$0xff] %v4695_v42 }
 0x240   : > { %v938_v8 = vpop.f32.mrf.mxu2 }
 0x241   : > { %v1700_v18 = vpop.f32.mrf.mxu1  ;;  %v1864_v8 = vld [vmem:[%s3871_s28 + $0xbc] sm:$0xff] }
 0x242   : > { %v1804_v55 = vadd.f32 %v1700_v18, %v4178_v16  ;;  %v2439_v18 = vld [vmem:[%s3871_s28 + $0xb6] sm:$0xff] }
 0x243   : > { %v2564_v45 = vpop.f32.mrf.mxu0  ;;  %v4711_v49 = vpop.f32.mrf.mxu3 }
 0x244   : > { %3686 = vmatmul.msk.bf16.gmra.mxu1 %vm334_vm0, %v1893_v43 }
 0x245   : > { %3713 = vmatmul.msk.bf16.gmra.mxu2 %vm334_vm0, %v1894_v24 }
 0x246   : > { %3767 = vmatmul.msk.bf16.gmra.mxu0 %vm334_vm0, %v2470_v44  ;;  %v2440_v44 = vld [vmem:[%s3871_s28 + $0xbe] sm:$0xff] }
 0x248   : > { %v1988_v16 = vpop.f32.mrf.mxu2  ;;  %3743 = vmatmul.msk.bf16.gmra.mxu3 %vm334_vm0, %v2185_v61 }
 0x249   : > { %v2092_v23 = vadd.f32 %v1988_v16, %v1804_v55  ;;  %v1702_v19 = vpop.f32.mrf.mxu1  ;;  %v2471_v16 = vpack.c.bf16 %v2440_v44, %v2439_v18  ;;  %v1865_v44 = vld [vmem:[%s3871_s28 + $0xc4] sm:$0xff] }
 0x24a   : > { %v1805_v13 = vadd.f32 %v1702_v19, %v4192_v47 }
 0x24b   : > { %v2566_v20 = vpop.f32.mrf.mxu0  ;;  %v2380_v43 = vadd.f32 %v4646_v11, %v2092_v23  ;;  %v1895_v11 = vpack.c.bf16 %v1864_v8, %v1863_v37  ;;  %v4727_v19 = vpop.f32.mrf.mxu3  ;;  %v2158_v8 = vld [vmem:[%s3871_s28 + $0xed] sm:$0xff] }
 0x24d   : > { %v4716_v3 = vadd.f32 %v2564_v45, %v2380_v43 }
 0x250   : > { %v1990_v47 = vpop.f32.mrf.mxu2 }
 0x251   : > { %v2093_v55 = vadd.f32 %v1990_v47, %v1805_v13  ;;  %v1705_v22 = vpop.f32.mrf.mxu1  ;;  %v2771_v47 = vld [vmem:[%s5864_s3 + $0x88] sm:$0xff] }
 0x252   : > { %v1806_v45 = vadd.f32 %v1705_v22, %v4203_v9  ;;  %v2773_v9 = vld [vmem:[%s5864_s3 + $0x98] sm:$0xff]  ;;  %v1866_v22 = vld [vmem:[%s3871_s28 + $0xcc] sm:$0xff]  ;;  %2882 = vperm.xlu2 %3807, %v2771_v47  }
 0x253   : > { %v2569_v23 = vpop.f32.mrf.mxu0  ;;  %v2381_v43 = vadd.f32 %v4658_v54, %v2093_v55  ;;  %2892 = vperm.xlu1 %3806, %v2773_v9   ;;  %v4739_v63 = vpop.f32.mrf.mxu3 }
 0x254   : > { %3687 = vmatmul.msk.bf16.gmra.mxu1 %vm334_vm0, %v1894_v24 }
 0x255   : > { %3714 = vmatmul.msk.bf16.gmra.mxu2 %vm334_vm0, %v1895_v11  ;;  %v4733_v13 = vadd.f32 %v2566_v20, %v2381_v43  ;;  %v2157_v20 = vld [vmem:[%s3871_s28 + $0xe5] sm:$0xff] }
 0x256   : > { %3768 = vmatmul.msk.bf16.gmra.mxu0 %vm334_vm0, %v2471_v16  ;;  %v2186_v55 = vpack.c.bf16 %v2158_v8, %v2157_v20  ;;  %v2441_v16 = vld [vmem:[%s3871_s28 + $0xc6] sm:$0xff] }
 0x257   : > { %v2775_v20 = vld [vmem:[%s5864_s3 + $0xa8] sm:$0xff] }
 0x258   : > { %v1993_v50 = vpop.f32.mrf.mxu2  ;;  %3744 = vmatmul.msk.bf16.gmra.mxu3 %vm334_vm0, %v2186_v55  ;;  %2902 = vperm.xlu0 %3805, %v2775_v20  }
 0x259   : > { %v2094_v10 = vadd.f32 %v1993_v50, %v1806_v45  ;;  %v1707_v54 = vpop.f32.mrf.mxu1  ;;  %v2442_v45 = vld [vmem:[%s3871_s28 + $0xce] sm:$0xff] }
 0x25a   : > { %v1807_v24 = vadd.f32 %v1707_v54, %v4217_v0  ;;  %v2472_v50 = vpack.c.bf16 %v2442_v45, %v2441_v16  ;;  %v2159_v16 = vld [vmem:[%s3871_s28 + $0xf5] sm:$0xff]  ;;  %v2160_v45 = vld [vmem:[%s3871_s28 + $0xfd] sm:$0xff] }
 0x25b   : > { %v2571_v37 = vpop.f32.mrf.mxu0  ;;  %v2382_v61 = vadd.f32 %v4674_v14, %v2094_v10  ;;  %v1896_v14 = vpack.c.bf16 %v1866_v22, %v1865_v44  ;;  %v4755_v54 = vpop.f32.mrf.mxu3 }
 0x25d   : > { %v4744_v18 = vadd.f32 %v2569_v23, %v2382_v61 }
 0x260   : > { %v1995_v0 = vpop.f32.mrf.mxu2 }
 0x261   : > { %v2095_v43 = vadd.f32 %v1995_v0, %v1807_v24  ;;  %v1710_v9 = vpop.f32.mrf.mxu1 }
 0x262   : > { %v1808_v23 = vadd.f32 %v1710_v9, %v4229_v12  ;;  %v2779_v9 = vld [vmem:[%s5864_s3 + $0xc8] sm:$0xff] }
 0x263   : > { %v2574_v10 = vpop.f32.mrf.mxu0  ;;  %v2383_v61 = vadd.f32 %v4686_v7, %v2095_v43  ;;  %v2776_v7 = vld [vmem:[%s5864_s3 + $0xb0] sm:$0xff]  ;;  %v4770_v55 = vpop.f32.mrf.mxu3 }
 0x264   : > { %3688 = vmatmul.msk.bf16.gmra.mxu1 %vm334_vm0, %v1895_v11  ;;  %2907 = vperm.xlu1 %3806, %v2776_v7   ;;  %v1867_v43 = vld [vmem:[%s3871_s28 + $0xd4] sm:$0xff] }
 0x265   : > { %3715 = vmatmul.msk.bf16.gmra.mxu2 %vm334_vm0, %v1896_v14  ;;  %v4764_v12 = vadd.f32 %v2571_v37, %v2383_v61  ;;  %v2778_v37 = vld [vmem:[%s5864_s3 + $0xc0] sm:$0xff] }
 0x266   : > { %3769 = vmatmul.msk.bf16.gmra.mxu0 %vm334_vm0, %v2472_v50  ;;  %2917 = vperm.xlu0 %3805, %v2778_v37   ;;  %v1868_v50 = vld [vmem:[%s3871_s28 + $0xdc] sm:$0xff] }
 0x267   : > { %v2444_v61 = vld [vmem:[%s3871_s28 + $0xde] sm:$0xff] }
 0x268   : > { %v1998_v24 = vpop.f32.mrf.mxu2 }
 0x269   : > { %v2096_v8 = vadd.f32 %v1998_v24, %v1808_v23  ;;  %v1712_v11 = vpop.f32.mrf.mxu1  ;;  %v2443_v23 = vld [vmem:[%s3871_s28 + $0xd6] sm:$0xff]  ;;  %v1897_v24 = vpack.c.bf16 %v1868_v50, %v1867_v43 }
 0x26a   : > { %v1809_v44 = vadd.f32 %v1712_v11, %v4243_v17  ;;  %v2187_v17 = vpack.c.bf16 %v2160_v45, %v2159_v16  ;;  %v2781_v16 = vld [vmem:[%s5864_s3 + $0xd8] sm:$0xff] }
 0x26b   : > { %v2576_v47 = vpop.f32.mrf.mxu0  ;;  %v2384_v22 = vadd.f32 %v4702_v59, %v2096_v8  ;;  %v2473_v8 = vpack.c.bf16 %v2444_v61, %v2443_v23  ;;  %v2784_v23 = vld [vmem:[%s5864_s3 + $0xf0] sm:$0xff]  ;;  %v2161_v61 = vld [vmem:[%s3871_s28 + $0x105] sm:$0xff] }
 0x26c   : > { %2922 = vperm.xlu1 %3806, %v2779_v9   ;;  %3745 = vmatmul.msk.bf16.gmra.mxu3 %vm334_vm0, %v2187_v17 }
 0x26d   : > { %v4778_v0 = vadd.f32 %v2574_v10, %v2384_v22  ;;  %v4789_v22 = vpop.f32.mrf.mxu3 }
 0x26e   : > { %2932 = vperm.xlu0 %3805, %v2781_v16   ;;  %v2446_v16 = vld [vmem:[%s3871_s28 + $0xee] sm:$0xff] }
 0x270   : > { %v2000_v59 = vpop.f32.mrf.mxu2 }
 0x271   : > { %v2097_v20 = vadd.f32 %v2000_v59, %v1809_v44  ;;  %v1715_v7 = vpop.f32.mrf.mxu1  ;;  %v2162_v59 = vld [vmem:[%s3871_s28 + $0x10d] sm:$0xff] }
 0x272   : > { %v1810_v10 = vadd.f32 %v1715_v7, %v4255_v40  ;;  %v2774_v40 = vld [vmem:[%s5864_s3 + $0xa0] sm:$0xff] }
 0x273   : > { %v2579_v11 = vpop.f32.mrf.mxu0  ;;  %v2385_v37 = vadd.f32 %v4711_v49, %v2097_v20  ;;  %v2782_v49 = vld [vmem:[%s5864_s3 + $0xe0] sm:$0xff]  ;;  %2897 = vperm.xlu2 %3807, %v2774_v40  }
 0x274   : > { %3689 = vmatmul.msk.bf16.gmra.mxu1 %vm334_vm0, %v1896_v14  ;;  %2937 = vperm.xlu1 %3806, %v2782_v49   ;;  %v1869_v7 = vld [vmem:[%s3871_s28 + $0xe4] sm:$0xff] }
 0x275   : > { %3716 = vmatmul.msk.bf16.gmra.mxu2 %vm334_vm0, %v1897_v24  ;;  %v4798_v44 = vadd.f32 %v2576_v47, %v2385_v37  ;;  %v4807_v17 = vpop.f32.mrf.mxu3  ;;  %v2445_v37 = vld [vmem:[%s3871_s28 + $0xe6] sm:$0xff] }
 0x276   : > { %3770 = vmatmul.msk.bf16.gmra.mxu0 %vm334_vm0, %v2473_v8  ;;  %v2785_v8 = vld [vmem:[%s5864_s3 + $0xf8] sm:$0xff]  ;;  %2947 = vperm.xlu0 %3805, %v2784_v23  }
 0x278   : > { %v2003_v14 = vpop.f32.mrf.mxu2 }
 0x279   : > { %v2098_v45 = vadd.f32 %v2003_v14, %v1810_v10  ;;  %v1717_v43 = vpop.f32.mrf.mxu1  ;;  %v2188_v10 = vpack.c.bf16 %v2162_v59, %v2161_v61  ;;  %v2787_v61 = vld [vmem:[%s5864_s3 + $0x108] sm:$0xff] }
 0x27a   : > { %v1811_v47 = vadd.f32 %v1717_v43, %v4269_v34  ;;  %v1870_v34 = vld [vmem:[%s3871_s28 + $0xec] sm:$0xff] }
 0x27b   : > { %v2581_v9 = vpop.f32.mrf.mxu0  ;;  %v2386_v50 = vadd.f32 %v4727_v19, %v2098_v45  ;;  %v1898_v14 = vpack.c.bf16 %v1870_v34, %v1869_v7  ;;  %v2474_v45 = vpack.c.bf16 %v2446_v16, %v2445_v37  ;;  %v2163_v34 = vld [vmem:[%s3871_s28 + $0x115] sm:$0xff]  ;;  %v2164_v37 = vld [vmem:[%s3871_s28 + $0x11d] sm:$0xff] }
 0x27c   : > { %2952 = vperm.xlu1 %3806, %v2785_v8   ;;  %3746 = vmatmul.msk.bf16.gmra.mxu3 %vm334_vm0, %v2188_v10  ;;  %v2790_v10 = vld [vmem:[%s5864_s3 + $0x120] sm:$0xff] }
 0x27d   : > { %v4815_v20 = vadd.f32 %v2579_v11, %v2386_v50  ;;  %v4826_v50 = vpop.f32.mrf.mxu3 }
 0x27e   : > { %2962 = vperm.xlu0 %3805, %v2787_v61  }
 0x280   : > { %v2005_v19 = vpop.f32.mrf.mxu2 }
 0x281   : > { %v2099_v40 = vadd.f32 %v2005_v19, %v1811_v47  ;;  %v1720_v49 = vpop.f32.mrf.mxu1  ;;  %v1871_v19 = vld [vmem:[%s3871_s28 + $0xf4] sm:$0xff] }
 0x282   : > { %v1812_v11 = vadd.f32 %v1720_v49, %v4281_v38  ;;  %v2788_v38 = vld [vmem:[%s5864_s3 + $0x110] sm:$0xff]  ;;  %v1872_v49 = vld [vmem:[%s3871_s28 + $0xfc] sm:$0xff] }
 0x283   : > { %v2584_v43 = vpop.f32.mrf.mxu0  ;;  %v2387_v42 = vadd.f32 %v4739_v63, %v2099_v40  ;;  %v2189_v40 = vpack.c.bf16 %v2164_v37, %v2163_v34 }
 0x284   : > { %3690 = vmatmul.msk.bf16.gmra.mxu1 %vm334_vm0, %v1897_v24  ;;  %2967 = vperm.xlu1 %3806, %v2788_v38  }
 0x285   : > { %3717 = vmatmul.msk.bf16.gmra.mxu2 %vm334_vm0, %v1898_v14  ;;  %v4835_v47 = vadd.f32 %v2581_v9, %v2387_v42  ;;  %v4841_v8 = vpop.f32.mrf.mxu3  ;;  %v2777_v42 = vld [vmem:[%s5864_s3 + $0xb8] sm:$0xff] }
 0x286   : > { %3771 = vmatmul.msk.bf16.gmra.mxu0 %vm334_vm0, %v2474_v45  ;;  %2912 = vperm.xlu2 %3807, %v2777_v42   ;;  %v2447_v45 = vld [vmem:[%s3871_s28 + $0xf6] sm:$0xff] }
 0x287   : > { %2977 = vperm.xlu0 %3805, %v2790_v10   ;;  %v2793_v10 = vld [vmem:[%s5864_s3 + $0x138] sm:$0xff] }
 0x288   : > { %v2008_v63 = vpop.f32.mrf.mxu2 }
 0x289   : > { %v2100_v23 = vadd.f32 %v2008_v63, %v1812_v11  ;;  %v1722_v24 = vpop.f32.mrf.mxu1  ;;  %v2448_v11 = vld [vmem:[%s3871_s28 + $0xfe] sm:$0xff]  ;;  %v1899_v63 = vpack.c.bf16 %v1872_v49, %v1871_v19 }
 0x28a   : > { %v1813_v59 = vadd.f32 %v1722_v24, %v4295_v58  ;;  %v2791_v58 = vld [vmem:[%s5864_s3 + $0x128] sm:$0xff] }
 0x28b   : > { %v2586_v7 = vpop.f32.mrf.mxu0  ;;  %v2388_v9 = vadd.f32 %v4755_v54, %v2100_v23  ;;  %v2475_v23 = vpack.c.bf16 %v2448_v11, %v2447_v45  ;;  %v2165_v45 = vld [vmem:[%s3871_s28 + $0x125] sm:$0xff]  ;;  %v2166_v11 = vld [vmem:[%s3871_s28 + $0x12d] sm:$0xff] }
 0x28c   : > { %2982 = vperm.xlu1 %3806, %v2791_v58   ;;  %3747 = vmatmul.msk.bf16.gmra.mxu3 %vm334_vm0, %v2189_v40 }
 0x28d   : > { %v4852_v16 = vadd.f32 %v2584_v43, %v2388_v9  ;;  %v4863_v42 = vpop.f32.mrf.mxu3  ;;  %v2780_v9 = vld [vmem:[%s5864_s3 + $0xd0] sm:$0xff] }
 0x28e   : > { %2927 = vperm.xlu2 %3807, %v2780_v9   ;;  %v2450_v9 = vld [vmem:[%s3871_s28 + $0x10e] sm:$0xff] }
 0x28f   : > { %2992 = vperm.xlu0 %3805, %v2793_v10  }
 0x290   : > { %v2010_v54 = vpop.f32.mrf.mxu2 }
 0x291   : > { %v2101_v61 = vadd.f32 %v2010_v54, %v1813_v59  ;;  %v1725_v38 = vpop.f32.mrf.mxu1 }
 0x292   : > { %v1814_v43 = vadd.f32 %v1725_v38, %v4307_v5  ;;  %v2190_v38 = vpack.c.bf16 %v2166_v11, %v2165_v45 }
 0x293   : > { %v2589_v24 = vpop.f32.mrf.mxu0  ;;  %v2389_v34 = vadd.f32 %v4770_v55, %v2101_v61  ;;  %v2794_v55 = vld [vmem:[%s5864_s3 + $0x140] sm:$0xf]  ;;  %v1873_v61 = vld [vmem:[%s3871_s28 + $0x104] sm:$0xff] }
 0x294   : > { %3691 = vmatmul.msk.bf16.gmra.mxu1 %vm334_vm0, %v1898_v14  ;;  %2997 = vperm.xlu1 %3806, %v2794_v55  }
 0x295   : > { %3718 = vmatmul.msk.bf16.gmra.mxu2 %vm334_vm0, %v1899_v63  ;;  %v4875_v5 = vadd.f32 %v2586_v7, %v2389_v34  ;;  %v4881_v40 = vpop.f32.mrf.mxu3  ;;  %v2783_v7 = vld [vmem:[%s5864_s3 + $0xe8] sm:$0xff] }
 0x296   : > { %3772 = vmatmul.msk.bf16.gmra.mxu0 %vm334_vm0, %v2475_v23  ;;  %2942 = vperm.xlu2 %3807, %v2783_v7   ;;  %v1874_v23 = vld [vmem:[%s3871_s28 + $0x10c] sm:$0xff] }
 0x297   : > { %v1900_v55 = vpack.c.bf16 %v1874_v23, %v1873_v61  ;;  %v2167_v23 = vld [vmem:[%s3871_s28 + $0x135] sm:$0xff] }
 0x298   : > { %v2013_v59 = vpop.f32.mrf.mxu2 }
 0x299   : > { %v2102_v14 = vadd.f32 %v2013_v59, %v1814_v43  ;;  %v1727_v37 = vpop.f32.mrf.mxu1  ;;  %v2449_v43 = vld [vmem:[%s3871_s28 + $0x106] sm:$0xff] }
 0x29a   : > { %v1815_v19 = vadd.f32 %v1727_v37, %v4321_v28  ;;  %v2476_v59 = vpack.c.bf16 %v2450_v9, %v2449_v43  ;;  %v1875_v9 = vld [vmem:[%s3871_s28 + $0x114] sm:$0xff] }
 0x29b   : > { %v2591_v58 = vpop.f32.mrf.mxu0  ;;  %v2390_v49 = vadd.f32 %v4789_v22, %v2102_v14 }
 0x29c   : > { %3748 = vmatmul.msk.bf16.gmra.mxu3 %vm334_vm0, %v2190_v38 }
 0x29d   : > { %v4889_v54 = vadd.f32 %v2589_v24, %v2390_v49  ;;  %v4897_v14 = vpop.f32.mrf.mxu3  ;;  %v2786_v24 = vld [vmem:[%s5864_s3 + $0x100] sm:$0xff] }
 0x29e   : > { %2957 = vperm.xlu2 %3807, %v2786_v24  }
 0x2a0   : > { %v2015_v28 = vpop.f32.mrf.mxu2 }
 0x2a1   : > { %v2103_v34 = vadd.f32 %v2015_v28, %v1815_v19  ;;  %v1730_v10 = vpop.f32.mrf.mxu1 }
 0x2a2   : > { %v1816_v37 = vadd.f32 %v1730_v10, %v4333_v39  ;;  %v2451_v10 = vld [vmem:[%s3871_s28 + $0x116] sm:$0xff] }
 0x2a3   : > { %v2594_v22 = vpop.f32.mrf.mxu0  ;;  %v2391_v7 = vadd.f32 %v4807_v17, %v2103_v34  ;;  %v1876_v34 = vld [vmem:[%s3871_s28 + $0x11c] sm:$0xff] }
 0x2a4   : > { %3692 = vmatmul.msk.bf16.gmra.mxu1 %vm334_vm0, %v1899_v63  ;;  %v2789_v63 = vld [vmem:[%s5864_s3 + $0x118] sm:$0xff] }
 0x2a5   : > { %3719 = vmatmul.msk.bf16.gmra.mxu2 %vm334_vm0, %v1900_v55  ;;  %v4906_v39 = vadd.f32 %v2591_v58, %v2391_v7  ;;  %v4909_v61 = vpop.f32.mrf.mxu3  ;;  %v2168_v58 = vld [vmem:[%s3871_s28 + $0x13d] sm:$0xff]  ;;  %v1901_v7 = vpack.c.bf16 %v1876_v34, %v1875_v9 }
 0x2a6   : > { %3773 = vmatmul.msk.bf16.gmra.mxu0 %vm334_vm0, %v2476_v59  ;;  %2972 = vperm.xlu2 %3807, %v2789_v63   ;;  %v2191_v28 = vpack.c.bf16 %v2168_v58, %v2167_v23  ;;  %v2452_v59 = vld [vmem:[%s3871_s28 + $0x11e] sm:$0xff] }
 0x2a7   : > { %v5919_v58 = vld [vmem:[#allocation5_spill] sm:$0xff] }
 0x2a8   : > { %v2018_v19 = vpop.f32.mrf.mxu2 }
 0x2a9   : > { %v2104_v49 = vadd.f32 %v2018_v19, %v1816_v37  ;;  %v1732_v45 = vpop.f32.mrf.mxu1  ;;  %v2477_v19 = vpack.c.bf16 %v2452_v59, %v2451_v10  ;;  %v2170_v10 = vld [vmem:[%s3871_s28 + $0x14d] sm:$0xff] }
 0x2aa   : > { %v1817_v11 = vadd.f32 %v1732_v45, %v4347_v46 }
 0x2ab   : > { %v2596_v17 = vpop.f32.mrf.mxu0  ;;  %v2392_v38 = vadd.f32 %v4826_v50, %v2104_v49 }
 0x2ac   : > { %3749 = vmatmul.msk.bf16.gmra.mxu3 %vm334_vm0, %v2191_v28 }
 0x2ad   : > { %v4917_v43 = vadd.f32 %v2594_v22, %v2392_v38  ;;  %v4925_v49 = vpop.f32.mrf.mxu3  ;;  %v2792_v22 = vld [vmem:[%s5864_s3 + $0x130] sm:$0xff] }
 0x2ae   : > { %2987 = vperm.xlu2 %3807, %v2792_v22  }
 0x2b0   : > { %v2020_v46 = vpop.f32.mrf.mxu2 }
 0x2b1   : > { %v2105_v37 = vadd.f32 %v2020_v46, %v1817_v11  ;;  %v1735_v24 = vpop.f32.mrf.mxu1  ;;  %v1877_v46 = vld [vmem:[%s3871_s28 + $0x124] sm:$0xff] }
 0x2b2   : > { %v1818_v45 = vadd.f32 %v1735_v24, %v4359_v48  ;;  %v1878_v24 = vld [vmem:[%s3871_s28 + $0x12c] sm:$0xff] }
 0x2b3   : > { %v2599_v50 = vpop.f32.mrf.mxu0  ;;  %v2393_v63 = vadd.f32 %v4841_v8, %v2105_v37 }
 0x2b4   : > { %3693 = vmatmul.msk.bf16.gmra.mxu1 %vm334_vm0, %v1900_v55  ;;  %v2169_v55 = vld [vmem:[%s3871_s28 + $0x145] sm:$0xff] }
 0x2b5   : > { %3720 = vmatmul.msk.bf16.gmra.mxu2 %vm334_vm0, %v1901_v7  ;;  %v4934_v48 = vadd.f32 %v2596_v17, %v2393_v63  ;;  %v4937_v8 = vpop.f32.mrf.mxu3  ;;  %v2192_v37 = vpack.c.bf16 %v2170_v10, %v2169_v55  ;;  %v2454_v17 = vld [vmem:[%s3871_s28 + $0x12e] sm:$0xff] }
 0x2b6   : > { %3774 = vmatmul.msk.bf16.gmra.mxu0 %vm334_vm0, %v2477_v19  ;;  %v2453_v19 = vld [vmem:[%s3871_s28 + $0x126] sm:$0xff] }
 0x2b8   : > { %v2023_v11 = vpop.f32.mrf.mxu2 }
 0x2b9   : > { %v2106_v38 = vadd.f32 %v2023_v11, %v1818_v45  ;;  %v1737_v23 = vpop.f32.mrf.mxu1  ;;  %v1902_v11 = vpack.c.bf16 %v1878_v24, %v1877_v46  ;;  %v2172_v24 = vld [vmem:[%s3871_s28 + $0x15d] sm:$0xff] }
 0x2ba   : > { %v1819_v9 = vadd.f32 %v1737_v23, %v5919_v58  ;;  %v2478_v23 = vpack.c.bf16 %v2454_v17, %v2453_v19  ;;  %v1879_v17 = vld [vmem:[%s3871_s28 + $0x134] sm:$0xff] }
 0x2bb   : > { %v2601_v28 = vpop.f32.mrf.mxu0  ;;  %v2394_v34 = vadd.f32 %v4863_v42, %v2106_v38 }
 0x2bc   : > { %3750 = vmatmul.msk.bf16.gmra.mxu3 %vm334_vm0, %v2192_v37 }
 0x2bd   : > { %v4942_v59 = vadd.f32 %v2599_v50, %v2394_v34  ;;  %v4950_v38 = vpop.f32.mrf.mxu3 }
 0x2c0   : > { %v2025_v45 = vpop.f32.mrf.mxu2 }
 0x2c1   : > { %v2107_v22 = vadd.f32 %v2025_v45, %v1819_v9  ;;  %v1740_v63 = vpop.f32.mrf.mxu1 }
 0x2c2   : > { %v1820_v58 = vadd.f32 %v1740_v63, %v4383_v2  ;;  %v2455_v63 = vld [vmem:[%s3871_s28 + $0x136] sm:$0xff] }
 0x2c3   : > { %v2604_v42 = vpop.f32.mrf.mxu0  ;;  %v2395_v50 = vadd.f32 %v4881_v40, %v2107_v22  ;;  %v1880_v22 = vld [vmem:[%s3871_s28 + $0x13c] sm:$0xff] }
 0x2c4   : > { %3694 = vmatmul.msk.bf16.gmra.mxu1 %vm334_vm0, %v1901_v7  ;;  %v2171_v7 = vld [vmem:[%s3871_s28 + $0x155] sm:$0xff] }
 0x2c5   : > { %3721 = vmatmul.msk.bf16.gmra.mxu2 %vm334_vm0, %v1902_v11  ;;  %v4956_v9 = vadd.f32 %v2601_v28, %v2395_v50  ;;  %v4959_v37 = vpop.f32.mrf.mxu3  ;;  %v2193_v45 = vpack.c.bf16 %v2172_v24, %v2171_v7  ;;  %v2456_v28 = vld [vmem:[%s3871_s28 + $0x13e] sm:$0xff] }
 0x2c6   : > { %3775 = vmatmul.msk.bf16.gmra.mxu0 %vm334_vm0, %v2478_v23 }
 0x2c8   : > { %v2028_v34 = vpop.f32.mrf.mxu2 }
 0x2c9   : > { %v2108_v2 = vadd.f32 %v2028_v34, %v1820_v58  ;;  %v1742_v55 = vpop.f32.mrf.mxu1  ;;  %v2479_v34 = vpack.c.bf16 %v2456_v28, %v2455_v63  ;;  %v1881_v63 = vld [vmem:[%s3871_s28 + $0x144] sm:$0xff] }
 0x2ca   : > { %v1821_v10 = vadd.f32 %v1742_v55, %v4396_v15  ;;  %v1903_v15 = vpack.c.bf16 %v1880_v22, %v1879_v17  ;;  %v2173_v22 = vld [vmem:[%s3871_s28 + $0x165] sm:$0xf] }
 0x2cb   : > { %v2606_v46 = vpop.f32.mrf.mxu0  ;;  %v2396_v40 = vadd.f32 %v4897_v14, %v2108_v2  ;;  %v2194_v28 = vpack.c.bf16 %v2173_v22, %v2173_v22 }
 0x2cc   : > { %3751 = vmatmul.msk.bf16.gmra.mxu3 %vm334_vm0, %v2193_v45 }
 0x2cd   : > { %v4964_v19 = vadd.f32 %v2604_v42, %v2396_v40  ;;  %v4972_v2 = vpop.f32.mrf.mxu3 }
 0x2d0   : > { %v2030_v23 = vpop.f32.mrf.mxu2 }
 0x2d1   : > { %v2109_v58 = vadd.f32 %v2030_v23, %v1821_v10  ;;  %v1745_v50 = vpop.f32.mrf.mxu1  ;;  %v1882_v23 = vld [vmem:[%s3871_s28 + $0x14c] sm:$0xff] }
 0x2d2   : > { %v1822_v55 = vadd.f32 %v1745_v50, %v4405_v33  ;;  %v2458_v50 = vld [vmem:[%s3871_s28 + $0x14e] sm:$0xff] }
 0x2d3   : > { %v2609_v14 = vpop.f32.mrf.mxu0  ;;  %v2397_v42 = vadd.f32 %v4909_v61, %v2109_v58  ;;  %v2457_v58 = vld [vmem:[%s3871_s28 + $0x146] sm:$0xff] }
 0x2d4   : > { %3695 = vmatmul.msk.bf16.gmra.mxu1 %vm334_vm0, %v1902_v11 }
 0x2d5   : > { %3722 = vmatmul.msk.bf16.gmra.mxu2 %vm334_vm0, %v1903_v15  ;;  %v4978_v10 = vadd.f32 %v2606_v46, %v2397_v42  ;;  %v4981_v45 = vpop.f32.mrf.mxu3  ;;  %v1904_v42 = vpack.c.bf16 %v1882_v23, %v1881_v63 }
 0x2d6   : > { %3776 = vmatmul.msk.bf16.gmra.mxu0 %vm334_vm0, %v2479_v34 }
 0x2d8   : > { %v2033_v40 = vpop.f32.mrf.mxu2 }
 0x2d9   : > { %v2110_v7 = vadd.f32 %v2033_v40, %v1822_v55  ;;  %v1747_v33 = vpop.f32.mrf.mxu1 }
 0x2da   : > { %v1823_v24 = vadd.f32 %v1747_v33, %v4418_v32  ;;  %v2480_v32 = vpack.c.bf16 %v2458_v50, %v2457_v58  ;;  %v1883_v58 = vld [vmem:[%s3871_s28 + $0x154] sm:$0xff]  ;;  %v2460_v50 = vld [vmem:[%s3871_s28 + $0x15e] sm:$0xff] }
 0x2db   : > { %v2611_v17 = vpop.f32.mrf.mxu0  ;;  %v2398_v61 = vadd.f32 %v4925_v49, %v2110_v7 }
 0x2dc   : > { %3752 = vmatmul.msk.bf16.gmra.mxu3 %vm334_vm0, %v2194_v28 }
 0x2dd   : > { %v4985_v11 = vadd.f32 %v2609_v14, %v2398_v61  ;;  %v4993_v49 = vpop.f32.mrf.mxu3 }
 0x2e0   : > { %v2035_v46 = vpop.f32.mrf.mxu2 }
 0x2e1   : > { %v2111_v34 = vadd.f32 %v2035_v46, %v1823_v24  ;;  %v1750_v55 = vpop.f32.mrf.mxu1 }
 0x2e2   : > { %v1824_v40 = vadd.f32 %v1750_v55, %v4428_v27 }
 0x2e3   : > { %v2614_v33 = vpop.f32.mrf.mxu0  ;;  %v2399_v14 = vadd.f32 %v4937_v8, %v2111_v34 }
 0x2e4   : > { %3696 = vmatmul.msk.bf16.gmra.mxu1 %vm334_vm0, %v1903_v15  ;;  %v1884_v15 = vld [vmem:[%s3871_s28 + $0x15c] sm:$0xff] }
 0x2e5   : > { %v4997_v7 = vadd.f32 %v2611_v17, %v2399_v14  ;;  %3723 = vmatmul.msk.bf16.gmra.mxu2 %vm334_vm0, %v1904_v42  ;;  %v5002_v28 = vpop.f32.mrf.mxu3  ;;  %v2459_v17 = vld [vmem:[%s3871_s28 + $0x156] sm:$0xff] }
 0x2e6   : > { %3777 = vmatmul.msk.bf16.gmra.mxu0 %vm334_vm0, %v2480_v32  ;;  %v1905_v32 = vpack.c.bf16 %v1884_v15, %v1883_v58  ;;  %v2481_v14 = vpack.c.bf16 %v2460_v50, %v2459_v17  ;;  %v1885_v50 = vld [vmem:[%s3871_s28 + $0x164] sm:$0xf] }
 0x2e8   : > { %v2038_v24 = vpop.f32.mrf.mxu2 }
 0x2e9   : > { %v2112_v61 = vadd.f32 %v2038_v24, %v1824_v40  ;;  %v1752_v27 = vpop.f32.mrf.mxu1 }
 0x2ea   : > { %v1825_v22 = vadd.f32 %v1752_v27, %v4441_v56 }
 0x2eb   : > { %v2616_v63 = vpop.f32.mrf.mxu0  ;;  %v2400_v23 = vadd.f32 %v4950_v38, %v2112_v61 }
 0x2ed   : > { %v5005_v8 = vadd.f32 %v2614_v33, %v2400_v23 }
 0x2ef   : > { %v2341_v24 = vpop.f32.mrf.mxu3 }
 0x2f0   : > { %v2040_v46 = vpop.f32.mrf.mxu2 }
 0x2f1   : > { %v2113_v34 = vadd.f32 %v2040_v46, %v1825_v22  ;;  %v1755_v55 = vpop.f32.mrf.mxu1 }
 0x2f2   : > { %v1826_v40 = vadd.f32 %v1755_v55, %v4450_v51 }
 0x2f3   : > { %v2619_v56 = vpop.f32.mrf.mxu0  ;;  %v2401_v38 = vadd.f32 %v4959_v37, %v2113_v34  ;;  %v1597_v37 = vld [vmem:[%s3871_s28 + $0x154] sm:$0xf] }
 0x2f4   : > { %3697 = vmatmul.msk.bf16.gmra.mxu1 %vm334_vm0, %v1904_v42  ;;  %v2461_v42 = vld [vmem:[%s3871_s28 + $0x166] sm:$0xf]  ;;  %v1618_v46 = vpack.c.bf16 %v1597_v37, %v1597_v37 }
 0x2f5   : > { %v5014_v33 = vadd.f32 %v2616_v63, %v2401_v38  ;;  %3724 = vmatmul.msk.bf16.gmra.mxu2 %vm334_vm0, %v1905_v32  ;;  %v1906_v32 = vpack.c.bf16 %v1885_v50, %v1885_v50  ;;  %v5037_v50 = vpop.permute.xlu1 %2807 }
 0x2f6   : > { %3778 = vmatmul.msk.bf16.gmra.mxu0 %vm334_vm0, %v2481_v14  ;;  %v2482_v14 = vpack.c.bf16 %v2461_v42, %v2461_v42  ;;  %5921 = vst [vmem:[#allocation8_spill] sm:$0xff] %v5037_v50  ;;  %v5042_v42 = vpop.permute.xlu2 %2817 }
 0x2f7   : > { %v2343_v58 = vpop.f32.mrf.mxu3  ;;  %5922 = vst [vmem:[#allocation9_spill] sm:$0xff] %v5042_v42 }
 0x2f8   : > { %v2043_v61 = vpop.f32.mrf.mxu2 }
 0x2f9   : > { %v2114_v27 = vadd.f32 %v2043_v61, %v1826_v40  ;;  %v1757_v22 = vpop.f32.mrf.mxu1 }
 0x2fa   : > { %v1827_v51 = vadd.f32 %v1757_v22, %v4462_v26 }
 0x2fb   : > { %v2621_v23 = vpop.f32.mrf.mxu0  ;;  %v2402_v15 = vadd.f32 %v4972_v2, %v2114_v27 }
 0x2fd   : > { %v5020_v17 = vadd.f32 %v2619_v56, %v2402_v15  ;;  %v5032_v56 = vpop.permute.xlu0 %2797 }
 0x2fe   : > { %5920 = vst [vmem:[#allocation5_spill] sm:$0xff] %v5032_v56 }
 0x2ff   : > { %v2346_v61 = vpop.f32.mrf.mxu3 }
 0x300   : > { %v2045_v63 = vpop.f32.mrf.mxu2 }
 0x301   : > { %v2115_v34 = vadd.f32 %v2045_v63, %v1827_v51  ;;  %v1760_v55 = vpop.f32.mrf.mxu1 }
 0x302   : > { %v1828_v40 = vadd.f32 %v1760_v55, %v4476_v30 }
 0x303   : > { %v2624_v38 = vpop.f32.mrf.mxu0  ;;  %v2403_v26 = vadd.f32 %v4981_v45, %v2115_v34 }
 0x304   : > { %3698 = vmatmul.msk.bf16.gmra.mxu1 %vm334_vm0, %v1618_v46 }
 0x305   : > { %v5028_v2 = vadd.f32 %v2621_v23, %v2403_v26  ;;  %3725 = vmatmul.msk.bf16.gmra.mxu2 %vm334_vm0, %v1906_v32  ;;  %v5044_v46 = vpop.permute.xlu0 %2802  ;;  %v5050_v26 = vpop.permute.xlu1 %2812 }
 0x306   : > { %3779 = vmatmul.msk.bf16.gmra.mxu0 %vm334_vm0, %v2482_v14  ;;  %5923 = vst [vmem:[#allocation10_spill] sm:$0xff] %v5044_v46 }
 0x307   : > { %v5035_v37 = vpop.f32.mrf.mxu3 }
 0x308   : > { %v2048_v27 = vpop.f32.mrf.mxu2 }
 0x309   : > { %v2116_v22 = vadd.f32 %v2048_v27, %v1828_v40  ;;  %v1762_v51 = vpop.f32.mrf.mxu1 }
 0x30a   : > { %v1829_v15 = vadd.f32 %v1762_v51, %v4492_v21 }
 0x30b   : > { %v2626_v30 = vpop.f32.mrf.mxu0  ;;  %v2404_v45 = vadd.f32 %v4993_v49, %v2116_v22  ;;  %v5054_v49 = vpop.permute.xlu2 %2822 }
 0x30c   : > { %5925 = vst [vmem:[#allocation12_spill] sm:$0xff] %v5054_v49 }
 0x30d   : > { %v5040_v23 = vadd.f32 %v2624_v38, %v2404_v45  ;;  %v5056_v22 = vpop.permute.xlu0 %2827  ;;  %v5061_v29 = vpop.permute.xlu1 %2832 }
 0x30e   : > { %5926 = vst [vmem:[#allocation13_spill] sm:$0xff] %v5056_v22 }
 0x30f   : > { %v5047_v21 = vpop.f32.mrf.mxu3 }
 0x310   : > { %v2050_v63 = vpop.f32.mrf.mxu2 }
 0x311   : > { %v2117_v34 = vadd.f32 %v2050_v63, %v1829_v15  ;;  %v1765_v55 = vpop.f32.mrf.mxu1 }
 0x312   : > { %v1830_v32 = vadd.f32 %v1765_v55, %v4504_v4 }
 0x313   : > { %v2629_v14 = vpop.f32.mrf.mxu0  ;;  %v2405_v40 = vadd.f32 %v5002_v28, %v2117_v34  ;;  %v5065_v34 = vpop.permute.xlu2 %2837 }
 0x314   : > { %5928 = vst [vmem:[#allocation15_spill] sm:$0xff] %v5065_v34 }
 0x315   : > { %v5052_v27 = vadd.f32 %v2626_v30, %v2405_v40  ;;  %v5067_v40 = vpop.permute.xlu0 %2842 }
 0x316   : > { %5929 = vst [vmem:[#allocation16_spill] sm:$0xff] %v5067_v40 }
 0x317   : > { %5924 = vst [vmem:[#allocation11_spill] sm:$0xff] %v5052_v27  ;;  %v5059_v4 = vpop.f32.mrf.mxu3 }
 0x318   : > { %v2053_v38 = vpop.f32.mrf.mxu2 }
 0x319   : > { %v2118_v51 = vadd.f32 %v2053_v38, %v1830_v32  ;;  %v1767_v45 = vpop.f32.mrf.mxu1 }
 0x31a   : > { %v1831_v15 = vadd.f32 %v1767_v45, %v4520_v60  ;;  %v5072_v45 = vpop.permute.xlu1 %2847 }
 0x31b   : > { %v2631_v63 = vpop.f32.mrf.mxu0  ;;  %v2406_v55 = vadd.f32 %v2341_v24, %v2118_v51  ;;  %5930 = vst [vmem:[#allocation17_spill] sm:$0xff] %v5072_v45  ;;  %v5076_v51 = vpop.permute.xlu2 %2852 }
 0x31d   : > { %v5063_v28 = vadd.f32 %v2629_v14, %v2406_v55  ;;  %v5081_v55 = vld [vmem:[%s5863_s2] ss:$0 sm:$0xff] }
 0x31f   : > { %5927 = vst [vmem:[#allocation14_spill] sm:$0xff] %v5063_v28  ;;  %v5070_v1 = vpop.f32.mrf.mxu3 }
 0x320   : > { %v2055_v30 = vpop.f32.mrf.mxu2 }
 0x321   : > { %v2119_v57 = vadd.f32 %v2055_v30, %v1831_v15  ;;  %v1770_v31 = vpop.f32.mrf.mxu1  ;;  %v5083_v15 = vpop.permute.xlu0 %2857 }
 0x322   : > { %v1832_v32 = vadd.f32 %v1770_v31, %v4529_v36  ;;  %5932 = vst [vmem:[#allocation19_spill] sm:$0xff] %v5083_v15 }
 0x323   : > { %v2634_v38 = vpop.f32.mrf.mxu0  ;;  %v2407_v60 = vadd.f32 %v2343_v58, %v2119_v57  ;;  %v5090_v58 = vadd.f32 %v5081_v55, %v4733_v13  ;;  %v5108_v13 = vadd.f32 %v5081_v55, %v4764_v12 }
 0x325   : > { %v5074_v24 = vadd.f32 %v2631_v63, %v2407_v60  ;;  %5933 = vst [vmem:[#allocation20_spill] sm:$0xff] %v5090_v58  ;;  %v5094_v60 = vadd.f32 %v5081_v55, %v4716_v3 }
 0x327   : > { %5931 = vst [vmem:[#allocation18_spill] sm:$0xff] %v5074_v24  ;;  %v5086_v57 = vpop.f32.mrf.mxu3  ;;  %v5098_v24 = vadd.f32 %v5081_v55, %v4744_v18  ;;  %v3000_v3 = vmul.f32 %v5032_v56, %v5094_v60  ;;  %v3003_v56 = vmul.f32 %v5050_v26, %v5108_v13 }
 0x328   : > { %v2058_v14 = vpop.f32.mrf.mxu2 }
 0x329   : > { %v2120_v30 = vadd.f32 %v2058_v14, %v1832_v32  ;;  %v1772_v36 = vpop.f32.mrf.mxu1  ;;  %5934 = vst [vmem:[#allocation21_spill] sm:$0xff] %v5098_v24  ;;  %v5100_v32 = vpop.permute.xlu1 %2862  ;;  %v3002_v18 = vmul.f32 %v5037_v50, %v5098_v24  ;;  %v5129_v50 = vadd.f32 %v5081_v55, %v4798_v44  ;;  %v5146_v44 = vadd.f32 %v5081_v55, %v4835_v47 }
 0x32a   : > { %v1833_v31 = vadd.f32 %v1772_v36, %v4542_v25  ;;  %5935 = vst [vmem:[#allocation22_spill] sm:$0xff] %v5100_v32  ;;  %v3001_v25 = vmul.f32 %v5044_v46, %v5090_v58  ;;  %v5120_v36 = vpop.permute.xlu0 %2872 }
 0x32b   : > { %v2636_v28 = vpop.f32.mrf.mxu0  ;;  %v2408_v63 = vadd.f32 %v2346_v61, %v2120_v30  ;;  %v5110_v61 = vpop.permute.xlu2 %2867 }
 0x32c   : > { %5937 = vst [vmem:[#allocation24_spill] sm:$0xff] %v5110_v61  ;;  %v3041_v27 = vadd.f32 %v3001_v25, %v3000_v3  ;;  %v3005_v3 = vmul.f32 %v5054_v49, %v5129_v50 }
 0x32d   : > { %v5102_v14 = vadd.f32 %v2634_v38, %v2408_v63  ;;  %v5118_v38 = vadd.f32 %v5081_v55, %v4778_v0 }
 0x32e   : > { %v3042_v24 = vadd.f32 %v3041_v27, %v3002_v18 }
 0x32f   : > { %5936 = vst [vmem:[#allocation23_spill] sm:$0xff] %v5102_v14  ;;  %v5123_v14 = vpop.f32.mrf.mxu3 }
 0x330   : > { %v2060_v30 = vpop.f32.mrf.mxu2 }
 0x331   : > { %v2121_v63 = vadd.f32 %v2060_v30, %v1833_v31  ;;  %v1775_v46 = vpop.f32.mrf.mxu1  ;;  %v3004_v31 = vmul.f32 %v5042_v42, %v5118_v38  ;;  %v3043_v30 = vadd.f32 %v3042_v24, %v3003_v56 }
 0x332   : > { %v1834_v12 = vadd.f32 %v1775_v46, %v4554_v35  ;;  %v5136_v35 = vadd.f32 %v5081_v55, %v4815_v20  ;;  %v5138_v46 = vpop.permute.xlu1 %2877 }
 0x333   : > { %v2639_v58 = vpop.f32.mrf.mxu0  ;;  %v2409_v0 = vadd.f32 %v5035_v37, %v2121_v63  ;;  %v5148_v37 = vpop.permute.xlu2 %2882  ;;  %v3044_v18 = vadd.f32 %v3043_v30, %v3004_v31  ;;  %v5154_v63 = vadd.f32 %v5081_v55, %v4852_v16  ;;  %v3007_v31 = vmul.f32 %v5061_v29, %v5146_v44 }
 0x334   : > { %5938 = vst [vmem:[#allocation25_spill] sm:$0xff] %v5148_v37  ;;  %v3006_v20 = vmul.f32 %v5056_v22, %v5136_v35  ;;  %v5165_v30 = vadd.f32 %v5081_v55, %v4875_v5  ;;  %v5182_v5 = vadd.f32 %v5081_v55, %v4906_v39 }
 0x335   : > { %v5140_v25 = vadd.f32 %v2636_v28, %v2409_v0  ;;  %v5156_v28 = vpop.permute.xlu0 %2887  ;;  %v3045_v42 = vadd.f32 %v3044_v18, %v3005_v3 }
 0x336   : > { %5939 = vst [vmem:[#allocation26_spill] sm:$0xff] %v5156_v28 }
 0x337   : > { %v5159_v47 = vpop.f32.mrf.mxu3  ;;  %v3046_v22 = vadd.f32 %v3045_v42, %v3006_v20 }
 0x338   : > { %v2063_v27 = vpop.f32.mrf.mxu2 }
 0x339   : > { %v2122_v56 = vadd.f32 %v2063_v27, %v1834_v12  ;;  %v1777_v24 = vpop.f32.mrf.mxu1  ;;  %v3008_v12 = vmul.f32 %v5065_v34, %v5154_v63  ;;  %v3047_v18 = vadd.f32 %v3046_v22, %v3007_v31 }
 0x33a   : > { %v1835_v0 = vadd.f32 %v1777_v24, %v4573_v52  ;;  %v5172_v52 = vadd.f32 %v5081_v55, %v4889_v54  ;;  %v5174_v27 = vpop.permute.xlu1 %2892  ;;  %v3009_v24 = vmul.f32 %v5067_v40, %v5165_v30 }
 0x33b   : > { %v2641_v49 = vpop.f32.mrf.mxu0  ;;  %v2410_v16 = vadd.f32 %v5047_v21, %v2122_v56  ;;  %5940 = vst [vmem:[#allocation27_spill] sm:$0xff] %v5174_v27  ;;  %v5184_v42 = vpop.permute.xlu2 %2897  ;;  %v3048_v20 = vadd.f32 %v3047_v18, %v3008_v12  ;;  %v5190_v56 = vadd.f32 %v5081_v55, %v4917_v43  ;;  %v3011_v12 = vmul.f32 %v5076_v51, %v5182_v5 }
 0x33c   : > { %5941 = vst [vmem:[#allocation28_spill] sm:$0xff] %v5184_v42  ;;  %v3010_v54 = vmul.f32 %v5072_v45, %v5172_v52  ;;  %v5201_v18 = vadd.f32 %v5081_v55, %v4934_v48  ;;  %v5218_v48 = vadd.f32 %v5081_v55, %v4956_v9 }
 0x33d   : > { %v5176_v3 = vadd.f32 %v2639_v58, %v2410_v16  ;;  %v5192_v58 = vpop.permute.xlu0 %2902  ;;  %v3049_v34 = vadd.f32 %v3048_v20, %v3009_v24 }
 0x33e   : > { %5942 = vst [vmem:[#allocation29_spill] sm:$0xff] %v5192_v58 }
 0x33f   : > { %v5195_v39 = vpop.f32.mrf.mxu3  ;;  %v3050_v45 = vadd.f32 %v3049_v34, %v3010_v54 }
 0x340   : > { %v2065_v21 = vpop.f32.mrf.mxu2 }
 0x341   : > { %v2123_v22 = vadd.f32 %v2065_v21, %v1835_v0  ;;  %v1780_v31 = vpop.f32.mrf.mxu1  ;;  %v3012_v0 = vmul.f32 %v5083_v15, %v5190_v56  ;;  %v3051_v20 = vadd.f32 %v3050_v45, %v3011_v12 }
 0x342   : > { %v1836_v16 = vadd.f32 %v1780_v31, %v4585_v6  ;;  %v5208_v6 = vadd.f32 %v5081_v55, %v4942_v59  ;;  %v5210_v21 = vpop.permute.xlu1 %2907  ;;  %v3013_v31 = vmul.f32 %v5100_v32, %v5201_v18  ;;  %v5224_v59 = vadd.f32 %v5081_v55, %v4964_v19 }
 0x343   : > { %v2644_v40 = vpop.f32.mrf.mxu0  ;;  %v2411_v43 = vadd.f32 %v5059_v4, %v2123_v22  ;;  %5943 = vst [vmem:[#allocation30_spill] sm:$0xff] %v5210_v21  ;;  %v3052_v34 = vadd.f32 %v3051_v20, %v3012_v0  ;;  %v5226_v22 = vpop.permute.xlu2 %2912  ;;  %v3015_v0 = vmul.f32 %v5120_v36, %v5218_v48  ;;  %v5235_v20 = vadd.f32 %v5081_v55, %v4978_v10 }
 0x344   : > { %v3014_v54 = vmul.f32 %v5110_v61, %v5208_v6  ;;  %5944 = vst [vmem:[#allocation31_spill] sm:$0xff] %v5226_v22  ;;  %v5252_v10 = vadd.f32 %v5081_v55, %v4997_v7 }
 0x345   : > { %v5212_v24 = vadd.f32 %v2641_v49, %v2411_v43  ;;  %v3053_v9 = vadd.f32 %v3052_v34, %v3013_v31  ;;  %v5237_v61 = vpop.permute.xlu0 %2917  ;;  %v3017_v34 = vmul.f32 %v5148_v37, %v5235_v20 }
 0x346   : > { %5945 = vst [vmem:[#allocation32_spill] sm:$0xff] %v5237_v61  ;;  %v3019_v37 = vmul.f32 %v5174_v27, %v5252_v10 }
 0x347   : > { %v5229_v32 = vpop.f32.mrf.mxu3  ;;  %v3054_v15 = vadd.f32 %v3053_v9, %v3014_v54 }
 0x348   : > { %v2068_v4 = vpop.f32.mrf.mxu2 }
 0x349   : > { %v2124_v49 = vadd.f32 %v2068_v4, %v1836_v16  ;;  %v1782_v45 = vpop.f32.mrf.mxu1  ;;  %v3016_v16 = vmul.f32 %v5138_v46, %v5224_v59  ;;  %v3055_v4 = vadd.f32 %v3054_v15, %v3015_v0 }
 0x34a   : > { %v1837_v12 = vadd.f32 %v1782_v45, %v4601_v41  ;;  %v5244_v41 = vadd.f32 %v5081_v55, %v4985_v11  ;;  %v5254_v45 = vpop.permute.xlu1 %2922  ;;  %v5260_v11 = vadd.f32 %v5081_v55, %v5005_v8 }
 0x34b   : > { %v2646_v43 = vpop.f32.mrf.mxu0  ;;  %v2412_v19 = vadd.f32 %v5070_v1, %v2124_v49  ;;  %5946 = vst [vmem:[#allocation33_spill] sm:$0xff] %v5254_v45  ;;  %v3056_v54 = vadd.f32 %v3055_v4, %v3016_v16  ;;  %v5269_v16 = vadd.f32 %v5081_v55, %v5014_v33 }
 0x34c   : > { %v3018_v49 = vmul.f32 %v5156_v28, %v5244_v41  ;;  %v5272_v28 = vpop.permute.xlu2 %2927 }
 0x34d   : > { %v5246_v31 = vadd.f32 %v2644_v40, %v2412_v19  ;;  %v3057_v7 = vadd.f32 %v3056_v54, %v3017_v34  ;;  %5947 = vst [vmem:[#allocation34_spill] sm:$0xff] %v5272_v28  ;;  %v5280_v34 = vpop.permute.xlu0 %2932  ;;  %v3021_v33 = vmul.f32 %v5192_v58, %v5269_v16 }
 0x34e   : > { %5948 = vst [vmem:[#allocation35_spill] sm:$0xff] %v5280_v34 }
 0x34f   : > { %v5263_v19 = vpop.f32.mrf.mxu3  ;;  %v3058_v8 = vadd.f32 %v3057_v7, %v3018_v49 }
 0x350   : > { %v2070_v1 = vpop.f32.mrf.mxu2 }
 0x351   : > { %v2125_v40 = vadd.f32 %v2070_v1, %v1837_v12  ;;  %v1785_v15 = vpop.f32.mrf.mxu1  ;;  %v3020_v12 = vmul.f32 %v5184_v42, %v5260_v11  ;;  %v3059_v54 = vadd.f32 %v3058_v8, %v3019_v37 }
 0x352   : > { %v1838_v9 = vadd.f32 %v1785_v15, %v4613_v62  ;;  %v5278_v62 = vadd.f32 %v5081_v55, %v5020_v17  ;;  %v5290_v7 = vpop.permute.xlu1 %2937  ;;  %v5294_v17 = vadd.f32 %v5081_v55, %v5040_v23 }
 0x353   : > { %v2649_v0 = vpop.f32.mrf.mxu0  ;;  %v2413_v4 = vadd.f32 %v5086_v57, %v2125_v40  ;;  %v5286_v57 = vadd.f32 %v5081_v55, %v5028_v2  ;;  %v3060_v49 = vadd.f32 %v3059_v54, %v3020_v12  ;;  %5950 = vst [vmem:[#allocation37_spill] sm:$0xff] %v5290_v7  ;;  %v5952_v54 = vld [vmem:[#allocation11_spill] sm:$0xff] }
 0x354   : > { %v3022_v15 = vmul.f32 %v5210_v21, %v5278_v62  ;;  %5951 = vst [vmem:[#allocation38_spill] sm:$0xff] %v5294_v17  ;;  %v5303_v21 = vadd.f32 %v5081_v55, %v5952_v54  ;;  %v3024_v23 = vmul.f32 %v5237_v61, %v5294_v17 }
 0x355   : > { %v2701_v1 = vadd.f32 %v2646_v43, %v2413_v4  ;;  %5949 = vst [vmem:[#allocation36_spill] sm:$0xff] %v5286_v57  ;;  %v3061_v2 = vadd.f32 %v3060_v49, %v3021_v33  ;;  %v3023_v12 = vmul.f32 %v5226_v22, %v5286_v57  ;;  %v5314_v49 = vpop.permute.xlu0 %2947  ;;  %v5955_v22 = vld [vmem:[#allocation18_spill] sm:$0xff] }
 0x356   : > { %v3025_v54 = vmul.f32 %v5254_v45, %v5303_v21 }
 0x357   : > { %v5297_v58 = vpop.f32.mrf.mxu3  ;;  %v3062_v27 = vadd.f32 %v3061_v2, %v3022_v15 }
 0x358   : > { %v2073_v40 = vpop.f32.mrf.mxu2 }
 0x359   : > { %v2126_v43 = vadd.f32 %v2073_v40, %v1838_v9  ;;  %v1787_v37 = vpop.f32.mrf.mxu1  ;;  %v5953_v9 = vld [vmem:[#allocation14_spill] sm:$0xff]  ;;  %v3063_v33 = vadd.f32 %v3062_v27, %v3023_v12 }
 0x35a   : > { %v1839_v4 = vadd.f32 %v1787_v37, %v4629_v53  ;;  %v5310_v53 = vadd.f32 %v5081_v55, %v5953_v9  ;;  %v5312_v37 = vpop.permute.xlu2 %2942  ;;  %v5956_v9 = vld [vmem:[#allocation23_spill] sm:$0xff]  ;;  %v5957_v12 = vld [vmem:[#allocation6_spill] sm:$0xff] }
 0x35b   : > { %v2651_v8 = vpop.f32.mrf.mxu0  ;;  %v2414_v42 = vadd.f32 %v5123_v14, %v2126_v43  ;;  %5954 = vst [vmem:[#allocation11_spill] sm:$0xff] %v5312_v37  ;;  %v5320_v14 = vadd.f32 %v5081_v55, %v5955_v22  ;;  %v3064_v43 = vadd.f32 %v3063_v33, %v3024_v23  ;;  %v5335_v23 = vadd.f32 %v5081_v55, %v5140_v25 }
 0x35c   : > { %v3026_v2 = vmul.f32 %v5272_v28, %v5310_v53  ;;  %v5338_v28 = vpop.permute.xlu1 %2952  ;;  %v5350_v25 = vadd.f32 %v5081_v55, %v5212_v24 }
 0x35d   : > { %v2702_v40 = vadd.f32 %v2649_v0, %v2414_v42  ;;  %v5326_v42 = vadd.f32 %v5081_v55, %v5956_v9  ;;  %v3065_v45 = vadd.f32 %v3064_v43, %v3025_v54  ;;  %v3027_v22 = vmul.f32 %v5280_v34, %v5320_v14  ;;  %5958 = vst [vmem:[#allocation14_spill] sm:$0xff] %v5335_v23 }
 0x35e   : > { %5959 = vst [vmem:[#allocation18_spill] sm:$0xff] %v5338_v28  ;;  %v3031_v34 = vmul.f32 %v5338_v28, %v5350_v25 }
 0x35f   : > { %v5329_v57 = vpop.f32.mrf.mxu3  ;;  %v3066_v9 = vadd.f32 %v3065_v45, %v3026_v2  ;;  %v5354_v45 = vpop.permute.xlu0 %2962 }
 0x360   : > { %v2075_v15 = vpop.f32.mrf.mxu2  ;;  %5961 = vst [vmem:[#allocation6_spill] sm:$0xff] %v5354_v45 }
 0x361   : > { %v2127_v0 = vadd.f32 %v2075_v15, %v1839_v4  ;;  %v1790_v27 = vpop.f32.mrf.mxu1  ;;  %v3028_v4 = vmul.f32 %v5290_v7, %v5326_v42  ;;  %v5344_v15 = vadd.f32 %v5081_v55, %v5176_v3  ;;  %v3067_v43 = vadd.f32 %v3066_v9, %v3027_v22 }
 0x362   : > { %v1840_v61 = vadd.f32 %v1790_v27, %v5957_v12  ;;  %v3029_v27 = vmul.f32 %v5312_v37, %v5335_v23  ;;  %v5360_v3 = vadd.f32 %v5081_v55, %v5246_v31  ;;  %v5366_v23 = vadd.f32 %v5081_v55, %v2701_v1 }
 0x363   : > { %v2654_v17 = vpop.f32.mrf.mxu0  ;;  %v2415_v33 = vadd.f32 %v5159_v47, %v2127_v0  ;;  %v5352_v47 = vpop.permute.xlu2 %2957  ;;  %v3068_v2 = vadd.f32 %v3067_v43, %v3028_v4  ;;  %v3030_v12 = vmul.f32 %v5314_v49, %v5344_v15 }
 0x364   : > { %5960 = vst [vmem:[#allocation23_spill] sm:$0xff] %v5352_v47  ;;  %v3032_v31 = vmul.f32 %v5352_v47, %v5360_v3 }
 0x365   : > { %v2703_v54 = vadd.f32 %v2651_v8, %v2415_v33  ;;  %v5962_v33 = vld [vmem:[#allocation7_spill] sm:$0xff]  ;;  %v3069_v7 = vadd.f32 %v3068_v2, %v3029_v27  ;;  %v3033_v27 = vmul.f32 %v5354_v45, %v5366_v23 }
 0x367   : > { %v2378_v24 = vpop.f32.mrf.mxu3  ;;  %v3070_v43 = vadd.f32 %v3069_v7, %v3030_v12  ;;  %v5379_v2 = vadd.f32 %v5081_v55, %v2703_v54  ;;  %v5389_v54 = vpop.permute.xlu0 %2977 }
 0x368   : > { %v2078_v0 = vpop.f32.mrf.mxu2 }
 0x369   : > { %v2128_v8 = vadd.f32 %v2078_v0, %v1840_v61  ;;  %v1792_v22 = vpop.f32.mrf.mxu1  ;;  %v5372_v61 = vadd.f32 %v5081_v55, %v2702_v40  ;;  %5964 = vst [vmem:[#allocation39_spill] sm:$0xff] %v5379_v2 }
 0x36a   : > { %v1841_v9 = vadd.f32 %v1792_v22, %v5962_v33  ;;  %v5374_v22 = vpop.permute.xlu1 %2967  ;;  %v3071_v33 = vadd.f32 %v3070_v43, %v3031_v34 }
 0x36b   : > { %v2656_v37 = vpop.f32.mrf.mxu0  ;;  %v2416_v4 = vadd.f32 %v5195_v39, %v2128_v8  ;;  %5963 = vst [vmem:[#allocation7_spill] sm:$0xff] %v5374_v22  ;;  %v3034_v39 = vmul.f32 %v5374_v22, %v5372_v61  ;;  %v5384_v8 = vpop.permute.xlu2 %2972 }
 0x36c   : > { %v3072_v24 = vadd.f32 %v3071_v33, %v3032_v31  ;;  %5965 = vst [vmem:[#allocation40_spill] sm:$0xff] %v5384_v8  ;;  %v3035_v34 = vmul.f32 %v5384_v8, %v5379_v2 }
 0x36d   : > { %v2704_v0 = vadd.f32 %v2654_v17, %v2416_v4 }
 0x36e   : > { %v3073_v4 = vadd.f32 %v3072_v24, %v3033_v27 }
 0x36f   : > { %v2749_v7 = vadd.f32 %v5081_v55, %v2704_v0 }
 0x370   : > { %v2080_v1 = vpop.f32.mrf.mxu2  ;;  %v3074_v45 = vadd.f32 %v3073_v4, %v3034_v39 }
 0x371   : > { %v2129_v12 = vadd.f32 %v2080_v1, %v1841_v9  ;;  %v1795_v40 = vpop.f32.mrf.mxu1  ;;  %v3036_v31 = vmul.f32 %v5389_v54, %v2749_v7  ;;  %v5966_v9 = vld [vmem:[#allocation2_spill] sm:$0xff] }
 0x372   : > { %v3075_v22 = vadd.f32 %v3074_v45, %v3035_v34  ;;  %v1842_v1 = vadd.f32 %v1795_v40, %v5966_v9  ;;  %v5394_v47 = vpop.permute.xlu1 %2982  ;;  %v5968_v45 = vld [vmem:[#allocation3_spill] sm:$0xff] }
 0x373   : > { %v2659_v17 = vpop.f32.mrf.mxu0  ;;  %v2417_v43 = vadd.f32 %v5229_v32, %v2129_v12  ;;  %5967 = vst [vmem:[#allocation2_spill] sm:$0xff] %v5394_v47 }
 0x374   : > { %v3076_v27 = vadd.f32 %v3075_v22, %v3036_v31 }
 0x375   : > { %v2705_v33 = vadd.f32 %v2656_v37, %v2417_v43  ;;  %v5400_v43 = vpop.permute.xlu2 %2987 }
 0x376   : > { %5969 = vst [vmem:[#allocation3_spill] sm:$0xff] %v5400_v43 }
 0x377   : > { %v2750_v0 = vadd.f32 %v5081_v55, %v2705_v33 }
 0x378   : > { %v2083_v28 = vpop.f32.mrf.mxu2 }
 0x379   : > { %v3037_v24 = vmul.f32 %v5394_v47, %v2750_v0  ;;  %v2130_v8 = vadd.f32 %v2083_v28, %v1842_v1  ;;  %v1797_v2 = vpop.f32.mrf.mxu1 }
 0x37a   : > { %v1843_v34 = vadd.f32 %v1797_v2, %v5968_v45 }
 0x37b   : > { %v2661_v32 = vpop.f32.mrf.mxu0  ;;  %v3077_v12 = vadd.f32 %v3076_v27, %v3037_v24  ;;  %v2418_v39 = vadd.f32 %v5263_v19, %v2130_v8  ;;  %v5970_v19 = vld [vmem:[#allocation4_spill] sm:$0xff] }
 0x37d   : > { %v2706_v4 = vadd.f32 %v2659_v17, %v2418_v39  ;;  %v5406_v17 = vpop.permute.xlu0 %2992 }
 0x37e   : > { %5971 = vst [vmem:[#allocation4_spill] sm:$0xff] %v5406_v17 }
 0x37f   : > { %v2751_v37 = vadd.f32 %v5081_v55, %v2706_v4 }
 0x380   : > { %v2085_v40 = vpop.f32.mrf.mxu2 }
 0x381   : > { %v3038_v33 = vmul.f32 %v5400_v43, %v2751_v37  ;;  %v2131_v9 = vadd.f32 %v2085_v40, %v1843_v34  ;;  %v1800_v22 = vpop.f32.mrf.mxu1 }
 0x382   : > { %v1844_v8 = vadd.f32 %v1800_v22, %v5970_v19 }
 0x383   : > { %v2664_v31 = vpop.f32.mrf.mxu0  ;;  %v3078_v47 = vadd.f32 %v3077_v12, %v3038_v33  ;;  %v2419_v28 = vadd.f32 %v5297_v58, %v2131_v9  ;;  %v2998_v58 = vpop.permute.xlu1 %2997 }
 0x385   : > { %v2707_v1 = vadd.f32 %v2661_v32, %v2419_v28 }
 0x387   : > { %v2752_v27 = vadd.f32 %v5081_v55, %v2707_v1 }
 0x388   : > { %v2088_v24 = vpop.f32.mrf.mxu2 }
 0x389   : > { %v3039_v2 = vmul.f32 %v5406_v17, %v2752_v27  ;;  %v2132_v39 = vadd.f32 %v2088_v24, %v1844_v8  ;;  %v1802_v4 = vpop.f32.mrf.mxu1 }
 0x38b   : > { %v2666_v45 = vpop.f32.mrf.mxu0  ;;  %v3079_v43 = vadd.f32 %v3078_v47, %v3039_v2  ;;  %v2420_v34 = vadd.f32 %v5329_v57, %v2132_v39  ;;  %v5974_v2 = vld [vmem:[#allocation20_spill] sm:$0xff] }
 0x38d   : > { %v2708_v40 = vadd.f32 %v2664_v31, %v2420_v34 }
 0x38f   : > { %v2753_v12 = vadd.f32 %v5081_v55, %v2708_v40 }
 0x390   : > { %v2090_v32 = vpop.f32.mrf.mxu2 }
 0x391   : > { %v3040_v33 = vmul.f32 %v2998_v58, %v2753_v12 }
 0x393   : > { %v3081_v9 = vsel %vm3080_vm1, %v3040_v33, 0.0  ;;  %v5977_v33 = vld [vmem:[#allocation10_spill] sm:$0xff] }
 0x394   : > { %v3082_v22 = vadd.f32 %v3081_v9, %v3079_v43 }
 0x396   : > { %v3083_v28 = vrot.slane %v3082_v22, 4 }
 0x398   : > { %v3084_v1 = vadd.f32 %v3083_v28, %v3082_v22 }
 0x39a   : > { %v3085_v19 = vrot.slane %v3084_v1, 2 }
 0x39c   : > { %v3086_v17 = vadd.f32 %v3085_v19, %v3084_v1  ;;  %v5978_v1 = vld [vmem:[#allocation8_spill] sm:$0xff] }
 0x39e   : > { %v3087_v8 = vrot.slane %v3086_v17, 1 }
 0x3a0   : > { %v3088_v24 = vadd.f32 %v3087_v8, %v3086_v17 }
 0x3a2   : > { %v5412_v4 = vmul.f32 0.00390625, %v3088_v24 }
 0x3a4   : > { %v5415_v57 = vsub.f32 %v2749_v7, %v5412_v4  ;;  %v5418_v55 = vsub.f32 %v2750_v0, %v5412_v4  ;;  %v5421_v47 = vsub.f32 %v2751_v37, %v5412_v4  ;;  %v5424_v31 = vsub.f32 %v2752_v27, %v5412_v4  ;;  %v5975_v0 = vld [vmem:[#allocation21_spill] sm:$0xff] }
 0x3a5   : > { %v5427_v43 = vsub.f32 %v2753_v12, %v5412_v4  ;;  %v5431_v17 = vsub.f32 %v5094_v60, %v5412_v4  ;;  %v5435_v7 = vsub.f32 %v5974_v2, %v5412_v4  ;;  %v5439_v39 = vsub.f32 %v5975_v0, %v5412_v4  ;;  %v5976_v12 = vld [vmem:[#allocation5_spill] sm:$0xff] }
 0x3a6   : > { %5972 = vst [vmem:[#allocation41_spill] sm:$0xff] %v5424_v31  ;;  %v5447_v45 = vsub.f32 %v5108_v13, %v5412_v4  ;;  %v5451_v60 = vsub.f32 %v5118_v38, %v5412_v4  ;;  %v5461_v22 = vsub.f32 %v5129_v50, %v5412_v4  ;;  %v5467_v38 = vsub.f32 %v5136_v35, %v5412_v4 }
 0x3a7   : > { %5973 = vst [vmem:[#allocation42_spill] sm:$0xff] %v5427_v43  ;;  %v3131_v37 = vmul.f32 %v5431_v17, %v5431_v17  ;;  %v3132_v27 = vmul.f32 %v5435_v7, %v5435_v7  ;;  %v3133_v34 = vmul.f32 %v5439_v39, %v5439_v39  ;;  %v3171_v40 = vmul.f32 %v5427_v43, %v5427_v43 }
 0x3a8   : > { %v3134_v13 = vmul.f32 %v5447_v45, %v5447_v45  ;;  %v3135_v28 = vmul.f32 %v5451_v60, %v5451_v60  ;;  %v5474_v2 = vsub.f32 %v5146_v44, %v5412_v4  ;;  %v3136_v50 = vmul.f32 %v5461_v22, %v5461_v22 }
 0x3a9   : > { %v3172_v32 = vmul.f32 %v3131_v37, %v5976_v12  ;;  %v3173_v9 = vmul.f32 %v3132_v27, %v5977_v33  ;;  %v3174_v19 = vmul.f32 %v3133_v34, %v5978_v1  ;;  %v3212_v8 = vmul.f32 %v3171_v40, %v2998_v58  ;;  %v5979_v34 = vld [vmem:[#allocation9_spill] sm:$0xff] }
 0x3aa   : > { %v3175_v0 = vmul.f32 %v3134_v13, %v5050_v26  ;;  %v5484_v27 = vsub.f32 %v5154_v63, %v5412_v4  ;;  %v3137_v58 = vmul.f32 %v5467_v38, %v5467_v38  ;;  %v3176_v40 = vmul.f32 %v3135_v28, %v5979_v34  ;;  %v5981_v1 = vld [vmem:[#allocation13_spill] sm:$0xff] }
 0x3ab   : > { %v3213_v24 = vadd.f32 %v3173_v9, %v3172_v32  ;;  %v5480_v35 = vsel %vm3080_vm1, %v3212_v8, 0.0  ;;  %v5491_v12 = vsub.f32 %v5165_v30, %v5412_v4  ;;  %v3138_v26 = vmul.f32 %v5474_v2, %v5474_v2  ;;  %v5980_v32 = vld [vmem:[#allocation12_spill] sm:$0xff] }
 0x3ac   : > { %v3177_v33 = vmul.f32 %v3136_v50, %v5980_v32  ;;  %v5498_v63 = vsub.f32 %v5172_v52, %v5412_v4  ;;  %v3139_v13 = vmul.f32 %v5484_v27, %v5484_v27  ;;  %v3178_v28 = vmul.f32 %v3137_v58, %v5981_v1 }
 0x3ad   : > { %v3214_v37 = vadd.f32 %v3213_v24, %v3174_v19  ;;  %v5505_v30 = vsub.f32 %v5182_v5, %v5412_v4  ;;  %v3140_v8 = vmul.f32 %v5491_v12, %v5491_v12  ;;  %v3179_v24 = vmul.f32 %v3138_v26, %v5061_v29 }
 0x3ae   : > { %v5512_v52 = vsub.f32 %v5190_v56, %v5412_v4  ;;  %v5519_v5 = vsub.f32 %v5201_v18, %v5412_v4  ;;  %v5526_v56 = vsub.f32 %v5208_v6, %v5412_v4  ;;  %v5533_v18 = vsub.f32 %v5218_v48, %v5412_v4 }
 0x3af   : > { %v3215_v44 = vadd.f32 %v3214_v37, %v3175_v0  ;;  %v3141_v0 = vmul.f32 %v5498_v63, %v5498_v63  ;;  %v5982_v37 = vld [vmem:[#allocation15_spill] sm:$0xff]  ;;  %v5540_v6 = vsub.f32 %v5224_v59, %v5412_v4  ;;  %v5547_v48 = vsub.f32 %v5235_v20, %v5412_v4 }
 0x3b0   : > { %v3180_v58 = vmul.f32 %v3139_v13, %v5982_v37  ;;  %v3143_v32 = vmul.f32 %v5512_v52, %v5512_v52  ;;  %v3144_v1 = vmul.f32 %v5519_v5, %v5519_v5  ;;  %v3146_v37 = vmul.f32 %v5533_v18, %v5533_v18 }
 0x3b1   : > { %v3216_v9 = vadd.f32 %v3215_v44, %v3176_v40  ;;  %v3142_v40 = vmul.f32 %v5505_v30, %v5505_v30  ;;  %v5983_v44 = vld [vmem:[#allocation16_spill] sm:$0xff]  ;;  %v5554_v59 = vsub.f32 %v5244_v41, %v5412_v4  ;;  %v5561_v20 = vsub.f32 %v5252_v10, %v5412_v4 }
 0x3b2   : > { %v3181_v29 = vmul.f32 %v3140_v8, %v5983_v44  ;;  %v3145_v8 = vmul.f32 %v5526_v56, %v5526_v56  ;;  %v5987_v44 = vld [vmem:[#allocation24_spill] sm:$0xff]  ;;  %v5568_v41 = vsub.f32 %v5260_v11, %v5412_v4  ;;  %v5575_v10 = vsub.f32 %v5269_v16, %v5412_v4 }
 0x3b3   : > { %v3217_v19 = vadd.f32 %v3216_v9, %v3177_v33  ;;  %v5984_v33 = vld [vmem:[#allocation17_spill] sm:$0xff]  ;;  %v5582_v11 = vsub.f32 %v5278_v62, %v5412_v4 }
 0x3b4   : > { %v3182_v9 = vmul.f32 %v3141_v0, %v5984_v33  ;;  %v3187_v33 = vmul.f32 %v3146_v37, %v5120_v36 }
 0x3b5   : > { %v3218_v50 = vadd.f32 %v3217_v19, %v3178_v28  ;;  %v3183_v28 = vmul.f32 %v3142_v40, %v5076_v51  ;;  %v3147_v40 = vmul.f32 %v5540_v6, %v5540_v6 }
 0x3b7   : > { %v3219_v34 = vadd.f32 %v3218_v50, %v3179_v24  ;;  %v5985_v24 = vld [vmem:[#allocation19_spill] sm:$0xff] }
 0x3b8   : > { %v3184_v50 = vmul.f32 %v3143_v32, %v5985_v24  ;;  %v3148_v32 = vmul.f32 %v5547_v48, %v5547_v48 }
 0x3b9   : > { %v3220_v26 = vadd.f32 %v3219_v34, %v3180_v58  ;;  %v5986_v58 = vld [vmem:[#allocation22_spill] sm:$0xff] }
 0x3ba   : > { %v3185_v51 = vmul.f32 %v3144_v1, %v5986_v58  ;;  %v3188_v1 = vmul.f32 %v3147_v40, %v5138_v46  ;;  %v5990_v58 = vld [vmem:[#allocation36_spill] sm:$0xff] }
 0x3bb   : > { %v3221_v13 = vadd.f32 %v3220_v26, %v3181_v29  ;;  %v3186_v29 = vmul.f32 %v3145_v8, %v5987_v44  ;;  %v5988_v8 = vld [vmem:[#allocation25_spill] sm:$0xff]  ;;  %v5589_v16 = vsub.f32 %v5990_v58, %v5412_v4  ;;  %v5996_v58 = vld [vmem:[#allocation31_spill] sm:$0xff] }
 0x3bc   : > { %v3189_v36 = vmul.f32 %v3148_v32, %v5988_v8  ;;  %v5993_v32 = vld [vmem:[#allocation28_spill] sm:$0xff] }
 0x3bd   : > { %v3222_v19 = vadd.f32 %v3221_v13, %v3182_v9  ;;  %v3149_v13 = vmul.f32 %v5554_v59, %v5554_v59 }
 0x3bf   : > { %v3223_v0 = vadd.f32 %v3222_v19, %v3183_v28  ;;  %v3150_v19 = vmul.f32 %v5561_v20, %v5561_v20 }
 0x3c1   : > { %v3224_v34 = vadd.f32 %v3223_v0, %v3184_v50  ;;  %v3151_v50 = vmul.f32 %v5568_v41, %v5568_v41  ;;  %v5989_v0 = vld [vmem:[#allocation26_spill] sm:$0xff] }
 0x3c2   : > { %v3190_v46 = vmul.f32 %v3149_v13, %v5989_v0  ;;  %v5603_v13 = vsub.f32 %v5303_v21, %v5412_v4  ;;  %v5995_v0 = vld [vmem:[#allocation30_spill] sm:$0xff]  ;;  %v5617_v21 = vsub.f32 %v5320_v14, %v5412_v4 }
 0x3c3   : > { %v3225_v26 = vadd.f32 %v3224_v34, %v3185_v51  ;;  %v3152_v51 = vmul.f32 %v5575_v10, %v5575_v10  ;;  %v5991_v34 = vld [vmem:[#allocation27_spill] sm:$0xff] }
 0x3c4   : > { %v3191_v40 = vmul.f32 %v3150_v19, %v5991_v34 }
 0x3c5   : > { %v3226_v9 = vadd.f32 %v3225_v26, %v3186_v29  ;;  %v5992_v29 = vld [vmem:[#allocation38_spill] sm:$0xff]  ;;  %v3153_v26 = vmul.f32 %v5582_v11, %v5582_v11 }
 0x3c6   : > { %v5596_v62 = vsub.f32 %v5992_v29, %v5412_v4 }
 0x3c7   : > { %v3227_v28 = vadd.f32 %v3226_v9, %v3187_v33  ;;  %v3192_v33 = vmul.f32 %v3151_v50, %v5993_v32  ;;  %v3194_v50 = vmul.f32 %v3153_v26, %v5995_v0  ;;  %v5998_v32 = vld [vmem:[#allocation14_spill] sm:$0xff] }
 0x3c8   : > { %v5631_v14 = vsub.f32 %v5998_v32, %v5412_v4  ;;  %v6003_v32 = vld [vmem:[#allocation11_spill] sm:$0xff] }
 0x3c9   : > { %v3228_v24 = vadd.f32 %v3227_v28, %v3188_v1  ;;  %v3154_v1 = vmul.f32 %v5589_v16, %v5589_v16  ;;  %v5994_v28 = vld [vmem:[#allocation29_spill] sm:$0xff] }
 0x3ca   : > { %v3193_v19 = vmul.f32 %v3152_v51, %v5994_v28 }
 0x3cb   : > { %v3229_v37 = vadd.f32 %v3228_v24, %v3189_v36  ;;  %v5610_v36 = vsub.f32 %v5310_v53, %v5412_v4  ;;  %v3155_v24 = vmul.f32 %v5596_v62, %v5596_v62  ;;  %v3195_v51 = vmul.f32 %v3154_v1, %v5996_v58  ;;  %v6001_v58 = vld [vmem:[#allocation35_spill] sm:$0xff] }
 0x3cc   : > { %v5624_v53 = vsub.f32 %v5326_v42, %v5412_v4  ;;  %v5638_v42 = vsub.f32 %v5344_v15, %v5412_v4  ;;  %v5652_v15 = vsub.f32 %v5360_v3, %v5412_v4  ;;  %v5666_v3 = vsub.f32 %v5372_v61, %v5412_v4 }
 0x3cd   : > { %v3230_v44 = vadd.f32 %v3229_v37, %v3190_v46  ;;  %v3156_v37 = vmul.f32 %v5603_v13, %v5603_v13 }
 0x3ce   : > { %v3165_v61 = vmul.f32 %v5666_v3, %v5666_v3 }
 0x3cf   : > { %v3231_v9 = vadd.f32 %v3230_v44, %v3191_v40  ;;  %v3157_v40 = vmul.f32 %v5610_v36, %v5610_v36  ;;  %v5997_v44 = vld [vmem:[#allocation32_spill] sm:$0xff] }
 0x3d0   : > { %v3196_v29 = vmul.f32 %v3155_v24, %v5997_v44  ;;  %v6002_v44 = vld [vmem:[#allocation37_spill] sm:$0xff] }
 0x3d1   : > { %v3232_v8 = vadd.f32 %v3231_v9, %v3192_v33  ;;  %v3158_v33 = vmul.f32 %v5617_v21, %v5617_v21  ;;  %v5999_v9 = vld [vmem:[#allocation33_spill] sm:$0xff] }
 0x3d2   : > { %v3197_v1 = vmul.f32 %v3156_v37, %v5999_v9 }
 0x3d3   : > { %v3233_v46 = vadd.f32 %v3232_v8, %v3193_v19  ;;  %v3159_v19 = vmul.f32 %v5624_v53, %v5624_v53  ;;  %v6000_v8 = vld [vmem:[#allocation34_spill] sm:$0xff]  ;;  %v3199_v37 = vmul.f32 %v3158_v33, %v6001_v58 }
 0x3d4   : > { %v3198_v24 = vmul.f32 %v3157_v40, %v6000_v8  ;;  %v6004_v8 = vld [vmem:[#allocation39_spill] sm:$0xff] }
 0x3d5   : > { %v3234_v34 = vadd.f32 %v3233_v46, %v3194_v50  ;;  %v5645_v50 = vsub.f32 %v5350_v25, %v5412_v4  ;;  %v3160_v46 = vmul.f32 %v5631_v14, %v5631_v14  ;;  %v3200_v40 = vmul.f32 %v3159_v19, %v6002_v44 }
 0x3d6   : > { %v5659_v25 = vsub.f32 %v5366_v23, %v5412_v4  ;;  %v5673_v23 = vsub.f32 %v6004_v8, %v5412_v4  ;;  %v3167_v4 = vmul.f32 %v5415_v57, %v5415_v57 }
 0x3d7   : > { %v3235_v26 = vadd.f32 %v3234_v34, %v3195_v51  ;;  %v3161_v34 = vmul.f32 %v5638_v42, %v5638_v42  ;;  %v3201_v33 = vmul.f32 %v3160_v46, %v6003_v32  ;;  %v6008_v32 = vld [vmem:[#allocation7_spill] sm:$0xff] }
 0x3d9   : > { %v3236_v28 = vadd.f32 %v3235_v26, %v3196_v29  ;;  %v3162_v26 = vmul.f32 %v5645_v50, %v5645_v50 }
 0x3db   : > { %v3237_v0 = vadd.f32 %v3236_v28, %v3197_v1  ;;  %v3163_v1 = vmul.f32 %v5652_v15, %v5652_v15  ;;  %v3202_v28 = vmul.f32 %v3161_v34, %v5314_v49  ;;  %v3166_v49 = vmul.f32 %v5673_v23, %v5673_v23  ;;  %v6007_v34 = vld [vmem:[#allocation6_spill] sm:$0xff] }
 0x3dd   : > { %v3238_v51 = vadd.f32 %v3237_v0, %v3198_v24  ;;  %v3164_v24 = vmul.f32 %v5659_v25, %v5659_v25  ;;  %v6005_v0 = vld [vmem:[#allocation18_spill] sm:$0xff] }
 0x3de   : > { %v3203_v46 = vmul.f32 %v3162_v26, %v6005_v0  ;;  %v3168_v26 = vmul.f32 %v5418_v55, %v5418_v55  ;;  %v3208_v0 = vmul.f32 %v3167_v4, %v5389_v54 }
 0x3df   : > { %v3239_v29 = vadd.f32 %v3238_v51, %v3199_v37  ;;  %v6006_v37 = vld [vmem:[#allocation23_spill] sm:$0xff] }
 0x3e0   : > { %v3204_v51 = vmul.f32 %v3163_v1, %v6006_v37  ;;  %v3169_v1 = vmul.f32 %v5421_v47, %v5421_v47 }
 0x3e1   : > { %v3240_v9 = vadd.f32 %v3239_v29, %v3200_v40  ;;  %v3205_v40 = vmul.f32 %v3164_v24, %v6007_v34  ;;  %v3170_v24 = vmul.f32 %v5424_v31, %v5424_v31 }
 0x3e3   : > { %v3241_v19 = vadd.f32 %v3240_v9, %v3201_v33  ;;  %v3206_v33 = vmul.f32 %v3165_v61, %v6008_v32  ;;  %v6011_v61 = vld [vmem:[#allocation3_spill] sm:$0xff] }
 0x3e5   : > { %v3242_v58 = vadd.f32 %v3241_v19, %v3202_v28  ;;  %v6009_v28 = vld [vmem:[#allocation40_spill] sm:$0xff] }
 0x3e6   : > { %v3207_v19 = vmul.f32 %v3166_v49, %v6009_v28 }
 0x3e7   : > { %v3243_v44 = vadd.f32 %v3242_v58, %v3203_v46  ;;  %v6010_v58 = vld [vmem:[#allocation2_spill] sm:$0xff] }
 0x3e8   : > { %v3209_v37 = vmul.f32 %v3168_v26, %v6010_v58 }
 0x3e9   : > { %v3244_v29 = vadd.f32 %v3243_v44, %v3204_v51  ;;  %v3210_v44 = vmul.f32 %v3169_v1, %v6011_v61 }
 0x3eb   : > { %v3245_v9 = vadd.f32 %v3244_v29, %v3205_v40  ;;  %v6012_v40 = vld [vmem:[#allocation4_spill] sm:$0xff] }
 0x3ec   : > { %v3211_v29 = vmul.f32 %v3170_v24, %v6012_v40 }
 0x3ed   : > { %v3246_v8 = vadd.f32 %v3245_v9, %v3206_v33 }
 0x3ef   : > { %v3247_v46 = vadd.f32 %v3246_v8, %v3207_v19 }
 0x3f1   : > { %v3248_v51 = vadd.f32 %v3247_v46, %v3208_v0 }
 0x3f3   : > { %v3249_v34 = vadd.f32 %v3248_v51, %v3209_v37 }
 0x3f5   : > { %v3250_v32 = vadd.f32 %v3249_v34, %v3210_v44 }
 0x3f7   : > { %v3251_v49 = vadd.f32 %v3250_v32, %v3211_v29 }
 0x3f9   : > { %v3253_v33 = vadd.f32 %v5480_v35, %v3251_v49 }
 0x3fb   : > { %v3254_v9 = vrot.slane %v3253_v33, 4 }
 0x3fd   : > { %v3255_v28 = vadd.f32 %v3254_v9, %v3253_v33 }
 0x3ff   : > { %v3256_v43 = vrot.slane %v3255_v28, 2 }
 0x401   : > { %v3257_v54 = vadd.f32 %v3256_v43, %v3255_v28 }
 0x403   : > { %v3258_v4 = vrot.slane %v3257_v54, 1 }
 0x405   : > { %v3259_v19 = vadd.f32 %v3258_v4, %v3257_v54 }
 0x407   : > { %v3260_v8 = vmul.f32 0.00390625, %v3259_v19 }
 0x409   : > { %v3261_v31 = vadd.f32 1e-05, %v3260_v8 }
 0x40b   : > { %3809 = vrsqrt.f32 %v3261_v31  ;;  %vm3268_vm3 = vweird.f32 %v3261_v31 }
 0x411   : > { %v3810_v26 = vpop.eup %3809 }
 0x412   : > { %v3263_v0 = vmul.f32 %v3810_v26, %v3261_v31  ;;  %vm3269_vm2 = vweird.f32 %v3810_v26 }
 0x413   : > { %vm3270_vm4 = vmor %vm3268_vm3, %vm3269_vm2 }
 0x414   : > { %v3264_v1 = vmul.f32 %v3810_v26, %v3263_v0 }
 0x416   : > { %v3265_v46 = vmul.f32 0.5, %v3264_v1 }
 0x418   : > { %v3266_v58 = vsub.f32 1.5, %v3265_v46 }
 0x41a   : > { %v3267_v24 = vmul.f32 %v3810_v26, %v3266_v58 }
 0x41c   : > { %v5699_v35 = vsel %vm3270_vm4, %v3810_v26, %v3267_v24 }
 0x41d   : > { %v3272_v43 = vmul.f32 %v5699_v35, %v5431_v17  ;;  %v3273_v61 = vmul.f32 %v5699_v35, %v5435_v7  ;;  %v3274_v31 = vmul.f32 %v5699_v35, %v5439_v39  ;;  %v3275_v17 = vmul.f32 %v5699_v35, %v5447_v45 }
 0x41e   : > { %v3276_v44 = vmul.f32 %v5699_v35, %v5451_v60  ;;  %v3277_v34 = vmul.f32 %v5699_v35, %v5461_v22  ;;  %v3278_v29 = vmul.f32 %v5699_v35, %v5467_v38  ;;  %v3279_v7 = vmul.f32 %v5699_v35, %v5474_v2 }
 0x41f   : > { %vm3313_vm5 = vcmp.ge.f32.partialorder %v3272_v43, 0.0  ;;  %v3354_v37 = vmul.f32 0.2, %v3272_v43  ;;  %v3355_v40 = vmul.f32 0.2, %v3273_v61  ;;  %vm3314_vm6 = vcmp.ge.f32.partialorder %v3273_v61, 0.0 }
 0x420   : > { %v3356_v32 = vmul.f32 0.2, %v3274_v31  ;;  %vm3315_vm7 = vcmp.ge.f32.partialorder %v3274_v31, 0.0  ;;  %v3357_v39 = vmul.f32 0.2, %v3275_v17  ;;  %v3280_v45 = vmul.f32 %v5699_v35, %v5484_v27 }
 0x421   : > { %v3395_v51 = vsel %vm3313_vm5, %v3272_v43, %v3354_v37  ;;  %vm3316_vm8 = vcmp.ge.f32.partialorder %v3275_v17, 0.0  ;;  %v3358_v49 = vmul.f32 0.2, %v3276_v44  ;;  %v3281_v60 = vmul.f32 %v5699_v35, %v5491_v12 }
 0x422   : > { %3436 = vst [vmem:[%s5707_s7] sm:$0xff] %v3395_v51  ;;  %vm3317_vm9 = vcmp.ge.f32.partialorder %v3276_v44, 0.0  ;;  %v3359_v22 = vmul.f32 0.2, %v3277_v34  ;;  %v3396_v33 = vsel %vm3314_vm6, %v3273_v61, %v3355_v40  ;;  %v3282_v38 = vmul.f32 %v5699_v35, %v5498_v63 }
 0x423   : > { %vm3318_vm10 = vcmp.ge.f32.partialorder %v3277_v34, 0.0  ;;  %v3360_v2 = vmul.f32 0.2, %v3278_v29  ;;  %v3397_v9 = vsel %vm3315_vm7, %v3274_v31, %v3356_v32  ;;  %v3283_v28 = vmul.f32 %v5699_v35, %v5505_v30  ;;  %3437 = vst [vmem:[%s5707_s7 + $0x8] sm:$0xff] %v3396_v33 }
 0x424   : > { %vm3319_vm11 = vcmp.ge.f32.partialorder %v3278_v29, 0.0  ;;  %v3361_v27 = vmul.f32 0.2, %v3279_v7  ;;  %v3398_v54 = vsel %vm3316_vm8, %v3275_v17, %v3357_v39  ;;  %v3284_v12 = vmul.f32 %v5699_v35, %v5512_v52  ;;  %3438 = vst [vmem:[%s5707_s7 + $0x10] sm:$0xff] %v3397_v9 }
 0x425   : > { %vm3320_vm12 = vcmp.ge.f32.partialorder %v3279_v7, 0.0  ;;  %v3362_v4 = vmul.f32 0.2, %v3280_v45  ;;  %v3399_v19 = vsel %vm3317_vm9, %v3276_v44, %v3358_v49  ;;  %v3285_v63 = vmul.f32 %v5699_v35, %v5519_v5  ;;  %3439 = vst [vmem:[%s5707_s7 + $0x18] sm:$0xff] %v3398_v54 }
 0x426   : > { %vm3321_vm13 = vcmp.ge.f32.partialorder %v3280_v45, 0.0  ;;  %v3363_v8 = vmul.f32 0.2, %v3281_v60  ;;  %v3400_v26 = vsel %vm3318_vm10, %v3277_v34, %v3359_v22  ;;  %v3286_v30 = vmul.f32 %v5699_v35, %v5526_v56  ;;  %3440 = vst [vmem:[%s5707_s7 + $0x20] sm:$0xff] %v3399_v19 }
 0x427   : > { %vm3322_vm14 = vcmp.ge.f32.partialorder %v3281_v60, 0.0  ;;  %v3364_v0 = vmul.f32 0.2, %v3282_v38  ;;  %v3401_v52 = vsel %vm3319_vm11, %v3278_v29, %v3360_v2  ;;  %v3287_v1 = vmul.f32 %v5699_v35, %v5533_v18  ;;  %3441 = vst [vmem:[%s5707_s7 + $0x28] sm:$0xff] %v3400_v26 }
 0x428   : > { %vm3323_vm15 = vcmp.ge.f32.partialorder %v3282_v38, 0.0  ;;  %v3365_v46 = vmul.f32 0.2, %v3283_v28  ;;  %v3402_v5 = vsel %vm3320_vm12, %v3279_v7, %v3361_v27  ;;  %v3288_v58 = vmul.f32 %v5699_v35, %v5540_v6  ;;  %3442 = vst [vmem:[%s5707_s7 + $0x30] sm:$0xff] %v3401_v52 }
 0x429   : > { %vm3324_vm0 = vcmp.ge.f32.partialorder %v3283_v28, 0.0  ;;  %v3366_v56 = vmul.f32 0.2, %v3284_v12  ;;  %v3403_v24 = vsel %vm3321_vm13, %v3280_v45, %v3362_v4  ;;  %v3289_v43 = vmul.f32 %v5699_v35, %v5547_v48  ;;  %3443 = vst [vmem:[%s5707_s7 + $0x38] sm:$0xff] %v3402_v5 }
 0x42a   : > { %vm3325_vm1 = vcmp.ge.f32.partialorder %v3284_v12, 0.0  ;;  %v3367_v18 = vmul.f32 0.2, %v3285_v63  ;;  %v3404_v37 = vsel %vm3322_vm14, %v3281_v60, %v3363_v8  ;;  %v3290_v51 = vmul.f32 %v5699_v35, %v5554_v59  ;;  %3444 = vst [vmem:[%s5707_s7 + $0x40] sm:$0xff] %v3403_v24 }
 0x42b   : > { %vm3326_vm2 = vcmp.ge.f32.partialorder %v3285_v63, 0.0  ;;  %v3368_v6 = vmul.f32 0.2, %v3286_v30  ;;  %v3405_v61 = vsel %vm3323_vm15, %v3282_v38, %v3364_v0  ;;  %v3291_v31 = vmul.f32 %v5699_v35, %v5561_v20  ;;  %3445 = vst [vmem:[%s5707_s7 + $0x48] sm:$0xff] %v3404_v37 }
 0x42c   : > { %vm3327_vm3 = vcmp.ge.f32.partialorder %v3286_v30, 0.0  ;;  %v3369_v48 = vmul.f32 0.2, %v3287_v1  ;;  %v3406_v17 = vsel %vm3324_vm0, %v3283_v28, %v3365_v46  ;;  %v3292_v44 = vmul.f32 %v5699_v35, %v5568_v41  ;;  %3446 = vst [vmem:[%s5707_s7 + $0x50] sm:$0xff] %v3405_v61  ;;  %v6013_v61 = vld [vmem:[#allocation41_spill] sm:$0xff] }
 0x42d   : > { %vm3328_vm4 = vcmp.ge.f32.partialorder %v3287_v1, 0.0  ;;  %v3370_v59 = vmul.f32 0.2, %v3288_v58  ;;  %v3407_v34 = vsel %vm3325_vm1, %v3284_v12, %v3366_v56  ;;  %v3293_v40 = vmul.f32 %v5699_v35, %v5575_v10  ;;  %3447 = vst [vmem:[%s5707_s7 + $0x58] sm:$0xff] %v3406_v17  ;;  %v6014_v17 = vld [vmem:[#allocation42_spill] sm:$0xff] }
 0x42e   : > { %vm3329_vm5 = vcmp.ge.f32.partialorder %v3288_v58, 0.0  ;;  %v3371_v20 = vmul.f32 0.2, %v3289_v43  ;;  %v3408_v29 = vsel %vm3326_vm2, %v3285_v63, %v3367_v18  ;;  %v3294_v32 = vmul.f32 %v5699_v35, %v5582_v11  ;;  %3448 = vst [vmem:[%s5707_s7 + $0x60] sm:$0xff] %v3407_v34 }
 0x42f   : > { %vm3330_vm6 = vcmp.ge.f32.partialorder %v3289_v43, 0.0  ;;  %v3372_v41 = vmul.f32 0.2, %v3290_v51  ;;  %v3409_v7 = vsel %vm3327_vm3, %v3286_v30, %v3368_v6  ;;  %v3295_v39 = vmul.f32 %v5699_v35, %v5589_v16  ;;  %3449 = vst [vmem:[%s5707_s7 + $0x68] sm:$0xff] %v3408_v29 }
 0x430   : > { %vm3331_vm7 = vcmp.ge.f32.partialorder %v3290_v51, 0.0  ;;  %v3373_v10 = vmul.f32 0.2, %v3291_v31  ;;  %v3410_v45 = vsel %vm3328_vm4, %v3287_v1, %v3369_v48  ;;  %v3296_v49 = vmul.f32 %v5699_v35, %v5596_v62  ;;  %3450 = vst [vmem:[%s5707_s7 + $0x70] sm:$0xff] %v3409_v7 }
 0x431   : > { %vm3332_vm8 = vcmp.ge.f32.partialorder %v3291_v31, 0.0  ;;  %v3374_v11 = vmul.f32 0.2, %v3292_v44  ;;  %v3411_v60 = vsel %vm3329_vm5, %v3288_v58, %v3370_v59  ;;  %v3297_v22 = vmul.f32 %v5699_v35, %v5603_v13  ;;  %3451 = vst [vmem:[%s5707_s7 + $0x78] sm:$0xff] %v3410_v45 }
 0x432   : > { %vm3333_vm9 = vcmp.ge.f32.partialorder %v3292_v44, 0.0  ;;  %v3375_v16 = vmul.f32 0.2, %v3293_v40  ;;  %v3412_v33 = vsel %vm3330_vm6, %v3289_v43, %v3371_v20  ;;  %v3298_v38 = vmul.f32 %v5699_v35, %v5610_v36  ;;  %3452 = vst [vmem:[%s5707_s7 + $0x80] sm:$0xff] %v3411_v60 }
 0x433   : > { %vm3334_vm10 = vcmp.ge.f32.partialorder %v3293_v40, 0.0  ;;  %v3376_v62 = vmul.f32 0.2, %v3294_v32  ;;  %v3413_v2 = vsel %vm3331_vm7, %v3290_v51, %v3372_v41  ;;  %v3299_v9 = vmul.f32 %v5699_v35, %v5617_v21  ;;  %3453 = vst [vmem:[%s5707_s7 + $0x88] sm:$0xff] %v3412_v33 }
 0x434   : > { %vm3335_vm11 = vcmp.ge.f32.partialorder %v3294_v32, 0.0  ;;  %v3377_v13 = vmul.f32 0.2, %v3295_v39  ;;  %v3414_v28 = vsel %vm3332_vm8, %v3291_v31, %v3373_v10  ;;  %v3300_v27 = vmul.f32 %v5699_v35, %v5624_v53  ;;  %3454 = vst [vmem:[%s5707_s7 + $0x90] sm:$0xff] %v3413_v2 }
 0x435   : > { %vm3336_vm12 = vcmp.ge.f32.partialorder %v3295_v39, 0.0  ;;  %v3378_v36 = vmul.f32 0.2, %v3296_v49  ;;  %v3415_v54 = vsel %vm3333_vm9, %v3292_v44, %v3374_v11  ;;  %v3301_v12 = vmul.f32 %v5699_v35, %v5631_v14  ;;  %3455 = vst [vmem:[%s5707_s7 + $0x98] sm:$0xff] %v3414_v28 }
 0x436   : > { %vm3337_vm13 = vcmp.ge.f32.partialorder %v3296_v49, 0.0  ;;  %v3379_v21 = vmul.f32 0.2, %v3297_v22  ;;  %v3416_v4 = vsel %vm3334_vm10, %v3293_v40, %v3375_v16  ;;  %v3302_v19 = vmul.f32 %v5699_v35, %v5638_v42  ;;  %3456 = vst [vmem:[%s5707_s7 + $0xa0] sm:$0xff] %v3415_v54 }
 0x437   : > { %vm3338_vm14 = vcmp.ge.f32.partialorder %v3297_v22, 0.0  ;;  %v3380_v53 = vmul.f32 0.2, %v3298_v38  ;;  %v3417_v63 = vsel %vm3335_vm11, %v3294_v32, %v3376_v62  ;;  %v3303_v8 = vmul.f32 %v5699_v35, %v5645_v50  ;;  %3457 = vst [vmem:[%s5707_s7 + $0xa8] sm:$0xff] %v3416_v4 }
 0x438   : > { %vm3339_vm15 = vcmp.ge.f32.partialorder %v3298_v38, 0.0  ;;  %v3381_v14 = vmul.f32 0.2, %v3299_v9  ;;  %v3418_v26 = vsel %vm3336_vm12, %v3295_v39, %v3377_v13  ;;  %v3304_v30 = vmul.f32 %v5699_v35, %v5652_v15  ;;  %3458 = vst [vmem:[%s5707_s7 + $0xb0] sm:$0xff] %v3417_v63 }
 0x439   : > { %vm3340_vm0 = vcmp.ge.f32.partialorder %v3299_v9, 0.0  ;;  %v3382_v42 = vmul.f32 0.2, %v3300_v27  ;;  %v3419_v0 = vsel %vm3337_vm13, %v3296_v49, %v3378_v36  ;;  %v3305_v52 = vmul.f32 %v5699_v35, %v5659_v25  ;;  %3459 = vst [vmem:[%s5707_s7 + $0xb8] sm:$0xff] %v3418_v26 }
 0x43a   : > { %vm3341_vm1 = vcmp.ge.f32.partialorder %v3300_v27, 0.0  ;;  %v3383_v50 = vmul.f32 0.2, %v3301_v12  ;;  %v3420_v1 = vsel %vm3338_vm14, %v3297_v22, %v3379_v21  ;;  %v3306_v46 = vmul.f32 %v5699_v35, %v5666_v3  ;;  %3460 = vst [vmem:[%s5707_s7 + $0xc0] sm:$0xff] %v3419_v0 }
 0x43b   : > { %vm3342_vm2 = vcmp.ge.f32.partialorder %v3301_v12, 0.0  ;;  %v3384_v15 = vmul.f32 0.2, %v3302_v19  ;;  %v3421_v5 = vsel %vm3339_vm15, %v3298_v38, %v3380_v53  ;;  %v3307_v58 = vmul.f32 %v5699_v35, %v5673_v23  ;;  %3461 = vst [vmem:[%s5707_s7 + $0xc8] sm:$0xff] %v3420_v1 }
 0x43c   : > { %vm3343_vm3 = vcmp.ge.f32.partialorder %v3302_v19, 0.0  ;;  %v3385_v25 = vmul.f32 0.2, %v3303_v8  ;;  %v3422_v56 = vsel %vm3340_vm0, %v3299_v9, %v3381_v14  ;;  %v3308_v24 = vmul.f32 %v5699_v35, %v5415_v57  ;;  %3462 = vst [vmem:[%s5707_s7 + $0xd0] sm:$0xff] %v3421_v5 }
 0x43d   : > { %vm3344_vm4 = vcmp.ge.f32.partialorder %v3303_v8, 0.0  ;;  %v3386_v3 = vmul.f32 0.2, %v3304_v30  ;;  %v3423_v43 = vsel %vm3341_vm1, %v3300_v27, %v3382_v42  ;;  %v3309_v18 = vmul.f32 %v5699_v35, %v5418_v55  ;;  %3463 = vst [vmem:[%s5707_s7 + $0xd8] sm:$0xff] %v3422_v56 }
 0x43e   : > { %vm3345_vm5 = vcmp.ge.f32.partialorder %v3304_v30, 0.0  ;;  %v3387_v23 = vmul.f32 0.2, %v3305_v52  ;;  %v3424_v37 = vsel %vm3342_vm2, %v3301_v12, %v3383_v50  ;;  %v3310_v51 = vmul.f32 %v5699_v35, %v5421_v47  ;;  %3464 = vst [vmem:[%s5707_s7 + $0xe0] sm:$0xff] %v3423_v43 }
 0x43f   : > { %vm3346_vm6 = vcmp.ge.f32.partialorder %v3305_v52, 0.0  ;;  %v3388_v57 = vmul.f32 0.2, %v3306_v46  ;;  %v3425_v6 = vsel %vm3343_vm3, %v3302_v19, %v3384_v15  ;;  %v3311_v31 = vmul.f32 %v5699_v35, %v6013_v61  ;;  %3465 = vst [vmem:[%s5707_s7 + $0xe8] sm:$0xff] %v3424_v37 }
 0x440   : > { %vm3347_vm7 = vcmp.ge.f32.partialorder %v3306_v46, 0.0  ;;  %v3389_v55 = vmul.f32 0.2, %v3307_v58  ;;  %v3426_v48 = vsel %vm3344_vm4, %v3303_v8, %v3385_v25  ;;  %v3312_v44 = vmul.f32 %v5699_v35, %v6014_v17  ;;  %3466 = vst [vmem:[%s5707_s7 + $0xf0] sm:$0xff] %v3425_v6 }
 0x441   : > { %vm3348_vm8 = vcmp.ge.f32.partialorder %v3307_v58, 0.0  ;;  %v3390_v47 = vmul.f32 0.2, %v3308_v24  ;;  %v3427_v59 = vsel %vm3345_vm5, %v3304_v30, %v3386_v3  ;;  %vm3349_vm9 = vcmp.ge.f32.partialorder %v3308_v24, 0.0  ;;  %3467 = vst [vmem:[%s5707_s7 + $0xf8] sm:$0xff] %v3426_v48 }
 0x442   : > { %v3391_v34 = vmul.f32 0.2, %v3309_v18  ;;  %v3428_v40 = vsel %vm3346_vm6, %v3305_v52, %v3387_v23  ;;  %vm3350_vm10 = vcmp.ge.f32.partialorder %v3309_v18, 0.0  ;;  %v3392_v20 = vmul.f32 0.2, %v3310_v51  ;;  %3468 = vst [vmem:[%s5707_s7 + $0x100] sm:$0xff] %v3427_v59 }
 0x443   : > { %v3429_v29 = vsel %vm3347_vm7, %v3306_v46, %v3388_v57  ;;  %vm3351_vm11 = vcmp.ge.f32.partialorder %v3310_v51, 0.0  ;;  %v3393_v35 = vmul.f32 0.2, %v3311_v31  ;;  %v3430_v32 = vsel %vm3348_vm8, %v3307_v58, %v3389_v55  ;;  %3469 = vst [vmem:[%s5707_s7 + $0x108] sm:$0xff] %v3428_v40 }
 0x444   : > { %vm3352_vm12 = vcmp.ge.f32.partialorder %v3311_v31, 0.0  ;;  %v3394_v41 = vmul.f32 0.2, %v3312_v44  ;;  %v3431_v7 = vsel %vm3349_vm9, %v3308_v24, %v3390_v47  ;;  %vm3353_vm13 = vcmp.ge.f32.partialorder %v3312_v44, 0.0  ;;  %3470 = vst [vmem:[%s5707_s7 + $0x110] sm:$0xff] %v3429_v29 }
 0x445   : > { %v3432_v39 = vsel %vm3350_vm10, %v3309_v18, %v3391_v34  ;;  %v3433_v10 = vsel %vm3351_vm11, %v3310_v51, %v3392_v20  ;;  %3471 = vst [vmem:[%s5707_s7 + $0x118] sm:$0xff] %v3430_v32  ;;  %v3434_v45 = vsel %vm3352_vm12, %v3311_v31, %v3393_v35 }
 0x446   : > { %3472 = vst [vmem:[%s5707_s7 + $0x120] sm:$0xff] %v3431_v7  ;;  %v3435_v49 = vsel %vm3353_vm13, %v3312_v44, %v3394_v41 }
 0x447   : > { %3473 = vst [vmem:[%s5707_s7 + $0x128] sm:$0xff] %v3432_v39 }
 0x448   : > { %3474 = vst [vmem:[%s5707_s7 + $0x130] sm:$0xff] %v3433_v10 }
 0x449   : > { %3475 = vst [vmem:[%s5707_s7 + $0x138] sm:$0xff] %v3434_v45 }
 0x44a   : > { %3476 = vst [vmem:[%s5707_s7 + $0x140] sm:$0xf] %v3435_v49 }
 0x44b PF: > { %s14_s15 = sadd.s32 1, %s3817_s15  }
 0x44c   : > { %p11_p4 = scmp.ge.s32.totalorder %s14_s15, 4  }
 0x44e   :  { %13 = sbr.rel (!%p11_p4) target bundleno = 1 (0x1), region = 74 }

</bundles_post_ra>
